<compile_context>
chip_gen: v5e
topology: v5e:2x2
jax: 0.10.0
libtpu: 0.0.40
codegen_flags: <defaults>
</compile_context>

<pallas_src>
import jax
import jax.numpy as jnp
from jax import lax
from jax.experimental import pallas as pl
from jax.experimental.pallas import tpu as pltpu

# ---------------- configuration ----------------
B = 2                     # number of ROIs (batch)
N = 64                    # points per ROI
K = 8                     # GCNLayer.k
RCNN_INPUT_CHANNEL = 5    # xyz(3) + seg_mask(1) + depth(1)
C_RPN = 16                # rpn feature channels
GCN_FILTERS = [16, 32]
CLS_FC = [32]
REG_FC = [32]
CLS_CHANNEL = 1
PER_LOC_BIN_NUM = int(1.5 / 0.5) * 2                           # 6
NUM_HEAD_BIN = 4
REG_CHANNEL = PER_LOC_BIN_NUM * 4 + NUM_HEAD_BIN * 2 + 3 + 1   # 36
HEAD_IN = GCN_FILTERS[-1] + C_RPN                              # 48
HEAD1_OUT = CLS_FC[0] + REG_FC[0]                              # 64 (fused cls1|reg1)
C_TOTAL = RCNN_INPUT_CHANNEL + C_RPN                           # 21
W_ROWS = 160                                                   # packed weight-slab rows

# Weight-slab row layout (all row starts 8-aligned, zero-padded):
#   [  0:  8) gcn0  W_top   (rows 0:3 used, cols 0:16)
#   [  8: 16) gcn0  W_bot-W_top
#   [ 16: 32) gcn1  W_top   (cols 0:32)
#   [ 32: 48) gcn1  W_bot-W_top
#   [ 48: 80) head1 gcn-part  of concat(cls1_w, reg1_w)  (cols 0:64)
#   [ 80: 96) head1 rpn-part
#   [ 96:128) head2 cls2_w  (cols 0:1)      } block-diagonal
#   [128:160) head2 reg2_w  (cols 1:37)     }
# Bias-slab rows: 0 gcn0, 1 gcn1, 2 head1 (cls1|reg1), 3 head2 ([cls|reg] packed).


def _leaky(x):
    return jnp.where(x > 0.0, x, 0.2 * x)


# ---------------- single fused kernel (all ROIs in one step) ----------------
def _gcn_net_kernel(pts_ref, lhs_ref, rhs_ref, w_ref, b_ref, out_ref, sel_ref):
    f32 = jnp.float32
    rn = pts_ref.shape[0]            # B * N rows (ROIs row-stacked)
    r = rn // N                      # ROIs per step
    u0, u1 = GCN_FILTERS

    pts = pts_ref[...]                                   # (rn, 21)
    rpn = pts[:, RCNN_INPUT_CHANNEL:C_TOTAL]             # (rn, 16)
    xyz8 = pts[:, 0:8]                                   # xyz in cols 0:3; cols 3:8 hit zero W rows

    # ---- packed weights / biases (static slab slices) ----
    w0_top = w_ref[0:8, 0:u0]
    w0_dlt = w_ref[8:16, 0:u0]
    w1_top = w_ref[16:32, 0:u1]
    w1_dlt = w_ref[32:48, 0:u1]
    h1_wg = w_ref[48:80, 0:HEAD1_OUT]
    h1_wr = w_ref[80:96, 0:HEAD1_OUT]
    h2_w = w_ref[96:160, :]
    b0 = b_ref[0:1, 0:u0]
    b1 = b_ref[1:2, 0:u1]
    bh1 = b_ref[2:3, 0:HEAD1_OUT]
    bh2 = b_ref[3:4, :]

    # ---- kNN score: one MXU matmul; per-row ranking == reference -||xi-xj||^2 topk ----
    score = jnp.dot(lhs_ref[...], rhs_ref[...], preferred_element_type=f32)   # (rn, rn)
    ri = lax.broadcasted_iota(jnp.int32, (rn, rn), 0).astype(f32)
    ci = lax.broadcasted_iota(jnp.int32, (rn, rn), 1).astype(f32)
    inv_n = f32(1.0 / N)
    same_roi = jnp.floor(ri * inv_n) == jnp.floor(ci * inv_n)                 # block-diagonal mask
    neg_inf = f32(-jnp.inf)
    dd = jnp.where(same_roi, score, neg_inf)
    lane = ci

    # ---- EdgeConv layer 0: top-k selection (stored for reuse) fused with its gather ----
    # edge @ W = gather(fw) + base  with  fw = f @ W_top,  base = f @ (W_bot - W_top) + b
    fw0 = jnp.dot(xyz8, w0_top, preferred_element_type=f32)                   # (rn, 16)
    base0 = jnp.dot(xyz8, w0_dlt, preferred_element_type=f32) + b0
    g0 = None
    for kk in range(K):                                                       # static unroll
        m = jnp.max(dd, axis=-1, keepdims=True)                               # row max
        sel = jnp.min(jnp.where(dd >= m, lane, f32(rn)), axis=-1, keepdims=True)
        hit = lane == sel                                                     # one-hot per row
        oh = hit.astype(f32)
        sel_ref[pl.ds(kk * rn, rn), :] = oh                                   # reuse for layer 1
        dd = jnp.where(hit, neg_inf, dd)
        g = jnp.dot(oh, fw0, preferred_element_type=f32)                      # neighbor gather
        g0 = g if g0 is None else jnp.maximum(g0, g)
    f1 = _leaky(g0 + base0)                                                   # max_k hoisted out

    # ---- EdgeConv layer 1: same graph, reuse stored selection ----
    fw1 = jnp.dot(f1, w1_top, preferred_element_type=f32)                     # (rn, 32)
    base1 = jnp.dot(f1, w1_dlt, preferred_element_type=f32) + b1
    g1 = None
    for kk in range(K):
        g = jnp.dot(sel_ref[pl.ds(kk * rn, rn), :], fw1, preferred_element_type=f32)
        g1 = g if g1 is None else jnp.maximum(g1, g)
    f2 = _leaky(g1 + base1)                                                   # (rn, 32)

    # ---- per-ROI max pools -> head rows (sublane b = ROI b) ----
    row_id = lax.broadcasted_iota(jnp.int32, (8, 1), 0)
    g_pool = jnp.zeros((8, u1), f32)
    r_pool = jnp.zeros((8, C_RPN), f32)
    for bb in range(r):
        gb = jnp.max(f2[bb * N:(bb + 1) * N, :], axis=0, keepdims=True)       # (1, 32)
        pb = jnp.max(rpn[bb * N:(bb + 1) * N, :], axis=0, keepdims=True)      # (1, 16)
        is_b = row_id == bb
        g_pool = jnp.where(is_b, gb, g_pool)
        r_pool = jnp.where(is_b, pb, r_pool)

    # ---- fused cls/reg heads (split-weight first layer, block-diagonal second layer) ----
    h1 = jnp.maximum(jnp.dot(g_pool, h1_wg, preferred_element_type=f32)
                     + jnp.dot(r_pool, h1_wr, preferred_element_type=f32) + bh1, 0.0)
    packed = jnp.dot(h1, h2_w, preferred_element_type=f32) + bh2              # (8, 128): [cls | reg | 0]
    out_ref[...] = packed[0:out_ref.shape[0], :].astype(out_ref.dtype)


# ---------------- weight packing (host-side, fused XLA ops) ----------------
def _pack_params(params):
    (g0_w, g0_b), (g1_w, g1_b) = params["gcn"]
    (c1_w, c1_b), (c2_w, c2_b) = params["cls"]
    (r1_w, r1_b), (r2_w, r2_b) = params["reg"]
    u0, u1 = GCN_FILTERS

    w = jnp.zeros((W_ROWS, 128), jnp.float32)
    w = w.at[0:3, 0:u0].set(g0_w[0:3])                         # gcn0 W_top (diff part)
    w = w.at[8:11, 0:u0].set(g0_w[3:6] - g0_w[0:3])            # gcn0 W_bot - W_top
    w = w.at[16:32, 0:u1].set(g1_w[0:u0])                      # gcn1 W_top
    w = w.at[32:48, 0:u1].set(g1_w[u0:2 * u0] - g1_w[0:u0])    # gcn1 W_bot - W_top
    h1_w = jnp.concatenate([c1_w, r1_w], axis=1)               # (48, 64)
    w = w.at[48:80, 0:HEAD1_OUT].set(h1_w[0:u1])               # head1 gcn-part
    w = w.at[80:96, 0:HEAD1_OUT].set(h1_w[u1:HEAD_IN])         # head1 rpn-part
    w = w.at[96:128, 0:CLS_CHANNEL].set(c2_w)                  # head2 block-diag: cls2
    w = w.at[128:160, CLS_CHANNEL:CLS_CHANNEL + REG_CHANNEL].set(r2_w)        # reg2

    bs = jnp.zeros((8, 128), jnp.float32)
    bs = bs.at[0, 0:u0].set(g0_b)
    bs = bs.at[1, 0:u1].set(g1_b)
    bs = bs.at[2, 0:HEAD1_OUT].set(jnp.concatenate([c1_b, r1_b]))
    bs = bs.at[3, 0:CLS_CHANNEL].set(c2_b)
    bs = bs.at[3, CLS_CHANNEL:CLS_CHANNEL + REG_CHANNEL].set(r2_b)
    return w, bs


# ---------------- wrapper ----------------
def gcn_net_forward(params, pts_input):
    """pts_input: (B, N, 5 + C_RPN) = [xyz, seg_mask, depth, rpn_features]."""
    bsz, n, c = pts_input.shape
    rn = bsz * n
    pts2d = pts_input.reshape(rn, c)

    # kNN operands.  torch builds the graph from xyz.view(B, 3, N) — a RAW row-major
    # reshape of the (B, N, 3) xyz (kept here for fidelity).  Ranking-equivalent score
    # s[i,j] = 2*xi·xj - |xj|^2 packed as a single matmul: lhs rows = [x_i, 1, 0..],
    # rhs cols = [2*x_j; -|x_j|^2; 0..].
    xyz_v = pts_input[..., 0:3].reshape(bsz, 3, n)
    x_cols = jnp.transpose(xyz_v, (1, 0, 2)).reshape(3, rn)                   # (3, rn)
    norms = jnp.sum(x_cols * x_cols, axis=0, keepdims=True)                   # (1, rn)
    knn_rhs = jnp.concatenate(
        [2.0 * x_cols, -norms, jnp.zeros((4, rn), jnp.float32)], axis=0)      # (8, rn)
    knn_lhs = jnp.concatenate(
        [x_cols.T, jnp.ones((rn, 1), jnp.float32), jnp.zeros((rn, 4), jnp.float32)],
        axis=1)                                                               # (rn, 8)

    wslab, bslab = _pack_params(params)

    out = pl.pallas_call(
        _gcn_net_kernel,
        out_shape=jax.ShapeDtypeStruct((bsz, 128), jnp.float32),
        grid=(1,),
        in_specs=[
            pl.BlockSpec((rn, c), lambda i: (0, 0)),
            pl.BlockSpec((rn, 8), lambda i: (0, 0)),
            pl.BlockSpec((8, rn), lambda i: (0, 0)),
            pl.BlockSpec(wslab.shape, lambda i: (0, 0)),
            pl.BlockSpec(bslab.shape, lambda i: (0, 0)),
        ],
        out_specs=pl.BlockSpec((bsz, 128), lambda i: (0, 0)),
        scratch_shapes=[pltpu.VMEM((K * rn, rn), jnp.float32)],   # shared kNN one-hot selection
        compiler_params=pltpu.CompilerParams(dimension_semantics=("arbitrary",)),
    )(pts2d, knn_lhs, knn_rhs, wslab, bslab)

    return {"rcnn_cls": out[:, 0:CLS_CHANNEL],
            "rcnn_reg": out[:, CLS_CHANNEL:CLS_CHANNEL + REG_CHANNEL]}


# ---------------- deterministic parameter init (mirrors init_weights) ----------------
def _xavier(key, cin, cout):
    std = (2.0 / (cin + cout)) ** 0.5
    return jax.random.normal(key, (cin, cout), jnp.float32) * std


def init_params(key):
    keys = iter(jax.random.split(key, 64))
    p = {}
    # xyz_up / merge_down exist in the module but their output (l_features[0]) is never
    # consumed by any output path, so the kernel skips them (kept here only for structure).
    dims = [RCNN_INPUT_CHANNEL, 16, 16]
    p["xyz_up"] = [(_xavier(next(keys), dims[i], dims[i + 1]),
                    jnp.zeros((dims[i + 1],), jnp.float32)) for i in range(len(dims) - 1)]
    p["merge_down"] = [(_xavier(next(keys), 32, 16), jnp.zeros((16,), jnp.float32))]
    p["gcn"] = []
    for li, units in enumerate(GCN_FILTERS):
        cin = 3 if li == 0 else GCN_FILTERS[li - 1]
        p["gcn"].append((_xavier(next(keys), 2 * cin, units),
                         jnp.zeros((units,), jnp.float32)))
    dims = [HEAD_IN] + CLS_FC + [CLS_CHANNEL]
    p["cls"] = [(_xavier(next(keys), dims[i], dims[i + 1]),
                 jnp.zeros((dims[i + 1],), jnp.float32)) for i in range(len(dims) - 1)]
    dims = [HEAD_IN] + REG_FC + [REG_CHANNEL]
    p["reg"] = [(_xavier(next(keys), dims[i], dims[i + 1]),
                 jnp.zeros((dims[i + 1],), jnp.float32)) for i in range(len(dims) - 1)]
    # reg last layer: weight ~ N(0, 0.001), bias 0
    p["reg"][-1] = (jax.random.normal(next(keys), (dims[-2], dims[-1]), jnp.float32) * 0.001,
                    jnp.zeros((dims[-1],), jnp.float32))
    return p


if __name__ == "__main__":
    key = jax.random.PRNGKey(0)
    pkey, dkey = jax.random.split(key)
    params = init_params(pkey)
    pts_input = jax.random.normal(dkey, (B, N, C_TOTAL), jnp.float32)

    out = jax.jit(gcn_net_forward)(params, pts_input)
    jax.block_until_ready(out)

    assert out["rcnn_cls"].shape == (B, CLS_CHANNEL)
    assert out["rcnn_reg"].shape == (B, REG_CHANNEL)
    assert bool(jnp.all(jnp.isfinite(out["rcnn_cls"])))
    assert bool(jnp.all(jnp.isfinite(out["rcnn_reg"])))
    # TODO(synk): training-time paths (proposal_target_layer, roipool3d, losses) are
    # host/CUDA-side data prep outside this forward kernel and are not translated.
    print("KERNEL_OK")
</pallas_src>

<mosaic_0001>
module attributes {stable_mosaic.version = 11 : i64} {
  func.func @_gcn_net_kernel(%arg0: i32, %arg1: memref<128x21xf32, #tpu.memory_space<vmem>>, %arg2: memref<128x8xf32, #tpu.memory_space<vmem>>, %arg3: memref<8x128xf32, #tpu.memory_space<vmem>>, %arg4: memref<160x128xf32, #tpu.memory_space<vmem>>, %arg5: memref<8x128xf32, #tpu.memory_space<vmem>>, %arg6: memref<2x128xf32, #tpu.memory_space<vmem>>, %arg7: memref<1024x128xf32, #tpu.memory_space<vmem>>) attributes {dimension_semantics = [#tpu.dimension_semantics<arbitrary>], iteration_bounds = array<i64: 1>, scalar_prefetch = 0 : i64, scratch_operands = 1 : i64, tpu.core_type = #tpu.core_type<tc>, window_params = [{pipeline_mode = #tpu.pipeline_mode<synchronous>, transform_indices = @transform_0, window_bounds = array<i64: 128, 21>}, {pipeline_mode = #tpu.pipeline_mode<synchronous>, transform_indices = @transform_1, window_bounds = array<i64: 128, 8>}, {pipeline_mode = #tpu.pipeline_mode<synchronous>, transform_indices = @transform_2, window_bounds = array<i64: 8, 128>}, {pipeline_mode = #tpu.pipeline_mode<synchronous>, transform_indices = @transform_3, window_bounds = array<i64: 160, 128>}, {pipeline_mode = #tpu.pipeline_mode<synchronous>, transform_indices = @transform_4, window_bounds = array<i64: 8, 128>}, {pipeline_mode = #tpu.pipeline_mode<synchronous>, transform_indices = @transform_5, window_bounds = array<i64: 2, 128>}]} {
    %c0 = arith.constant 0 : index
    %c0_0 = arith.constant 0 : index
    %0 = vector.load %arg1[%c0, %c0_0] : memref<128x21xf32, #tpu.memory_space<vmem>>, vector<128x21xf32>
    %1 = vector.extract_strided_slice %0 {offsets = [0, 5], sizes = [128, 16], strides = [1, 1]} : vector<128x21xf32> to vector<128x16xf32>
    %2 = vector.extract_strided_slice %0 {offsets = [0, 0], sizes = [128, 8], strides = [1, 1]} : vector<128x21xf32> to vector<128x8xf32>
    %c0_1 = arith.constant 0 : index
    %c0_2 = arith.constant 0 : index
    %3 = vector.load %arg4[%c0_1, %c0_2] : memref<160x128xf32, #tpu.memory_space<vmem>>, vector<8x16xf32>
    %c8 = arith.constant 8 : index
    %c0_3 = arith.constant 0 : index
    %4 = vector.load %arg4[%c8, %c0_3] : memref<160x128xf32, #tpu.memory_space<vmem>>, vector<8x16xf32>
    %c16 = arith.constant 16 : index
    %c0_4 = arith.constant 0 : index
    %5 = vector.load %arg4[%c16, %c0_4] : memref<160x128xf32, #tpu.memory_space<vmem>>, vector<16x32xf32>
    %c32 = arith.constant 32 : index
    %c0_5 = arith.constant 0 : index
    %6 = vector.load %arg4[%c32, %c0_5] : memref<160x128xf32, #tpu.memory_space<vmem>>, vector<16x32xf32>
    %c48 = arith.constant 48 : index
    %c0_6 = arith.constant 0 : index
    %7 = vector.load %arg4[%c48, %c0_6] : memref<160x128xf32, #tpu.memory_space<vmem>>, vector<32x64xf32>
    %c80 = arith.constant 80 : index
    %c0_7 = arith.constant 0 : index
    %8 = vector.load %arg4[%c80, %c0_7] : memref<160x128xf32, #tpu.memory_space<vmem>>, vector<16x64xf32>
    %c96 = arith.constant 96 : index
    %c0_8 = arith.constant 0 : index
    %9 = vector.load %arg4[%c96, %c0_8] : memref<160x128xf32, #tpu.memory_space<vmem>>, vector<64x128xf32>
    %c0_9 = arith.constant 0 : index
    %c0_10 = arith.constant 0 : index
    %10 = vector.load %arg5[%c0_9, %c0_10] : memref<8x128xf32, #tpu.memory_space<vmem>>, vector<1x16xf32>
    %c1 = arith.constant 1 : index
    %c0_11 = arith.constant 0 : index
    %11 = vector.load %arg5[%c1, %c0_11] : memref<8x128xf32, #tpu.memory_space<vmem>>, vector<1x32xf32>
    %c2 = arith.constant 2 : index
    %c0_12 = arith.constant 0 : index
    %12 = vector.load %arg5[%c2, %c0_12] : memref<8x128xf32, #tpu.memory_space<vmem>>, vector<1x64xf32>
    %c3 = arith.constant 3 : index
    %c0_13 = arith.constant 0 : index
    %13 = vector.load %arg5[%c3, %c0_13] : memref<8x128xf32, #tpu.memory_space<vmem>>, vector<1x128xf32>
    %c0_14 = arith.constant 0 : index
    %c0_15 = arith.constant 0 : index
    %14 = vector.load %arg2[%c0_14, %c0_15] : memref<128x8xf32, #tpu.memory_space<vmem>>, vector<128x8xf32>
    %c0_16 = arith.constant 0 : index
    %c0_17 = arith.constant 0 : index
    %15 = vector.load %arg3[%c0_16, %c0_17] : memref<8x128xf32, #tpu.memory_space<vmem>>, vector<8x128xf32>
    %cst = arith.constant dense<0.000000e+00> : vector<128x128xf32>
    %16 = tpu.matmul %14, %15, %cst {dimension_numbers = #tpu.dot_dimension_numbers<[1], [0], [0], [1], [0, 0, 1, 1], [], []>} : vector<128x8xf32>, vector<8x128xf32>, vector<128x128xf32> -> vector<128x128xf32>
    %17 = tpu.iota {dimensions = array<i32: 0>} : vector<128x128xi32>
    %18 = arith.sitofp %17 : vector<128x128xi32> to vector<128x128xf32>
    %19 = tpu.iota {dimensions = array<i32: 1>} : vector<128x128xi32>
    %20 = arith.sitofp %19 : vector<128x128xi32> to vector<128x128xf32>
    %cst_18 = arith.constant 1.562500e-02 : f32
    %21 = vector.broadcast %cst_18 : f32 to vector<128x128xf32>
    %22 = arith.mulf %18, %21 : vector<128x128xf32>
    %23 = math.floor %22 : vector<128x128xf32>
    %cst_19 = arith.constant 1.562500e-02 : f32
    %24 = vector.broadcast %cst_19 : f32 to vector<128x128xf32>
    %25 = arith.mulf %20, %24 : vector<128x128xf32>
    %26 = math.floor %25 : vector<128x128xf32>
    %27 = arith.cmpf oeq, %23, %26 : vector<128x128xf32>
    %cst_20 = arith.constant 0xFF800000 : f32
    %28 = vector.broadcast %cst_20 : f32 to vector<128x128xf32>
    %29 = arith.select %27, %16, %28 : vector<128x128xi1>, vector<128x128xf32>
    %cst_21 = arith.constant dense<0.000000e+00> : vector<128x16xf32>
    %30 = tpu.matmul %2, %3, %cst_21 {dimension_numbers = #tpu.dot_dimension_numbers<[1], [0], [0], [1], [0, 0, 1, 1], [], []>} : vector<128x8xf32>, vector<8x16xf32>, vector<128x16xf32> -> vector<128x16xf32>
    %cst_22 = arith.constant dense<0.000000e+00> : vector<128x16xf32>
    %31 = tpu.matmul %2, %4, %cst_22 {dimension_numbers = #tpu.dot_dimension_numbers<[1], [0], [0], [1], [0, 0, 1, 1], [], []>} : vector<128x8xf32>, vector<8x16xf32>, vector<128x16xf32> -> vector<128x16xf32>
    %32 = vector.broadcast %10 : vector<1x16xf32> to vector<128x16xf32>
    %33 = arith.addf %31, %32 : vector<128x16xf32>
    %cst_23 = arith.constant dense<0xFF800000> : vector<128xf32>
    %34 = vector.multi_reduction <maximumf>, %29, %cst_23 [1] : vector<128x128xf32> to vector<128xf32>
    %35 = vector.shape_cast %34 : vector<128xf32> to vector<128x1xf32>
    %36 = vector.broadcast %35 : vector<128x1xf32> to vector<128x128xf32>
    %37 = arith.cmpf oge, %29, %36 : vector<128x128xf32>
    %cst_24 = arith.constant 1.280000e+02 : f32
    %38 = vector.broadcast %cst_24 : f32 to vector<128x128xf32>
    %39 = arith.select %37, %20, %38 : vector<128x128xi1>, vector<128x128xf32>
    %cst_25 = arith.constant dense<0x7F800000> : vector<128xf32>
    %40 = vector.multi_reduction <minimumf>, %39, %cst_25 [1] : vector<128x128xf32> to vector<128xf32>
    %41 = vector.shape_cast %40 : vector<128xf32> to vector<128x1xf32>
    %42 = vector.broadcast %41 : vector<128x1xf32> to vector<128x128xf32>
    %43 = arith.cmpf oeq, %20, %42 : vector<128x128xf32>
    %44 = arith.extui %43 : vector<128x128xi1> to vector<128x128xi32>
    %45 = arith.sitofp %44 : vector<128x128xi32> to vector<128x128xf32>
    %c0_26 = arith.constant 0 : index
    %c0_27 = arith.constant 0 : index
    %46 = vector.load %arg7[%c0_26, %c0_27] : memref<1024x128xf32, #tpu.memory_space<vmem>>, vector<128x128xf32>
    tpu.vector_store %arg7[%c0_26, %c0_27], %45 {strides = array<i32>} : memref<1024x128xf32, #tpu.memory_space<vmem>>, vector<128x128xf32>,
    %cst_28 = arith.constant 0xFF800000 : f32
    %47 = vector.broadcast %cst_28 : f32 to vector<128x128xf32>
    %48 = arith.select %43, %47, %29 : vector<128x128xi1>, vector<128x128xf32>
    %cst_29 = arith.constant dense<0.000000e+00> : vector<128x16xf32>
    %49 = tpu.matmul %45, %30, %cst_29 {dimension_numbers = #tpu.dot_dimension_numbers<[1], [0], [0], [1], [0, 0, 1, 1], [], []>} : vector<128x128xf32>, vector<128x16xf32>, vector<128x16xf32> -> vector<128x16xf32>
    %cst_30 = arith.constant dense<0xFF800000> : vector<128xf32>
    %50 = vector.multi_reduction <maximumf>, %48, %cst_30 [1] : vector<128x128xf32> to vector<128xf32>
    %51 = vector.shape_cast %50 : vector<128xf32> to vector<128x1xf32>
    %52 = vector.broadcast %51 : vector<128x1xf32> to vector<128x128xf32>
    %53 = arith.cmpf oge, %48, %52 : vector<128x128xf32>
    %cst_31 = arith.constant 1.280000e+02 : f32
    %54 = vector.broadcast %cst_31 : f32 to vector<128x128xf32>
    %55 = arith.select %53, %20, %54 : vector<128x128xi1>, vector<128x128xf32>
    %cst_32 = arith.constant dense<0x7F800000> : vector<128xf32>
    %56 = vector.multi_reduction <minimumf>, %55, %cst_32 [1] : vector<128x128xf32> to vector<128xf32>
    %57 = vector.shape_cast %56 : vector<128xf32> to vector<128x1xf32>
    %58 = vector.broadcast %57 : vector<128x1xf32> to vector<128x128xf32>
    %59 = arith.cmpf oeq, %20, %58 : vector<128x128xf32>
    %60 = arith.extui %59 : vector<128x128xi1> to vector<128x128xi32>
    %61 = arith.sitofp %60 : vector<128x128xi32> to vector<128x128xf32>
    %c128 = arith.constant 128 : index
    %c0_33 = arith.constant 0 : index
    %62 = vector.load %arg7[%c128, %c0_33] : memref<1024x128xf32, #tpu.memory_space<vmem>>, vector<128x128xf32>
    tpu.vector_store %arg7[%c128, %c0_33], %61 {strides = array<i32>} : memref<1024x128xf32, #tpu.memory_space<vmem>>, vector<128x128xf32>,
    %cst_34 = arith.constant 0xFF800000 : f32
    %63 = vector.broadcast %cst_34 : f32 to vector<128x128xf32>
    %64 = arith.select %59, %63, %48 : vector<128x128xi1>, vector<128x128xf32>
    %cst_35 = arith.constant dense<0.000000e+00> : vector<128x16xf32>
    %65 = tpu.matmul %61, %30, %cst_35 {dimension_numbers = #tpu.dot_dimension_numbers<[1], [0], [0], [1], [0, 0, 1, 1], [], []>} : vector<128x128xf32>, vector<128x16xf32>, vector<128x16xf32> -> vector<128x16xf32>
    %66 = arith.maximumf %49, %65 : vector<128x16xf32>
    %cst_36 = arith.constant dense<0xFF800000> : vector<128xf32>
    %67 = vector.multi_reduction <maximumf>, %64, %cst_36 [1] : vector<128x128xf32> to vector<128xf32>
    %68 = vector.shape_cast %67 : vector<128xf32> to vector<128x1xf32>
    %69 = vector.broadcast %68 : vector<128x1xf32> to vector<128x128xf32>
    %70 = arith.cmpf oge, %64, %69 : vector<128x128xf32>
    %cst_37 = arith.constant 1.280000e+02 : f32
    %71 = vector.broadcast %cst_37 : f32 to vector<128x128xf32>
    %72 = arith.select %70, %20, %71 : vector<128x128xi1>, vector<128x128xf32>
    %cst_38 = arith.constant dense<0x7F800000> : vector<128xf32>
    %73 = vector.multi_reduction <minimumf>, %72, %cst_38 [1] : vector<128x128xf32> to vector<128xf32>
    %74 = vector.shape_cast %73 : vector<128xf32> to vector<128x1xf32>
    %75 = vector.broadcast %74 : vector<128x1xf32> to vector<128x128xf32>
    %76 = arith.cmpf oeq, %20, %75 : vector<128x128xf32>
    %77 = arith.extui %76 : vector<128x128xi1> to vector<128x128xi32>
    %78 = arith.sitofp %77 : vector<128x128xi32> to vector<128x128xf32>
    %c256 = arith.constant 256 : index
    %c0_39 = arith.constant 0 : index
    %79 = vector.load %arg7[%c256, %c0_39] : memref<1024x128xf32, #tpu.memory_space<vmem>>, vector<128x128xf32>
    tpu.vector_store %arg7[%c256, %c0_39], %78 {strides = array<i32>} : memref<1024x128xf32, #tpu.memory_space<vmem>>, vector<128x128xf32>,
    %cst_40 = arith.constant 0xFF800000 : f32
    %80 = vector.broadcast %cst_40 : f32 to vector<128x128xf32>
    %81 = arith.select %76, %80, %64 : vector<128x128xi1>, vector<128x128xf32>
    %cst_41 = arith.constant dense<0.000000e+00> : vector<128x16xf32>
    %82 = tpu.matmul %78, %30, %cst_41 {dimension_numbers = #tpu.dot_dimension_numbers<[1], [0], [0], [1], [0, 0, 1, 1], [], []>} : vector<128x128xf32>, vector<128x16xf32>, vector<128x16xf32> -> vector<128x16xf32>
    %83 = arith.maximumf %66, %82 : vector<128x16xf32>
    %cst_42 = arith.constant dense<0xFF800000> : vector<128xf32>
    %84 = vector.multi_reduction <maximumf>, %81, %cst_42 [1] : vector<128x128xf32> to vector<128xf32>
    %85 = vector.shape_cast %84 : vector<128xf32> to vector<128x1xf32>
    %86 = vector.broadcast %85 : vector<128x1xf32> to vector<128x128xf32>
    %87 = arith.cmpf oge, %81, %86 : vector<128x128xf32>
    %cst_43 = arith.constant 1.280000e+02 : f32
    %88 = vector.broadcast %cst_43 : f32 to vector<128x128xf32>
    %89 = arith.select %87, %20, %88 : vector<128x128xi1>, vector<128x128xf32>
    %cst_44 = arith.constant dense<0x7F800000> : vector<128xf32>
    %90 = vector.multi_reduction <minimumf>, %89, %cst_44 [1] : vector<128x128xf32> to vector<128xf32>
    %91 = vector.shape_cast %90 : vector<128xf32> to vector<128x1xf32>
    %92 = vector.broadcast %91 : vector<128x1xf32> to vector<128x128xf32>
    %93 = arith.cmpf oeq, %20, %92 : vector<128x128xf32>
    %94 = arith.extui %93 : vector<128x128xi1> to vector<128x128xi32>
    %95 = arith.sitofp %94 : vector<128x128xi32> to vector<128x128xf32>
    %c384 = arith.constant 384 : index
    %c0_45 = arith.constant 0 : index
    %96 = vector.load %arg7[%c384, %c0_45] : memref<1024x128xf32, #tpu.memory_space<vmem>>, vector<128x128xf32>
    tpu.vector_store %arg7[%c384, %c0_45], %95 {strides = array<i32>} : memref<1024x128xf32, #tpu.memory_space<vmem>>, vector<128x128xf32>,
    %cst_46 = arith.constant 0xFF800000 : f32
    %97 = vector.broadcast %cst_46 : f32 to vector<128x128xf32>
    %98 = arith.select %93, %97, %81 : vector<128x128xi1>, vector<128x128xf32>
    %cst_47 = arith.constant dense<0.000000e+00> : vector<128x16xf32>
    %99 = tpu.matmul %95, %30, %cst_47 {dimension_numbers = #tpu.dot_dimension_numbers<[1], [0], [0], [1], [0, 0, 1, 1], [], []>} : vector<128x128xf32>, vector<128x16xf32>, vector<128x16xf32> -> vector<128x16xf32>
    %100 = arith.maximumf %83, %99 : vector<128x16xf32>
    %cst_48 = arith.constant dense<0xFF800000> : vector<128xf32>
    %101 = vector.multi_reduction <maximumf>, %98, %cst_48 [1] : vector<128x128xf32> to vector<128xf32>
    %102 = vector.shape_cast %101 : vector<128xf32> to vector<128x1xf32>
    %103 = vector.broadcast %102 : vector<128x1xf32> to vector<128x128xf32>
    %104 = arith.cmpf oge, %98, %103 : vector<128x128xf32>
    %cst_49 = arith.constant 1.280000e+02 : f32
    %105 = vector.broadcast %cst_49 : f32 to vector<128x128xf32>
    %106 = arith.select %104, %20, %105 : vector<128x128xi1>, vector<128x128xf32>
    %cst_50 = arith.constant dense<0x7F800000> : vector<128xf32>
    %107 = vector.multi_reduction <minimumf>, %106, %cst_50 [1] : vector<128x128xf32> to vector<128xf32>
    %108 = vector.shape_cast %107 : vector<128xf32> to vector<128x1xf32>
    %109 = vector.broadcast %108 : vector<128x1xf32> to vector<128x128xf32>
    %110 = arith.cmpf oeq, %20, %109 : vector<128x128xf32>
    %111 = arith.extui %110 : vector<128x128xi1> to vector<128x128xi32>
    %112 = arith.sitofp %111 : vector<128x128xi32> to vector<128x128xf32>
    %c512 = arith.constant 512 : index
    %c0_51 = arith.constant 0 : index
    %113 = vector.load %arg7[%c512, %c0_51] : memref<1024x128xf32, #tpu.memory_space<vmem>>, vector<128x128xf32>
    tpu.vector_store %arg7[%c512, %c0_51], %112 {strides = array<i32>} : memref<1024x128xf32, #tpu.memory_space<vmem>>, vector<128x128xf32>,
    %cst_52 = arith.constant 0xFF800000 : f32
    %114 = vector.broadcast %cst_52 : f32 to vector<128x128xf32>
    %115 = arith.select %110, %114, %98 : vector<128x128xi1>, vector<128x128xf32>
    %cst_53 = arith.constant dense<0.000000e+00> : vector<128x16xf32>
    %116 = tpu.matmul %112, %30, %cst_53 {dimension_numbers = #tpu.dot_dimension_numbers<[1], [0], [0], [1], [0, 0, 1, 1], [], []>} : vector<128x128xf32>, vector<128x16xf32>, vector<128x16xf32> -> vector<128x16xf32>
    %117 = arith.maximumf %100, %116 : vector<128x16xf32>
    %cst_54 = arith.constant dense<0xFF800000> : vector<128xf32>
    %118 = vector.multi_reduction <maximumf>, %115, %cst_54 [1] : vector<128x128xf32> to vector<128xf32>
    %119 = vector.shape_cast %118 : vector<128xf32> to vector<128x1xf32>
    %120 = vector.broadcast %119 : vector<128x1xf32> to vector<128x128xf32>
    %121 = arith.cmpf oge, %115, %120 : vector<128x128xf32>
    %cst_55 = arith.constant 1.280000e+02 : f32
    %122 = vector.broadcast %cst_55 : f32 to vector<128x128xf32>
    %123 = arith.select %121, %20, %122 : vector<128x128xi1>, vector<128x128xf32>
    %cst_56 = arith.constant dense<0x7F800000> : vector<128xf32>
    %124 = vector.multi_reduction <minimumf>, %123, %cst_56 [1] : vector<128x128xf32> to vector<128xf32>
    %125 = vector.shape_cast %124 : vector<128xf32> to vector<128x1xf32>
    %126 = vector.broadcast %125 : vector<128x1xf32> to vector<128x128xf32>
    %127 = arith.cmpf oeq, %20, %126 : vector<128x128xf32>
    %128 = arith.extui %127 : vector<128x128xi1> to vector<128x128xi32>
    %129 = arith.sitofp %128 : vector<128x128xi32> to vector<128x128xf32>
    %c640 = arith.constant 640 : index
    %c0_57 = arith.constant 0 : index
    %130 = vector.load %arg7[%c640, %c0_57] : memref<1024x128xf32, #tpu.memory_space<vmem>>, vector<128x128xf32>
    tpu.vector_store %arg7[%c640, %c0_57], %129 {strides = array<i32>} : memref<1024x128xf32, #tpu.memory_space<vmem>>, vector<128x128xf32>,
    %cst_58 = arith.constant 0xFF800000 : f32
    %131 = vector.broadcast %cst_58 : f32 to vector<128x128xf32>
    %132 = arith.select %127, %131, %115 : vector<128x128xi1>, vector<128x128xf32>
    %cst_59 = arith.constant dense<0.000000e+00> : vector<128x16xf32>
    %133 = tpu.matmul %129, %30, %cst_59 {dimension_numbers = #tpu.dot_dimension_numbers<[1], [0], [0], [1], [0, 0, 1, 1], [], []>} : vector<128x128xf32>, vector<128x16xf32>, vector<128x16xf32> -> vector<128x16xf32>
    %134 = arith.maximumf %117, %133 : vector<128x16xf32>
    %cst_60 = arith.constant dense<0xFF800000> : vector<128xf32>
    %135 = vector.multi_reduction <maximumf>, %132, %cst_60 [1] : vector<128x128xf32> to vector<128xf32>
    %136 = vector.shape_cast %135 : vector<128xf32> to vector<128x1xf32>
    %137 = vector.broadcast %136 : vector<128x1xf32> to vector<128x128xf32>
    %138 = arith.cmpf oge, %132, %137 : vector<128x128xf32>
    %cst_61 = arith.constant 1.280000e+02 : f32
    %139 = vector.broadcast %cst_61 : f32 to vector<128x128xf32>
    %140 = arith.select %138, %20, %139 : vector<128x128xi1>, vector<128x128xf32>
    %cst_62 = arith.constant dense<0x7F800000> : vector<128xf32>
    %141 = vector.multi_reduction <minimumf>, %140, %cst_62 [1] : vector<128x128xf32> to vector<128xf32>
    %142 = vector.shape_cast %141 : vector<128xf32> to vector<128x1xf32>
    %143 = vector.broadcast %142 : vector<128x1xf32> to vector<128x128xf32>
    %144 = arith.cmpf oeq, %20, %143 : vector<128x128xf32>
    %145 = arith.extui %144 : vector<128x128xi1> to vector<128x128xi32>
    %146 = arith.sitofp %145 : vector<128x128xi32> to vector<128x128xf32>
    %c768 = arith.constant 768 : index
    %c0_63 = arith.constant 0 : index
    %147 = vector.load %arg7[%c768, %c0_63] : memref<1024x128xf32, #tpu.memory_space<vmem>>, vector<128x128xf32>
    tpu.vector_store %arg7[%c768, %c0_63], %146 {strides = array<i32>} : memref<1024x128xf32, #tpu.memory_space<vmem>>, vector<128x128xf32>,
    %cst_64 = arith.constant 0xFF800000 : f32
    %148 = vector.broadcast %cst_64 : f32 to vector<128x128xf32>
    %149 = arith.select %144, %148, %132 : vector<128x128xi1>, vector<128x128xf32>
    %cst_65 = arith.constant dense<0.000000e+00> : vector<128x16xf32>
    %150 = tpu.matmul %146, %30, %cst_65 {dimension_numbers = #tpu.dot_dimension_numbers<[1], [0], [0], [1], [0, 0, 1, 1], [], []>} : vector<128x128xf32>, vector<128x16xf32>, vector<128x16xf32> -> vector<128x16xf32>
    %151 = arith.maximumf %134, %150 : vector<128x16xf32>
    %cst_66 = arith.constant dense<0xFF800000> : vector<128xf32>
    %152 = vector.multi_reduction <maximumf>, %149, %cst_66 [1] : vector<128x128xf32> to vector<128xf32>
    %153 = vector.shape_cast %152 : vector<128xf32> to vector<128x1xf32>
    %154 = vector.broadcast %153 : vector<128x1xf32> to vector<128x128xf32>
    %155 = arith.cmpf oge, %149, %154 : vector<128x128xf32>
    %cst_67 = arith.constant 1.280000e+02 : f32
    %156 = vector.broadcast %cst_67 : f32 to vector<128x128xf32>
    %157 = arith.select %155, %20, %156 : vector<128x128xi1>, vector<128x128xf32>
    %cst_68 = arith.constant dense<0x7F800000> : vector<128xf32>
    %158 = vector.multi_reduction <minimumf>, %157, %cst_68 [1] : vector<128x128xf32> to vector<128xf32>
    %159 = vector.shape_cast %158 : vector<128xf32> to vector<128x1xf32>
    %160 = vector.broadcast %159 : vector<128x1xf32> to vector<128x128xf32>
    %161 = arith.cmpf oeq, %20, %160 : vector<128x128xf32>
    %162 = arith.extui %161 : vector<128x128xi1> to vector<128x128xi32>
    %163 = arith.sitofp %162 : vector<128x128xi32> to vector<128x128xf32>
    %c896 = arith.constant 896 : index
    %c0_69 = arith.constant 0 : index
    %164 = vector.load %arg7[%c896, %c0_69] : memref<1024x128xf32, #tpu.memory_space<vmem>>, vector<128x128xf32>
    tpu.vector_store %arg7[%c896, %c0_69], %163 {strides = array<i32>} : memref<1024x128xf32, #tpu.memory_space<vmem>>, vector<128x128xf32>,
    %cst_70 = arith.constant dense<0.000000e+00> : vector<128x16xf32>
    %165 = tpu.matmul %163, %30, %cst_70 {dimension_numbers = #tpu.dot_dimension_numbers<[1], [0], [0], [1], [0, 0, 1, 1], [], []>} : vector<128x128xf32>, vector<128x16xf32>, vector<128x16xf32> -> vector<128x16xf32>
    %166 = arith.maximumf %151, %165 : vector<128x16xf32>
    %167 = arith.addf %166, %33 : vector<128x16xf32>
    %cst_71 = arith.constant 0.000000e+00 : f32
    %168 = vector.broadcast %cst_71 : f32 to vector<128x16xf32>
    %169 = arith.cmpf ogt, %167, %168 : vector<128x16xf32>
    %cst_72 = arith.constant 2.000000e-01 : f32
    %170 = vector.broadcast %cst_72 : f32 to vector<128x16xf32>
    %171 = arith.mulf %170, %167 : vector<128x16xf32>
    %172 = arith.select %169, %167, %171 : vector<128x16xi1>, vector<128x16xf32>
    %cst_73 = arith.constant dense<0.000000e+00> : vector<128x32xf32>
    %173 = tpu.matmul %172, %5, %cst_73 {dimension_numbers = #tpu.dot_dimension_numbers<[1], [0], [0], [1], [0, 0, 1, 1], [], []>} : vector<128x16xf32>, vector<16x32xf32>, vector<128x32xf32> -> vector<128x32xf32>
    %cst_74 = arith.constant dense<0.000000e+00> : vector<128x32xf32>
    %174 = tpu.matmul %172, %6, %cst_74 {dimension_numbers = #tpu.dot_dimension_numbers<[1], [0], [0], [1], [0, 0, 1, 1], [], []>} : vector<128x16xf32>, vector<16x32xf32>, vector<128x32xf32> -> vector<128x32xf32>
    %175 = vector.broadcast %11 : vector<1x32xf32> to vector<128x32xf32>
    %176 = arith.addf %174, %175 : vector<128x32xf32>
    %c0_75 = arith.constant 0 : index
    %c0_76 = arith.constant 0 : index
    %177 = vector.load %arg7[%c0_75, %c0_76] : memref<1024x128xf32, #tpu.memory_space<vmem>>, vector<128x128xf32>
    %cst_77 = arith.constant dense<0.000000e+00> : vector<128x32xf32>
    %178 = tpu.matmul %177, %173, %cst_77 {dimension_numbers = #tpu.dot_dimension_numbers<[1], [0], [0], [1], [0, 0, 1, 1], [], []>} : vector<128x128xf32>, vector<128x32xf32>, vector<128x32xf32> -> vector<128x32xf32>
    %c128_78 = arith.constant 128 : index
    %c0_79 = arith.constant 0 : index
    %179 = vector.load %arg7[%c128_78, %c0_79] : memref<1024x128xf32, #tpu.memory_space<vmem>>, vector<128x128xf32>
    %cst_80 = arith.constant dense<0.000000e+00> : vector<128x32xf32>
    %180 = tpu.matmul %179, %173, %cst_80 {dimension_numbers = #tpu.dot_dimension_numbers<[1], [0], [0], [1], [0, 0, 1, 1], [], []>} : vector<128x128xf32>, vector<128x32xf32>, vector<128x32xf32> -> vector<128x32xf32>
    %181 = arith.maximumf %178, %180 : vector<128x32xf32>
    %c256_81 = arith.constant 256 : index
    %c0_82 = arith.constant 0 : index
    %182 = vector.load %arg7[%c256_81, %c0_82] : memref<1024x128xf32, #tpu.memory_space<vmem>>, vector<128x128xf32>
    %cst_83 = arith.constant dense<0.000000e+00> : vector<128x32xf32>
    %183 = tpu.matmul %182, %173, %cst_83 {dimension_numbers = #tpu.dot_dimension_numbers<[1], [0], [0], [1], [0, 0, 1, 1], [], []>} : vector<128x128xf32>, vector<128x32xf32>, vector<128x32xf32> -> vector<128x32xf32>
    %184 = arith.maximumf %181, %183 : vector<128x32xf32>
    %c384_84 = arith.constant 384 : index
    %c0_85 = arith.constant 0 : index
    %185 = vector.load %arg7[%c384_84, %c0_85] : memref<1024x128xf32, #tpu.memory_space<vmem>>, vector<128x128xf32>
    %cst_86 = arith.constant dense<0.000000e+00> : vector<128x32xf32>
    %186 = tpu.matmul %185, %173, %cst_86 {dimension_numbers = #tpu.dot_dimension_numbers<[1], [0], [0], [1], [0, 0, 1, 1], [], []>} : vector<128x128xf32>, vector<128x32xf32>, vector<128x32xf32> -> vector<128x32xf32>
    %187 = arith.maximumf %184, %186 : vector<128x32xf32>
    %c512_87 = arith.constant 512 : index
    %c0_88 = arith.constant 0 : index
    %188 = vector.load %arg7[%c512_87, %c0_88] : memref<1024x128xf32, #tpu.memory_space<vmem>>, vector<128x128xf32>
    %cst_89 = arith.constant dense<0.000000e+00> : vector<128x32xf32>
    %189 = tpu.matmul %188, %173, %cst_89 {dimension_numbers = #tpu.dot_dimension_numbers<[1], [0], [0], [1], [0, 0, 1, 1], [], []>} : vector<128x128xf32>, vector<128x32xf32>, vector<128x32xf32> -> vector<128x32xf32>
    %190 = arith.maximumf %187, %189 : vector<128x32xf32>
    %c640_90 = arith.constant 640 : index
    %c0_91 = arith.constant 0 : index
    %191 = vector.load %arg7[%c640_90, %c0_91] : memref<1024x128xf32, #tpu.memory_space<vmem>>, vector<128x128xf32>
    %cst_92 = arith.constant dense<0.000000e+00> : vector<128x32xf32>
    %192 = tpu.matmul %191, %173, %cst_92 {dimension_numbers = #tpu.dot_dimension_numbers<[1], [0], [0], [1], [0, 0, 1, 1], [], []>} : vector<128x128xf32>, vector<128x32xf32>, vector<128x32xf32> -> vector<128x32xf32>
    %193 = arith.maximumf %190, %192 : vector<128x32xf32>
    %c768_93 = arith.constant 768 : index
    %c0_94 = arith.constant 0 : index
    %194 = vector.load %arg7[%c768_93, %c0_94] : memref<1024x128xf32, #tpu.memory_space<vmem>>, vector<128x128xf32>
    %cst_95 = arith.constant dense<0.000000e+00> : vector<128x32xf32>
    %195 = tpu.matmul %194, %173, %cst_95 {dimension_numbers = #tpu.dot_dimension_numbers<[1], [0], [0], [1], [0, 0, 1, 1], [], []>} : vector<128x128xf32>, vector<128x32xf32>, vector<128x32xf32> -> vector<128x32xf32>
    %196 = arith.maximumf %193, %195 : vector<128x32xf32>
    %c896_96 = arith.constant 896 : index
    %c0_97 = arith.constant 0 : index
    %197 = vector.load %arg7[%c896_96, %c0_97] : memref<1024x128xf32, #tpu.memory_space<vmem>>, vector<128x128xf32>
    %cst_98 = arith.constant dense<0.000000e+00> : vector<128x32xf32>
    %198 = tpu.matmul %197, %173, %cst_98 {dimension_numbers = #tpu.dot_dimension_numbers<[1], [0], [0], [1], [0, 0, 1, 1], [], []>} : vector<128x128xf32>, vector<128x32xf32>, vector<128x32xf32> -> vector<128x32xf32>
    %199 = arith.maximumf %196, %198 : vector<128x32xf32>
    %200 = arith.addf %199, %176 : vector<128x32xf32>
    %cst_99 = arith.constant 0.000000e+00 : f32
    %201 = vector.broadcast %cst_99 : f32 to vector<128x32xf32>
    %202 = arith.cmpf ogt, %200, %201 : vector<128x32xf32>
    %cst_100 = arith.constant 2.000000e-01 : f32
    %203 = vector.broadcast %cst_100 : f32 to vector<128x32xf32>
    %204 = arith.mulf %203, %200 : vector<128x32xf32>
    %205 = arith.select %202, %200, %204 : vector<128x32xi1>, vector<128x32xf32>
    %206 = tpu.iota {dimensions = array<i32: 0>} : vector<8x1xi32>
    %cst_101 = arith.constant 0.000000e+00 : f32
    %207 = vector.broadcast %cst_101 : f32 to vector<8x32xf32>
    %cst_102 = arith.constant 0.000000e+00 : f32
    %208 = vector.broadcast %cst_102 : f32 to vector<8x16xf32>
    %209 = vector.extract_strided_slice %205 {offsets = [0, 0], sizes = [64, 32], strides = [1, 1]} : vector<128x32xf32> to vector<64x32xf32>
    %cst_103 = arith.constant dense<0xFF800000> : vector<32xf32>
    %210 = vector.multi_reduction <maximumf>, %209, %cst_103 [0] : vector<64x32xf32> to vector<32xf32>
    %211 = vector.shape_cast %210 : vector<32xf32> to vector<1x32xf32>
    %212 = vector.extract_strided_slice %1 {offsets = [0, 0], sizes = [64, 16], strides = [1, 1]} : vector<128x16xf32> to vector<64x16xf32>
    %cst_104 = arith.constant dense<0xFF800000> : vector<16xf32>
    %213 = vector.multi_reduction <maximumf>, %212, %cst_104 [0] : vector<64x16xf32> to vector<16xf32>
    %214 = vector.shape_cast %213 : vector<16xf32> to vector<1x16xf32>
    %c0_i32 = arith.constant 0 : i32
    %215 = vector.broadcast %c0_i32 : i32 to vector<8x1xi32>
    %216 = arith.cmpi eq, %206, %215 : vector<8x1xi32>
    %217 = vector.shape_cast %216 : vector<8x1xi1> to vector<8x1xi1>
    %218 = vector.broadcast %217 : vector<8x1xi1> to vector<8x32xi1>
    %219 = vector.shape_cast %211 : vector<1x32xf32> to vector<1x32xf32>
    %220 = vector.broadcast %219 : vector<1x32xf32> to vector<8x32xf32>
    %221 = arith.select %218, %220, %207 : vector<8x32xi1>, vector<8x32xf32>
    %222 = vector.shape_cast %216 : vector<8x1xi1> to vector<8x1xi1>
    %223 = vector.broadcast %222 : vector<8x1xi1> to vector<8x16xi1>
    %224 = vector.shape_cast %214 : vector<1x16xf32> to vector<1x16xf32>
    %225 = vector.broadcast %224 : vector<1x16xf32> to vector<8x16xf32>
    %226 = arith.select %223, %225, %208 : vector<8x16xi1>, vector<8x16xf32>
    %227 = vector.extract_strided_slice %205 {offsets = [64, 0], sizes = [64, 32], strides = [1, 1]} : vector<128x32xf32> to vector<64x32xf32>
    %cst_105 = arith.constant dense<0xFF800000> : vector<32xf32>
    %228 = vector.multi_reduction <maximumf>, %227, %cst_105 [0] : vector<64x32xf32> to vector<32xf32>
    %229 = vector.shape_cast %228 : vector<32xf32> to vector<1x32xf32>
    %230 = vector.extract_strided_slice %1 {offsets = [64, 0], sizes = [64, 16], strides = [1, 1]} : vector<128x16xf32> to vector<64x16xf32>
    %cst_106 = arith.constant dense<0xFF800000> : vector<16xf32>
    %231 = vector.multi_reduction <maximumf>, %230, %cst_106 [0] : vector<64x16xf32> to vector<16xf32>
    %232 = vector.shape_cast %231 : vector<16xf32> to vector<1x16xf32>
    %c1_i32 = arith.constant 1 : i32
    %233 = vector.broadcast %c1_i32 : i32 to vector<8x1xi32>
    %234 = arith.cmpi eq, %206, %233 : vector<8x1xi32>
    %235 = vector.shape_cast %234 : vector<8x1xi1> to vector<8x1xi1>
    %236 = vector.broadcast %235 : vector<8x1xi1> to vector<8x32xi1>
    %237 = vector.shape_cast %229 : vector<1x32xf32> to vector<1x32xf32>
    %238 = vector.broadcast %237 : vector<1x32xf32> to vector<8x32xf32>
    %239 = arith.select %236, %238, %221 : vector<8x32xi1>, vector<8x32xf32>
    %240 = vector.shape_cast %234 : vector<8x1xi1> to vector<8x1xi1>
    %241 = vector.broadcast %240 : vector<8x1xi1> to vector<8x16xi1>
    %242 = vector.shape_cast %232 : vector<1x16xf32> to vector<1x16xf32>
    %243 = vector.broadcast %242 : vector<1x16xf32> to vector<8x16xf32>
    %244 = arith.select %241, %243, %226 : vector<8x16xi1>, vector<8x16xf32>
    %cst_107 = arith.constant dense<0.000000e+00> : vector<8x64xf32>
    %245 = tpu.matmul %239, %7, %cst_107 {dimension_numbers = #tpu.dot_dimension_numbers<[1], [0], [0], [1], [0, 0, 1, 1], [], []>} : vector<8x32xf32>, vector<32x64xf32>, vector<8x64xf32> -> vector<8x64xf32>
    %cst_108 = arith.constant dense<0.000000e+00> : vector<8x64xf32>
    %246 = tpu.matmul %244, %8, %cst_108 {dimension_numbers = #tpu.dot_dimension_numbers<[1], [0], [0], [1], [0, 0, 1, 1], [], []>} : vector<8x16xf32>, vector<16x64xf32>, vector<8x64xf32> -> vector<8x64xf32>
    %247 = arith.addf %245, %246 : vector<8x64xf32>
    %248 = vector.broadcast %12 : vector<1x64xf32> to vector<8x64xf32>
    %249 = arith.addf %247, %248 : vector<8x64xf32>
    %cst_109 = arith.constant 0.000000e+00 : f32
    %250 = vector.broadcast %cst_109 : f32 to vector<8x64xf32>
    %251 = arith.maximumf %249, %250 : vector<8x64xf32>
    %cst_110 = arith.constant dense<0.000000e+00> : vector<8x128xf32>
    %252 = tpu.matmul %251, %9, %cst_110 {dimension_numbers = #tpu.dot_dimension_numbers<[1], [0], [0], [1], [0, 0, 1, 1], [], []>} : vector<8x64xf32>, vector<64x128xf32>, vector<8x128xf32> -> vector<8x128xf32>
    %253 = vector.broadcast %13 : vector<1x128xf32> to vector<8x128xf32>
    %254 = arith.addf %252, %253 : vector<8x128xf32>
    %255 = vector.extract_strided_slice %254 {offsets = [0, 0], sizes = [2, 128], strides = [1, 1]} : vector<8x128xf32> to vector<2x128xf32>
    %c0_111 = arith.constant 0 : index
    %c0_112 = arith.constant 0 : index
    %256 = vector.load %arg6[%c0_111, %c0_112] : memref<2x128xf32, #tpu.memory_space<vmem>>, vector<2x128xf32>
    tpu.vector_store %arg6[%c0_111, %c0_112], %255 {strides = array<i32>} : memref<2x128xf32, #tpu.memory_space<vmem>>, vector<2x128xf32>,
    return
  }
  func.func @transform_0(%arg0: i32) -> (i32, i32) {
    %c0_i32 = arith.constant 0 : i32
    %c0_i32_0 = arith.constant 0 : i32
    %c0_i32_1 = arith.constant 0 : i32
    return %c0_i32, %c0_i32_0 : i32, i32
  }
  func.func @transform_1(%arg0: i32) -> (i32, i32) {
    %c0_i32 = arith.constant 0 : i32
    %c0_i32_0 = arith.constant 0 : i32
    %c0_i32_1 = arith.constant 0 : i32
    return %c0_i32, %c0_i32_0 : i32, i32
  }
  func.func @transform_2(%arg0: i32) -> (i32, i32) {
    %c0_i32 = arith.constant 0 : i32
    %c0_i32_0 = arith.constant 0 : i32
    %c0_i32_1 = arith.constant 0 : i32
    return %c0_i32, %c0_i32_0 : i32, i32
  }
  func.func @transform_3(%arg0: i32) -> (i32, i32) {
    %c0_i32 = arith.constant 0 : i32
    %c0_i32_0 = arith.constant 0 : i32
    %c0_i32_1 = arith.constant 0 : i32
    return %c0_i32, %c0_i32_0 : i32, i32
  }
  func.func @transform_4(%arg0: i32) -> (i32, i32) {
    %c0_i32 = arith.constant 0 : i32
    %c0_i32_0 = arith.constant 0 : i32
    %c0_i32_1 = arith.constant 0 : i32
    return %c0_i32, %c0_i32_0 : i32, i32
  }
  func.func @transform_5(%arg0: i32) -> (i32, i32) {
    %c0_i32 = arith.constant 0 : i32
    %c0_i32_0 = arith.constant 0 : i32
    %c0_i32_1 = arith.constant 0 : i32
    return %c0_i32, %c0_i32_0 : i32, i32
  }
}

</mosaic_0001>

<bundles_post_ra>
// kernel: neg.0
= control target key start
LH: loop header
LB: loop body
LE: loop exit
PB: predicated region body
PF: predicated region fallthrough
CT: control target
= control target key end

     0   :  { %s24_s0 = inlined_call_operand.vmem [shape: f32[2,64], index: 0, kind: input, shape index: {}]   ;;  %s25_s1 = inlined_call_operand.vmem [shape: f32[2,64], index: 1, kind: output, shape index: {}]  }
   0x1   :  { %v2_v0 = vld [vmem:[%s24_s0] sm:$0x3] }
   0x2   :  { %v5_v1 = vxor.u32 2147483648, %v2_v0 }
   0x4   :  { %7 = vst [vmem:[%s25_s1] sm:$0x3] %v5_v1 }

// kernel: gcn_net_forward.1
= control target key start
LH: loop header
LB: loop body
LE: loop exit
PB: predicated region body
PF: predicated region fallthrough
CT: control target
= control target key end

     0   :  { %vm77_vm0 = vcmask 64512   ;;  %v191_v18 = vlaneseq  ;;  %s8218_s2 = inlined_call_operand.vmem [shape: f32[8,128], index: 2, kind: input, shape index: {}]   ;;  %s8219_s1 = inlined_call_operand.vmem [shape: f32[128,8], index: 1, kind: input, shape index: {}]   ;;  %s8220_s3 = inlined_call_operand.vmem [shape: f32[160,128], index: 3, kind: input, shape index: {}]   ;;  %s8221_s0 = inlined_call_operand.vmem [shape: f32[128,21], index: 0, kind: input, shape index: {}]   ;;  %s8222_s4 = inlined_call_operand.vmem [shape: f32[8,128], index: 4, kind: input, shape index: {}]   ;;  %s8223_s5 = inlined_call_operand.vmem [shape: f32[2,128], index: 5, kind: output, shape index: {}]  }
   0x1   :  { %v76_v0 = vld [vmem:[%s8218_s2] sm:$0xff]  ;;  %v65_v2 = vld [vmem:[%s8219_s1 + $0x28] sm:$0xff]  ;;  %v66_v5 = vld [vmem:[%s8219_s1 + $0x30] sm:$0xff] }
   0x2   :  { %v60_v1 = vld [vmem:[%s8219_s1] sm:$0xff]  ;;  %141 = vmatpush.msra.mxu0 %v76_v0  ;;  %4208 = vmatpush.msra.mxu1 %v76_v0  ;;  %v61_v4 = vld [vmem:[%s8219_s1 + $0x8] sm:$0xff]  ;;  %v62_v6 = vld [vmem:[%s8219_s1 + $0x10] sm:$0xff]  ;;  %v4371_v20 = vshrl.u32 %v191_v18, 7  ;;  %v225_v21 = vand.u32 127, %v191_v18 }
   0x3   :  { %3741 = vmatmul.msk.f32.vlgmr.msra.gmra.mxu0 %vm77_vm0, %v60_v1  ;;  %3746 = vmatmul.msk.f32.vlgmr.msra.gmra.mxu1 %vm77_vm0, %v65_v2  ;;  %v36_v3 = vld [vmem:[%s8220_s3] sm:$0xff]  ;;  %v67_v8 = vld [vmem:[%s8219_s1 + $0x38] sm:$0xff]  ;;  %v21_v10 = vld [vmem:[%s8221_s0 + $0x8] sm:$0xff] }
   0x4   :  { %356 = vmatpush.msrb.mxu1 %v36_v3  ;;  %4209 = vmatpush.msra.mxu2 %v76_v0  ;;  %v20_v7 = vld [vmem:[%s8221_s0] sm:$0xff]  ;;  %v63_v9 = vld [vmem:[%s8219_s1 + $0x18] sm:$0xff]  ;;  %v22_v12 = vld [vmem:[%s8221_s0 + $0x10] sm:$0xff]  ;;  %8475 = vst [vmem:[#allocation3_spill] sm:$0xff] %v4371_v20  ;;  %v208_v23 = vcvt.s32.f32 %v4371_v20  ;;  %v4378_v24 = vcvt.s32.f32 %v225_v21  ;;  %v193_v28 = vadd.s32 8, %v4371_v20  ;;  %v194_v35 = vadd.s32 16, %v4371_v20 }
   0x5   :  { %4210 = vmatpush.msra.mxu3 %v76_v0  ;;  %3748 = vmatmul.msk.f32.vlgmr.msra.gmra.mxu2 %vm77_vm0, %v67_v8  ;;  %v64_v11 = vld [vmem:[%s8219_s1 + $0x20] sm:$0xff]  ;;  %v23_v13 = vld [vmem:[%s8221_s0 + $0x18] sm:$0xff]  ;;  %v25_v15 = vld [vmem:[%s8221_s0 + $0x28] sm:$0xff]  ;;  %v195_v44 = vadd.s32 24, %v4371_v20  ;;  %v198_v50 = vadd.s32 48, %v4371_v20  ;;  %v196_v53 = vadd.s32 32, %v4371_v20 }
   0x6   :  { %v24_v14 = vld [vmem:[%s8221_s0 + $0x20] sm:$0xff]  ;;  %v26_v17 = vld [vmem:[%s8221_s0 + $0x30] sm:$0xff]  ;;  %v69_v19 = vld [vmem:[%s8219_s1 + $0x48] sm:$0xff]  ;;  %v227_v26 = vmul.f32 0.015625, %v208_v23  ;;  %v259_v27 = vmul.f32 0.015625, %v4378_v24  ;;  %v209_v32 = vcvt.s32.f32 %v193_v28  ;;  %v210_v40 = vcvt.s32.f32 %v194_v35 }
   0x7   :  { %v68_v16 = vld [vmem:[%s8219_s1 + $0x40] sm:$0xff]  ;;  %v27_v22 = vld [vmem:[%s8221_s0 + $0x38] sm:$0xff]  ;;  %v70_v25 = vld [vmem:[%s8219_s1 + $0x50] sm:$0xff]  ;;  %v211_v48 = vcvt.s32.f32 %v195_v44  ;;  %v214_v55 = vcvt.s32.f32 %v198_v50  ;;  %v212_v60 = vcvt.s32.f32 %v196_v53  ;;  %v197_v62 = vadd.s32 40, %v4371_v20 }
   0x8   :  { %v28_v29 = vld [vmem:[%s8221_s0 + $0x40] sm:$0xff]  ;;  %v243_v30 = vfloor.f32 %v227_v26  ;;  %v4390_v31 = vfloor.f32 %v259_v27  ;;  %v71_v33 = vld [vmem:[%s8219_s1 + $0x58] sm:$0xff]  ;;  %v228_v34 = vmul.f32 0.015625, %v209_v32  ;;  %v29_v36 = vld [vmem:[%s8221_s0 + $0x48] sm:$0xff]  ;;  %v229_v43 = vmul.f32 0.015625, %v210_v40 }
   0x9   :  { %v72_v41 = vld [vmem:[%s8219_s1 + $0x60] sm:$0xff]  ;;  %v30_v42 = vld [vmem:[%s8221_s0 + $0x50] sm:$0xff]  ;;  %v73_v49 = vld [vmem:[%s8219_s1 + $0x68] sm:$0xff]  ;;  %v230_v52 = vmul.f32 0.015625, %v211_v48  ;;  %v233_v61 = vmul.f32 0.015625, %v214_v55  ;;  %v231_v0 = vmul.f32 0.015625, %v212_v60  ;;  %v213_v3 = vcvt.s32.f32 %v197_v62 }
   0xa   :  { %vm261_vm1 = vcmp.eq.f32.partialorder %v243_v30, %v4390_v31  ;;  %v244_v39 = vfloor.f32 %v228_v34  ;;  %3753 = vmatmul.msk.f32.vlgmr.msra.gmra.mxu3 %vm77_vm0, %v72_v41  ;;  %v245_v47 = vfloor.f32 %v229_v43  ;;  %v31_v51 = vld [vmem:[%s8221_s0 + $0x58] sm:$0xff]  ;;  %v74_v56 = vld [vmem:[%s8219_s1 + $0x70] sm:$0xff]  ;;  %v32_v63 = vld [vmem:[%s8221_s0 + $0x60] sm:$0xff]  ;;  %v199_v26 = vadd.s32 56, %v4371_v20 }
   0xb   :  { %3742 = vmatmul.msk.f32.gmra.mxu0 %vm77_vm0, %v61_v4  ;;  %3747 = vmatmul.msk.f32.gmra.mxu1 %vm77_vm0, %v66_v5  ;;  %v246_v59 = vfloor.f32 %v230_v52  ;;  %v249_v2 = vfloor.f32 %v233_v61  ;;  %v75_v4 = vld [vmem:[%s8219_s1 + $0x78] sm:$0xff]  ;;  %v232_v8 = vmul.f32 0.015625, %v213_v3  ;;  %v200_v32 = vadd.s32 64, %v4371_v20 }
   0xc   :  { %vm262_vm2 = vcmp.eq.f32.partialorder %v244_v39, %v4390_v31  ;;  %vm263_vm3 = vcmp.eq.f32.partialorder %v245_v47, %v4390_v31  ;;  %v215_v28 = vcvt.s32.f32 %v199_v26  ;;  %v201_v40 = vadd.s32 72, %v4371_v20 }
   0xd   :  { %3749 = vmatmul.msk.f32.gmra.mxu2 %vm77_vm0, %v68_v16  ;;  %vm264_vm4 = vcmp.eq.f32.partialorder %v246_v59, %v4390_v31  ;;  %vm267_vm5 = vcmp.eq.f32.partialorder %v249_v2, %v4390_v31  ;;  %v35_v16 = vld [vmem:[%s8221_s0 + $0x78] sm:$0xff]  ;;  %v202_v50 = vadd.s32 80, %v4371_v20  ;;  %v203_v60 = vadd.s32 88, %v4371_v20 }
   0xe   :  { %v234_v30 = vmul.f32 0.015625, %v215_v28  ;;  %v217_v47 = vcvt.s32.f32 %v201_v40  ;;  %v205_v28 = vadd.s32 104, %v4371_v20 }
  0x10   :  { %v250_v35 = vfloor.f32 %v234_v30 }
  0x12   :  { %3754 = vmatmul.msk.f32.gmra.mxu3 %vm77_vm0, %v73_v49  ;;  %vm268_vm9 = vcmp.eq.f32.partialorder %v250_v35, %v4390_v31  ;;  %v236_v49 = vmul.f32 0.015625, %v217_v47  ;;  %v221_v35 = vcvt.s32.f32 %v205_v28 }
  0x13   :  { %3743 = vmatmul.msk.f32.gmra.mxu0 %vm77_vm0, %v62_v6  ;;  %3757 = vmatmul.msk.f32.vlgmr.msrb.gmra.mxu1 %vm77_vm0, %v20_v7  ;;  %v247_v6 = vfloor.f32 %v231_v0 }
  0x14   :  { %v252_v55 = vfloor.f32 %v236_v49  ;;  %v240_v40 = vmul.f32 0.015625, %v221_v35 }
  0x15   :  { %3750 = vmatmul.msk.f32.gmra.mxu2 %vm77_vm0, %v69_v19  ;;  %vm265_vm6 = vcmp.eq.f32.partialorder %v247_v6, %v4390_v31  ;;  %v204_v6 = vadd.s32 96, %v4371_v20 }
  0x16   :  { %vm270_vm13 = vcmp.eq.f32.partialorder %v252_v55, %v4390_v31  ;;  %v256_v47 = vfloor.f32 %v240_v40 }
  0x1a   :  { %3755 = vmatmul.msk.f32.gmra.mxu3 %vm77_vm0, %v74_v56  ;;  %v218_v56 = vcvt.s32.f32 %v202_v50 }
  0x1b   :  { %3744 = vmatmul.msk.f32.gmra.mxu0 %vm77_vm0, %v63_v9  ;;  %3758 = vmatmul.msk.f32.gmra.mxu1 %vm77_vm0, %v21_v10  ;;  %v33_v9 = vld [vmem:[%s8221_s0 + $0x68] sm:$0xff] }
  0x1c   :  { %v237_v59 = vmul.f32 0.015625, %v218_v56 }
  0x1d   :  { %3751 = vmatmul.msk.f32.gmra.mxu2 %vm77_vm0, %v70_v25 }
  0x1e   :  { %v253_v0 = vfloor.f32 %v237_v59 }
  0x20   :  { %vm271_vm15 = vcmp.eq.f32.partialorder %v253_v0, %v4390_v31 }
  0x22   :  { %3756 = vmatmul.msk.f32.gmra.mxu3 %vm77_vm0, %v75_v4 }
  0x23   :  { %3745 = vmatmul.msk.f32.gmra.mxu0 %vm77_vm0, %v64_v11  ;;  %3759 = vmatmul.msk.f32.gmra.mxu1 %vm77_vm0, %v22_v12  ;;  %v248_v12 = vfloor.f32 %v232_v8 }
  0x25   :  { %3752 = vmatmul.msk.f32.gmra.mxu2 %vm77_vm0, %v71_v33  ;;  %vm266_vm7 = vcmp.eq.f32.partialorder %v248_v12, %v4390_v31 }
  0x2b   :  { %3760 = vmatmul.msk.f32.gmra.mxu1 %vm77_vm0, %v23_v13 }
  0x33   :  { %3761 = vmatmul.msk.f32.gmra.mxu1 %vm77_vm0, %v24_v14  ;;  %v34_v14 = vld [vmem:[%s8221_s0 + $0x70] sm:$0xff] }
  0x3b   :  { %3762 = vmatmul.msk.f32.gmra.mxu1 %vm77_vm0, %v25_v15 }
  0x43   :  { %3763 = vmatmul.msk.f32.gmra.mxu1 %vm77_vm0, %v26_v17 }
  0x4b   :  { %3764 = vmatmul.msk.f32.gmra.mxu1 %vm77_vm0, %v27_v22 }
  0x53   :  { %3765 = vmatmul.msk.f32.gmra.mxu1 %vm77_vm0, %v28_v29 }
  0x5b   :  { %3766 = vmatmul.msk.f32.gmra.mxu1 %vm77_vm0, %v29_v36  ;;  %v216_v36 = vcvt.s32.f32 %v200_v32 }
  0x5d   :  { %v235_v39 = vmul.f32 0.015625, %v216_v36 }
  0x63   :  { %3767 = vmatmul.msk.f32.gmra.mxu1 %vm77_vm0, %v30_v42 }
  0x6b   :  { %3768 = vmatmul.msk.f32.gmra.mxu1 %vm77_vm0, %v31_v51 }
  0x73   :  { %3769 = vmatmul.msk.f32.gmra.mxu1 %vm77_vm0, %v32_v63 }
  0x7b   :  { %3770 = vmatmul.msk.f32.gmra.mxu1 %vm77_vm0, %v33_v9 }
  0x80   :  { %v143_v37 = vpop.f32.mrf.mxu0  ;;  %v158_v58 = vpop.f32.mrf.mxu1 }
  0x81   :  { %v4402_v38 = vsel %vm261_vm1, %v143_v37, -inf  ;;  %v4465_v15 = vsel %vm266_vm7, %v158_v58, -inf }
  0x82   :  { %472 = vmax.xlane.f32.xlu0 %v4402_v38 }
  0x83   :  { %3771 = vmatmul.msk.f32.gmra.mxu1 %vm77_vm0, %v34_v14 }
  0x88   :  { %v146_v45 = vpop.f32.mrf.mxu0  ;;  %v161_v7 = vpop.f32.mrf.mxu1 }
  0x89   :  { %v4415_v46 = vsel %vm262_vm2, %v146_v45, -inf  ;;  %v4454_v10 = vsel %vm267_vm5, %v161_v7, -inf  ;;  %v164_v29 = vpop.f32.mrf.mxu2  ;;  %v251_v45 = vfloor.f32 %v235_v39 }
  0x8a   :  { %474 = vmax.xlane.f32.xlu0 %v4415_v46  ;;  %v4497_v43 = vsel %vm268_vm9, %v164_v29, -inf }
  0x8b   :  { %3772 = vmatmul.msk.f32.gmra.mxu1 %vm77_vm0, %v35_v16  ;;  %vm269_vm11 = vcmp.eq.f32.partialorder %v251_v45, %v4390_v31 }
  0x8d   :  { %v179_v29 = vpop.f32.mrf.mxu3 }
  0x90   :  { %v149_v54 = vpop.f32.mrf.mxu0  ;;  %v4472_v17 = vpop.f32.mrf.mxu1 }
  0x91   :  { %v4432_v57 = vsel %vm263_vm3, %v149_v54, -inf  ;;  %v167_v41 = vpop.f32.mrf.mxu2 }
  0x92   :  { %476 = vmax.xlane.f32.xlu1 %v4432_v57  ;;  %v4506_v52 = vsel %vm269_vm11, %v167_v41, -inf  ;;  %v206_v41 = vadd.s32 112, %v4371_v20 }
  0x95   :  { %v182_v45 = vpop.f32.mrf.mxu3 }
  0x98   :  { %v152_v1 = vpop.f32.mrf.mxu0  ;;  %v4475_v18 = vpop.f32.mrf.mxu1 }
  0x99   :  { %v4445_v5 = vsel %vm264_vm4, %v152_v1, -inf  ;;  %v170_v54 = vpop.f32.mrf.mxu2  ;;  %v219_v1 = vcvt.s32.f32 %v203_v60 }
  0x9a   :  { %478 = vmax.xlane.f32.xlu1 %v4445_v5  ;;  %v4515_v62 = vsel %vm270_vm13, %v170_v54, -inf  ;;  %v207_v54 = vadd.s32 120, %v4371_v20 }
  0x9b   :  { %v238_v4 = vmul.f32 0.015625, %v219_v1 }
  0x9d   :  { %v254_v9 = vfloor.f32 %v238_v4  ;;  %v185_v60 = vpop.f32.mrf.mxu3  ;;  %v8253_v4 = vmov 1.0  }
  0x9f   :  { %vm272_vm2 = vcmp.eq.f32.partialorder %v254_v9, %v4390_v31 }
  0xa0   :  { %v155_v11 = vpop.f32.mrf.mxu0  ;;  %v4477_v19 = vpop.f32.mrf.mxu1 }
  0xa1   :  { %v4457_v13 = vsel %vm265_vm6, %v155_v11, -inf  ;;  %v173_v3 = vpop.f32.mrf.mxu2  ;;  %v220_v11 = vcvt.s32.f32 %v204_v6  ;;  %vm274_vm6 = vcmp.eq.f32.partialorder %v256_v47, %v4390_v31 }
  0xa2   :  { %484 = vmax.xlane.f32.xlu1 %v4454_v10  ;;  %480 = vmax.xlane.f32.xlu2 %v4457_v13  ;;  %v4524_v8 = vsel %vm271_vm15, %v173_v3, -inf  ;;  %v4551_v55 = vsel %vm274_vm6, %v182_v45, -inf }
  0xa3   :  { %v239_v26 = vmul.f32 0.015625, %v220_v11 }
  0xa8   :  { %v4479_v21 = vpop.f32.mrf.mxu1 }
  0xa9   :  { %v176_v16 = vpop.f32.mrf.mxu2 }
  0xaa   :  { %482 = vmax.xlane.f32.xlu2 %v4465_v15  ;;  %v4533_v32 = vsel %vm272_vm2, %v176_v16, -inf }
  0xb0   :  { %v4481_v22 = vpop.f32.mrf.mxu1 }
  0xb8   :  { %v4483_v23 = vpop.f32.mrf.mxu1 }
  0xc0   :  { %v4485_v25 = vpop.f32.mrf.mxu1 }
  0xc8   :  { %v4488_v27 = vpop.f32.mrf.mxu1 }
  0xd0   :  { %v4491_v34 = vpop.f32.mrf.mxu1 }
  0xd8   :  { %v4499_v44 = vpop.f32.mrf.mxu1 }
  0xe0   :  { %v4508_v53 = vpop.f32.mrf.mxu1 }
  0xe8   :  { %v4517_v63 = vpop.f32.mrf.mxu1 }
  0xf0   :  { %v4527_v12 = vpop.f32.mrf.mxu1 }
  0xf5   :  { %v473_v33 = vpop.xlane.xlu0 %472 }
  0xf6   :  { %vm504_vm8 = vcmp.ge.f32.partialorder %v4402_v38, %v473_v33  ;;  %v255_v33 = vfloor.f32 %v239_v26 }
  0xf7   :  { %v520_v37 = vsel %vm504_vm8, %v4378_v24, 128.0 }
  0xf8   :  { %536 = vmin.xlane.f32.xlu0 %v520_v37  ;;  %v4536_v36 = vpop.f32.mrf.mxu1  ;;  %vm273_vm4 = vcmp.eq.f32.partialorder %v255_v33, %v4390_v31 }
  0xfd   :  { %v475_v42 = vpop.xlane.xlu0 %474 }
  0xfe   :  { %vm505_vm10 = vcmp.ge.f32.partialorder %v4415_v46, %v475_v42  ;;  %v4543_v42 = vsel %vm273_vm4, %v179_v29, -inf }
  0xff   :  { %v521_v48 = vsel %vm505_vm10, %v4378_v24, 128.0 }
 0x100   :  { %486 = vmax.xlane.f32.xlu0 %v4497_v43  ;;  %538 = vmin.xlane.f32.xlu2 %v521_v48  ;;  %v222_v48 = vcvt.s32.f32 %v206_v41  ;;  %v4545_v49 = vpop.f32.mrf.mxu1 }
 0x105   :  { %v477_v51 = vpop.xlane.xlu1 %476 }
 0x106   :  { %vm506_vm12 = vcmp.ge.f32.partialorder %v4432_v57, %v477_v51  ;;  %v241_v51 = vmul.f32 0.015625, %v222_v48 }
 0x107   :  { %v522_v58 = vsel %vm506_vm12, %v4378_v24, 128.0 }
 0x108   :  { %540 = vmin.xlane.f32.xlu1 %v522_v58  ;;  %488 = vmax.xlane.f32.xlu2 %v4506_v52  ;;  %v257_v56 = vfloor.f32 %v241_v51  ;;  %v223_v58 = vcvt.s32.f32 %v207_v54  ;;  %v4553_v59 = vpop.f32.mrf.mxu1 }
 0x109   :  { %648 = vmatpush.msrb.mxu3 %v4553_v59  ;;  %889 = vmatpush.msrb.mxu0 %v4553_v59 }
 0x10a   :  { %1146 = vmatpush.msra.mxu1 %v4553_v59  ;;  %vm275_vm7 = vcmp.eq.f32.partialorder %v257_v56, %v4390_v31 }
 0x10b   :  { %649 = vmatpush.msrb.mxu3 %v4545_v49  ;;  %890 = vmatpush.msrb.mxu0 %v4545_v49  ;;  %v4566_v0 = vsel %vm275_vm7, %v185_v60, -inf }
 0x10c   :  { %1147 = vmatpush.msra.mxu1 %v4545_v49 }
 0x10d   :  { %v479_v61 = vpop.xlane.xlu1 %478  ;;  %650 = vmatpush.msrb.mxu3 %v4536_v36  ;;  %891 = vmatpush.msrb.mxu0 %v4536_v36 }
 0x10e   :  { %vm507_vm14 = vcmp.ge.f32.partialorder %v4445_v5, %v479_v61  ;;  %v242_v61 = vmul.f32 0.015625, %v223_v58  ;;  %1148 = vmatpush.msra.mxu1 %v4536_v36 }
 0x10f   :  { %v523_v2 = vsel %vm507_vm14, %v4378_v24, 128.0  ;;  %651 = vmatpush.msrb.mxu3 %v4527_v12  ;;  %892 = vmatpush.msrb.mxu0 %v4527_v12 }
 0x110   :  { %490 = vmax.xlane.f32.xlu1 %v4515_v62  ;;  %542 = vmin.xlane.f32.xlu0 %v523_v2  ;;  %v258_v1 = vfloor.f32 %v242_v61  ;;  %v188_v2 = vpop.f32.mrf.mxu3 }
 0x111   :  { %1149 = vmatpush.msra.mxu1 %v4527_v12  ;;  %652 = vmatpush.msrb.mxu3 %v4517_v63 }
 0x112   :  { %893 = vmatpush.msrb.mxu0 %v4517_v63  ;;  %vm276_vm8 = vcmp.eq.f32.partialorder %v258_v1, %v4390_v31 }
 0x113   :  { %1150 = vmatpush.msra.mxu1 %v4517_v63  ;;  %653 = vmatpush.msrb.mxu3 %v4508_v53  ;;  %v4582_v3 = vsel %vm276_vm8, %v188_v2, -inf }
 0x114   :  { %894 = vmatpush.msrb.mxu0 %v4508_v53 }
 0x115   :  { %v481_v7 = vpop.xlane.xlu2 %480  ;;  %v485_v39 = vpop.xlane.xlu1 %484  ;;  %1151 = vmatpush.msra.mxu1 %v4508_v53  ;;  %654 = vmatpush.msrb.mxu3 %v4499_v44 }
 0x116   :  { %vm508_vm1 = vcmp.ge.f32.partialorder %v4457_v13, %v481_v7  ;;  %vm510_vm5 = vcmp.ge.f32.partialorder %v4454_v10, %v485_v39  ;;  %895 = vmatpush.msrb.mxu0 %v4499_v44 }
 0x117   :  { %v524_v14 = vsel %vm508_vm1, %v4378_v24, 128.0  ;;  %v526_v50 = vsel %vm510_vm5, %v4378_v24, 128.0  ;;  %1152 = vmatpush.msra.mxu1 %v4499_v44  ;;  %655 = vmatpush.msrb.mxu3 %v4491_v34 }
 0x118   :  { %492 = vmax.xlane.f32.xlu0 %v4524_v8  ;;  %544 = vmin.xlane.f32.xlu2 %v524_v14 }
 0x119   :  { %896 = vmatpush.msrb.mxu0 %v4491_v34  ;;  %1153 = vmatpush.msra.mxu1 %v4491_v34 }
 0x11a   :  { %656 = vmatpush.msrb.mxu3 %v4488_v27 }
 0x11b   :  { %897 = vmatpush.msrb.mxu0 %v4488_v27  ;;  %1154 = vmatpush.msra.mxu1 %v4488_v27 }
 0x11c   :  { %657 = vmatpush.msrb.mxu3 %v4485_v25 }
 0x11d   :  { %v483_v30 = vpop.xlane.xlu2 %482  ;;  %898 = vmatpush.msrb.mxu0 %v4485_v25  ;;  %1155 = vmatpush.msra.mxu1 %v4485_v25 }
 0x11e   :  { %vm509_vm3 = vcmp.ge.f32.partialorder %v4465_v15, %v483_v30  ;;  %658 = vmatpush.msrb.mxu3 %v4483_v23 }
 0x11f   :  { %v525_v37 = vsel %vm509_vm3, %v4378_v24, 128.0  ;;  %899 = vmatpush.msrb.mxu0 %v4483_v23  ;;  %1156 = vmatpush.msra.mxu1 %v4483_v23 }
 0x120   :  { %494 = vmax.xlane.f32.xlu0 %v4533_v32  ;;  %546 = vmin.xlane.f32.xlu1 %v525_v37 }
 0x121   :  { %659 = vmatpush.msrb.mxu3 %v4481_v22  ;;  %900 = vmatpush.msrb.mxu0 %v4481_v22 }
 0x122   :  { %1157 = vmatpush.msra.mxu1 %v4481_v22 }
 0x123   :  { %660 = vmatpush.msrb.mxu3 %v4479_v21  ;;  %901 = vmatpush.msrb.mxu0 %v4479_v21 }
 0x124   :  { %1158 = vmatpush.msra.mxu1 %v4479_v21 }
 0x125   :  { %661 = vmatpush.msrb.mxu3 %v4477_v19  ;;  %902 = vmatpush.msrb.mxu0 %v4477_v19 }
 0x126   :  { %1159 = vmatpush.msra.mxu1 %v4477_v19 }
 0x127   :  { %662 = vmatpush.msrb.mxu3 %v4475_v18  ;;  %903 = vmatpush.msrb.mxu0 %v4475_v18 }
 0x128   :  { %496 = vmax.xlane.f32.xlu0 %v4543_v42  ;;  %548 = vmin.xlane.f32.xlu1 %v526_v50 }
 0x129   :  { %1160 = vmatpush.msra.mxu1 %v4475_v18  ;;  %663 = vmatpush.msrb.mxu3 %v4472_v17 }
 0x12a   :  { %904 = vmatpush.msrb.mxu0 %v4472_v17 }
 0x12b   :  { %1161 = vmatpush.msra.mxu1 %v4472_v17  ;;  %1660 = vmatpush.msra.mxu3 %v4553_v59 }
 0x12c   :  { %1917 = vmatpush.msra.mxu0 %v4553_v59 }
 0x12d   :  { %2174 = vmatpush.msrb.mxu1 %v4553_v59  ;;  %1661 = vmatpush.msra.mxu3 %v4545_v49 }
 0x12e   :  { %1918 = vmatpush.msra.mxu0 %v4545_v49 }
 0x12f   :  { %2175 = vmatpush.msrb.mxu1 %v4545_v49  ;;  %1662 = vmatpush.msra.mxu3 %v4536_v36 }
 0x130   :  { %498 = vmax.xlane.f32.xlu0 %v4551_v55  ;;  %1919 = vmatpush.msra.mxu0 %v4536_v36 }
 0x131   :  { %2176 = vmatpush.msrb.mxu1 %v4536_v36  ;;  %1663 = vmatpush.msra.mxu3 %v4527_v12 }
 0x132   :  { %1920 = vmatpush.msra.mxu0 %v4527_v12 }
 0x133   :  { %2177 = vmatpush.msrb.mxu1 %v4527_v12  ;;  %1664 = vmatpush.msra.mxu3 %v4517_v63 }
 0x134   :  { %1921 = vmatpush.msra.mxu0 %v4517_v63 }
 0x135   :  { %2178 = vmatpush.msrb.mxu1 %v4517_v63  ;;  %1665 = vmatpush.msra.mxu3 %v4508_v53 }
 0x136   :  { %1922 = vmatpush.msra.mxu0 %v4508_v53 }
 0x137   :  { %2179 = vmatpush.msrb.mxu1 %v4508_v53  ;;  %1666 = vmatpush.msra.mxu3 %v4499_v44 }
 0x138   :  { %500 = vmax.xlane.f32.xlu0 %v4566_v0  ;;  %1923 = vmatpush.msra.mxu0 %v4499_v44 }
 0x139   :  { %2180 = vmatpush.msrb.mxu1 %v4499_v44  ;;  %1667 = vmatpush.msra.mxu3 %v4491_v34 }
 0x13a   :  { %1924 = vmatpush.msra.mxu0 %v4491_v34 }
 0x13b   :  { %2181 = vmatpush.msrb.mxu1 %v4491_v34  ;;  %1668 = vmatpush.msra.mxu3 %v4488_v27 }
 0x13c   :  { %1925 = vmatpush.msra.mxu0 %v4488_v27 }
 0x13d   :  { %2182 = vmatpush.msrb.mxu1 %v4488_v27  ;;  %1669 = vmatpush.msra.mxu3 %v4485_v25 }
 0x13e   :  { %1926 = vmatpush.msra.mxu0 %v4485_v25 }
 0x13f   :  { %2183 = vmatpush.msrb.mxu1 %v4485_v25  ;;  %1670 = vmatpush.msra.mxu3 %v4483_v23 }
 0x140   :  { %502 = vmax.xlane.f32.xlu0 %v4582_v3  ;;  %1927 = vmatpush.msra.mxu0 %v4483_v23 }
 0x141   :  { %2184 = vmatpush.msrb.mxu1 %v4483_v23  ;;  %1671 = vmatpush.msra.mxu3 %v4481_v22 }
 0x142   :  { %1928 = vmatpush.msra.mxu0 %v4481_v22 }
 0x143   :  { %2185 = vmatpush.msrb.mxu1 %v4481_v22  ;;  %1672 = vmatpush.msra.mxu3 %v4479_v21 }
 0x144   :  { %1929 = vmatpush.msra.mxu0 %v4479_v21 }
 0x145   :  { %2186 = vmatpush.msrb.mxu1 %v4479_v21  ;;  %1673 = vmatpush.msra.mxu3 %v4477_v19 }
 0x146   :  { %1930 = vmatpush.msra.mxu0 %v4477_v19 }
 0x147   :  { %2187 = vmatpush.msrb.mxu1 %v4477_v19  ;;  %1674 = vmatpush.msra.mxu3 %v4475_v18 }
 0x148   :  { %1931 = vmatpush.msra.mxu0 %v4475_v18 }
 0x149   :  { %2188 = vmatpush.msrb.mxu1 %v4475_v18  ;;  %1675 = vmatpush.msra.mxu3 %v4472_v17 }
 0x14a   :  { %1932 = vmatpush.msra.mxu0 %v4472_v17 }
 0x14b   :  { %2189 = vmatpush.msrb.mxu1 %v4472_v17 }
 0x16b   :  { %v4655_v31 = vpop.xlane.xlu0 %536 }
 0x16c   :  { %8476 = vst [vmem:[#allocation4_spill] sm:$0xff] %v4655_v31  ;;  %vm568_vm9 = vcmp.eq.f32.partialorder %v4378_v24, %v4655_v31 }
 0x16d   :  { %3805 = vmatmul.msk.f32.vlgmr.msrb.gmra.mxu3 %vm568_vm9, %v8253_v4  ;;  %v4670_v6 = vsel %vm568_vm9, -inf, %v4402_v38 }
 0x16e   :  { %713 = vmax.xlane.f32.xlu2 %v4670_v6  ;;  %4211 = vmatpush.msrb.mxu3 %v4553_v59 }
 0x170   :  { %4212 = vmatpush.msrb.mxu3 %v4545_v49 }
 0x172   :  { %4213 = vmatpush.msrb.mxu3 %v4536_v36 }
 0x173   :  { %v487_v7 = vpop.xlane.xlu0 %486  ;;  %v4677_v9 = vpop.xlane.xlu2 %538 }
 0x174   :  { %8477 = vst [vmem:[#allocation5_spill] sm:$0xff] %v4677_v9  ;;  %vm569_vm10 = vcmp.eq.f32.partialorder %v4378_v24, %v4677_v9  ;;  %vm511_vm11 = vcmp.ge.f32.partialorder %v4497_v43, %v487_v7  ;;  %4214 = vmatpush.msrb.mxu3 %v4527_v12 }
 0x175   :  { %3806 = vmatmul.msk.f32.gmra.mxu3 %vm569_vm10, %v8253_v4  ;;  %v527_v38 = vsel %vm511_vm11, %v4378_v24, 128.0 }
 0x176   :  { %550 = vmin.xlane.f32.xlu1 %v527_v38  ;;  %4215 = vmatpush.msrb.mxu3 %v4517_v63 }
 0x178   :  { %4216 = vmatpush.msrb.mxu3 %v4508_v53 }
 0x17a   :  { %4217 = vmatpush.msrb.mxu3 %v4499_v44 }
 0x17b   :  { %v4691_v11 = vpop.xlane.xlu1 %540  ;;  %v489_v14 = vpop.xlane.xlu2 %488 }
 0x17c   :  { %8478 = vst [vmem:[#allocation6_spill] sm:$0xff] %v4691_v11  ;;  %vm570_vm12 = vcmp.eq.f32.partialorder %v4378_v24, %v4691_v11  ;;  %vm512_vm13 = vcmp.ge.f32.partialorder %v4506_v52, %v489_v14  ;;  %4218 = vmatpush.msrb.mxu3 %v4491_v34 }
 0x17d   :  { %3807 = vmatmul.msk.f32.gmra.mxu3 %vm570_vm12, %v8253_v4  ;;  %v528_v16 = vsel %vm512_vm13, %v4378_v24, 128.0  ;;  %v4770_v51 = vsel %vm570_vm12, -inf, %v4432_v57 }
 0x17e   :  { %552 = vmin.xlane.f32.xlu1 %v528_v16  ;;  %4219 = vmatpush.msrb.mxu3 %v4488_v27 }
 0x180   :  { %4220 = vmatpush.msrb.mxu3 %v4485_v25 }
 0x182   :  { %4221 = vmatpush.msrb.mxu3 %v4483_v23 }
 0x183   :  { %v4705_v26 = vpop.xlane.xlu0 %542  ;;  %v491_v28 = vpop.xlane.xlu1 %490 }
 0x184   :  { %8479 = vst [vmem:[#allocation7_spill] sm:$0xff] %v4705_v26  ;;  %vm8277_vm14 = vcmp.eq.f32.partialorder %v4378_v24, %v4705_v26  ;;  %vm513_vm15 = vcmp.ge.f32.partialorder %v4515_v62, %v491_v28  ;;  %4222 = vmatpush.msrb.mxu3 %v4481_v22 }
 0x185   :  { %3808 = vmatmul.msk.f32.gmra.mxu3 %vm8277_vm14, %v8253_v4  ;;  %v529_v29 = vsel %vm513_vm15, %v4378_v24, 128.0  ;;  %v4779_v56 = vsel %vm8277_vm14, -inf, %v4445_v5 }
 0x186   :  { %554 = vmin.xlane.f32.xlu1 %v529_v29  ;;  %4223 = vmatpush.msrb.mxu3 %v4479_v21 }
 0x188   :  { %4224 = vmatpush.msrb.mxu3 %v4477_v19 }
 0x18a   :  { %4225 = vmatpush.msrb.mxu3 %v4475_v18 }
 0x18b   :  { %v493_v30 = vpop.xlane.xlu0 %492  ;;  %v4719_v33 = vpop.xlane.xlu2 %544 }
 0x18c   :  { %8480 = vst [vmem:[#allocation8_spill] sm:$0xff] %v4719_v33  ;;  %vm8269_vm1 = vcmp.eq.f32.partialorder %v4378_v24, %v4719_v33  ;;  %vm514_vm2 = vcmp.ge.f32.partialorder %v4524_v8, %v493_v30  ;;  %4226 = vmatpush.msrb.mxu3 %v4472_v17 }
 0x18d   :  { %3809 = vmatmul.msk.f32.gmra.mxu3 %vm8269_vm1, %v8253_v4  ;;  %v530_v35 = vsel %vm514_vm2, %v4378_v24, 128.0  ;;  %v4789_v61 = vsel %vm8269_vm1, -inf, %v4457_v13 }
 0x18e   :  { %556 = vmin.xlane.f32.xlu1 %v530_v35 }
 0x193   :  { %v495_v37 = vpop.xlane.xlu0 %494  ;;  %v4731_v39 = vpop.xlane.xlu1 %546 }
 0x194   :  { %8481 = vst [vmem:[#allocation9_spill] sm:$0xff] %v4731_v39  ;;  %vm8259_vm3 = vcmp.eq.f32.partialorder %v4378_v24, %v4731_v39  ;;  %vm515_vm4 = vcmp.ge.f32.partialorder %v4533_v32, %v495_v37 }
 0x195   :  { %3810 = vmatmul.msk.f32.gmra.mxu3 %vm8259_vm3, %v8253_v4  ;;  %v4744_v40 = vsel %vm8259_vm3, -inf, %v4465_v15  ;;  %v531_v41 = vsel %vm515_vm4, %v4378_v24, 128.0  ;;  %v4761_v15 = vsel %vm569_vm10, -inf, %v4415_v46 }
 0x196   :  { %723 = vmax.xlane.f32.xlu2 %v4744_v40  ;;  %558 = vmin.xlane.f32.xlu1 %v531_v41 }
 0x19b   :  { %v497_v45 = vpop.xlane.xlu0 %496  ;;  %v4748_v47 = vpop.xlane.xlu1 %548 }
 0x19c   :  { %8482 = vst [vmem:[#allocation10_spill] sm:$0xff] %v4748_v47  ;;  %vm8233_vm5 = vcmp.eq.f32.partialorder %v4378_v24, %v4748_v47  ;;  %vm516_vm6 = vcmp.ge.f32.partialorder %v4543_v42, %v497_v45 }
 0x19d   :  { %3811 = vmatmul.msk.f32.gmra.mxu3 %vm8233_vm5, %v8253_v4  ;;  %v532_v48 = vsel %vm516_vm6, %v4378_v24, 128.0  ;;  %v4796_v5 = vsel %vm8233_vm5, -inf, %v4454_v10 }
 0x19e   :  { %715 = vmax.xlane.f32.xlu2 %v4761_v15  ;;  %560 = vmin.xlane.f32.xlu1 %v532_v48 }
 0x1a3   :  { %v499_v50 = vpop.xlane.xlu0 %498 }
 0x1a4   :  { %vm517_vm7 = vcmp.ge.f32.partialorder %v4551_v55, %v499_v50 }
 0x1a5   :  { %v533_v54 = vsel %vm517_vm7, %v4378_v24, 128.0 }
 0x1a6   :  { %717 = vmax.xlane.f32.xlu2 %v4770_v51  ;;  %562 = vmin.xlane.f32.xlu1 %v533_v54 }
 0x1ab   :  { %v501_v46 = vpop.xlane.xlu0 %500 }
 0x1ac   :  { %vm518_vm8 = vcmp.ge.f32.partialorder %v4566_v0, %v501_v46 }
 0x1ad   :  { %v534_v58 = vsel %vm518_vm8, %v4378_v24, 128.0 }
 0x1ae   :  { %719 = vmax.xlane.f32.xlu2 %v4779_v56  ;;  %564 = vmin.xlane.f32.xlu1 %v534_v58 }
 0x1b3   :  { %v503_v57 = vpop.xlane.xlu0 %502 }
 0x1b4   :  { %vm519_vm11 = vcmp.ge.f32.partialorder %v4582_v3, %v503_v57 }
 0x1b5   :  { %v535_v60 = vsel %vm519_vm11, %v4378_v24, 128.0 }
 0x1b6   :  { %566 = vmin.xlane.f32.xlu1 %v535_v60  ;;  %721 = vmax.xlane.f32.xlu2 %v4789_v61 }
 0x1be   :  { %725 = vmax.xlane.f32.xlu2 %v4796_v5 }
 0x1e1   :  { %v714_v1 = vpop.xlane.xlu2 %713 }
 0x1e2   :  { %vm745_vm13 = vcmp.ge.f32.partialorder %v4670_v6, %v714_v1 }
 0x1e3   :  { %v761_v2 = vsel %vm745_vm13, %v4378_v24, 128.0 }
 0x1e4   :  { %777 = vmin.xlane.f32.xlu0 %v761_v2 }
 0x1e9   :  { %v4801_v7 = vpop.xlane.xlu1 %550 }
 0x1ea   :  { %8483 = vst [vmem:[#allocation11_spill] sm:$0xff] %v4801_v7  ;;  %vm8232_vm15 = vcmp.eq.f32.partialorder %v4378_v24, %v4801_v7 }
 0x1eb   :  { %3812 = vmatmul.msk.f32.gmra.mxu3 %vm8232_vm15, %v8253_v4  ;;  %v4813_v10 = vsel %vm8232_vm15, -inf, %v4497_v43 }
 0x1ec   :  { %727 = vmax.xlane.f32.xlu2 %v4813_v10 }
 0x1f1   :  { %v4816_v13 = vpop.xlane.xlu1 %552 }
 0x1f2   :  { %8484 = vst [vmem:[#allocation12_spill] sm:$0xff] %v4816_v13  ;;  %vm8231_vm2 = vcmp.eq.f32.partialorder %v4378_v24, %v4816_v13 }
 0x1f3   :  { %3813 = vmatmul.msk.f32.gmra.mxu3 %vm8231_vm2, %v8253_v4  ;;  %v4828_v38 = vsel %vm8231_vm2, -inf, %v4506_v52 }
 0x1f4   :  { %729 = vmax.xlane.f32.xlu2 %v4828_v38 }
 0x1f9   :  { %v4831_v43 = vpop.xlane.xlu1 %554 }
 0x1fa   :  { %8485 = vst [vmem:[#allocation13_spill] sm:$0xff] %v4831_v43  ;;  %vm8230_vm4 = vcmp.eq.f32.partialorder %v4378_v24, %v4831_v43 }
 0x1fb   :  { %3814 = vmatmul.msk.f32.gmra.mxu3 %vm8230_vm4, %v8253_v4  ;;  %v4843_v14 = vsel %vm8230_vm4, -inf, %v4515_v62 }
 0x1fc   :  { %731 = vmax.xlane.f32.xlu2 %v4843_v14 }
 0x201   :  { %v4846_v52 = vpop.xlane.xlu1 %556 }
 0x202   :  { %8486 = vst [vmem:[#allocation14_spill] sm:$0xff] %v4846_v52  ;;  %vm8229_vm6 = vcmp.eq.f32.partialorder %v4378_v24, %v4846_v52 }
 0x203   :  { %3815 = vmatmul.msk.f32.gmra.mxu3 %vm8229_vm6, %v8253_v4  ;;  %v4858_v16 = vsel %vm8229_vm6, -inf, %v4524_v8 }
 0x204   :  { %733 = vmax.xlane.f32.xlu2 %v4858_v16 }
 0x209   :  { %v4861_v62 = vpop.xlane.xlu1 %558  ;;  %v724_v28 = vpop.xlane.xlu2 %723 }
 0x20a   :  { %8487 = vst [vmem:[#allocation15_spill] sm:$0xff] %v4861_v62  ;;  %vm8224_vm7 = vcmp.eq.f32.partialorder %v4378_v24, %v4861_v62  ;;  %vm750_vm8 = vcmp.ge.f32.partialorder %v4744_v40, %v724_v28 }
 0x20b   :  { %3816 = vmatmul.msk.f32.gmra.mxu3 %vm8224_vm7, %v8253_v4  ;;  %v4874_v8 = vsel %vm8224_vm7, -inf, %v4533_v32  ;;  %v766_v29 = vsel %vm750_vm8, %v4378_v24, 128.0 }
 0x20c   :  { %735 = vmax.xlane.f32.xlu2 %v4874_v8  ;;  %787 = vmin.xlane.f32.xlu0 %v766_v29 }
 0x211   :  { %v4878_v30 = vpop.xlane.xlu1 %560  ;;  %v716_v35 = vpop.xlane.xlu2 %715 }
 0x212   :  { %8488 = vst [vmem:[#allocation16_spill] sm:$0xff] %v4878_v30  ;;  %vm8225_vm11 = vcmp.eq.f32.partialorder %v4378_v24, %v4878_v30  ;;  %vm746_vm13 = vcmp.ge.f32.partialorder %v4761_v15, %v716_v35 }
 0x213   :  { %3817 = vmatmul.msk.f32.gmra.mxu3 %vm8225_vm11, %v8253_v4  ;;  %v4891_v32 = vsel %vm8225_vm11, -inf, %v4543_v42  ;;  %v762_v37 = vsel %vm746_vm13, %v4378_v24, 128.0 }
 0x214   :  { %737 = vmax.xlane.f32.xlu2 %v4891_v32  ;;  %779 = vmin.xlane.f32.xlu0 %v762_v37 }
 0x219   :  { %v4895_v41 = vpop.xlane.xlu1 %562  ;;  %v718_v45 = vpop.xlane.xlu2 %717 }
 0x21a   :  { %8489 = vst [vmem:[#allocation17_spill] sm:$0xff] %v4895_v41  ;;  %vm8226_vm8 = vcmp.eq.f32.partialorder %v4378_v24, %v4895_v41  ;;  %vm747_vm7 = vcmp.ge.f32.partialorder %v4770_v51, %v718_v45 }
 0x21b   :  { %3818 = vmatmul.msk.f32.gmra.mxu3 %vm8226_vm8, %v8253_v4  ;;  %v4908_v42 = vsel %vm8226_vm8, -inf, %v4551_v55  ;;  %v763_v48 = vsel %vm747_vm7, %v4378_v24, 128.0 }
 0x21c   :  { %739 = vmax.xlane.f32.xlu2 %v4908_v42  ;;  %781 = vmin.xlane.f32.xlu0 %v763_v48 }
 0x221   :  { %v4912_v50 = vpop.xlane.xlu1 %564  ;;  %v720_v54 = vpop.xlane.xlu2 %719 }
 0x222   :  { %8490 = vst [vmem:[#allocation18_spill] sm:$0xff] %v4912_v50  ;;  %vm8227_vm13 = vcmp.eq.f32.partialorder %v4378_v24, %v4912_v50  ;;  %vm748_vm11 = vcmp.ge.f32.partialorder %v4779_v56, %v720_v54 }
 0x223   :  { %3819 = vmatmul.msk.f32.gmra.mxu3 %vm8227_vm13, %v8253_v4  ;;  %v4925_v55 = vsel %vm8227_vm13, -inf, %v4566_v0  ;;  %v764_v46 = vsel %vm748_vm11, %v4378_v24, 128.0 }
 0x224   :  { %741 = vmax.xlane.f32.xlu2 %v4925_v55  ;;  %783 = vmin.xlane.f32.xlu0 %v764_v46 }
 0x229   :  { %v4929_v58 = vpop.xlane.xlu1 %566  ;;  %v722_v57 = vpop.xlane.xlu2 %721 }
 0x22a   :  { %8491 = vst [vmem:[#allocation19_spill] sm:$0xff] %v4929_v58  ;;  %vm8228_vm7 = vcmp.eq.f32.partialorder %v4378_v24, %v4929_v58  ;;  %vm749_vm8 = vcmp.ge.f32.partialorder %v4789_v61, %v722_v57 }
 0x22b   :  { %3820 = vmatmul.msk.f32.gmra.mxu3 %vm8228_vm7, %v8253_v4  ;;  %v4942_v0 = vsel %vm8228_vm7, -inf, %v4582_v3  ;;  %v765_v60 = vsel %vm749_vm8, %v4378_v24, 128.0 }
 0x22c   :  { %743 = vmax.xlane.f32.xlu2 %v4942_v0  ;;  %785 = vmin.xlane.f32.xlu0 %v765_v60 }
 0x231   :  { %v726_v1 = vpop.xlane.xlu2 %725 }
 0x232   :  { %vm751_vm11 = vcmp.ge.f32.partialorder %v4796_v5, %v726_v1 }
 0x233   :  { %v767_v2 = vsel %vm751_vm11, %v4378_v24, 128.0 }
 0x234   :  { %789 = vmin.xlane.f32.xlu0 %v767_v2 }
 0x257   :  { %v4948_v28 = vpop.xlane.xlu0 %777 }
 0x258   :  { %8492 = vst [vmem:[#allocation20_spill] sm:$0xff] %v4948_v28  ;;  %vm809_vm13 = vcmp.eq.f32.partialorder %v4378_v24, %v4948_v28 }
 0x259   :  { %3837 = vmatmul.msk.f32.vlgmr.msrb.gmra.mxu0 %vm809_vm13, %v8253_v4  ;;  %v4960_v3 = vsel %vm809_vm13, -inf, %v4670_v6 }
 0x25a   :  { %970 = vmax.xlane.f32.xlu1 %v4960_v3 }
 0x25f   :  { %v728_v29 = vpop.xlane.xlu2 %727 }
 0x260   :  { %vm752_vm8 = vcmp.ge.f32.partialorder %v4813_v10, %v728_v29 }
 0x261   :  { %v768_v35 = vsel %vm752_vm8, %v4378_v24, 128.0 }
 0x262   :  { %791 = vmin.xlane.f32.xlu0 %v768_v35 }
 0x267   :  { %v730_v37 = vpop.xlane.xlu2 %729 }
 0x268   :  { %vm753_vm11 = vcmp.ge.f32.partialorder %v4828_v38, %v730_v37 }
 0x269   :  { %v769_v45 = vsel %vm753_vm11, %v4378_v24, 128.0 }
 0x26a   :  { %793 = vmin.xlane.f32.xlu0 %v769_v45 }
 0x26f   :  { %v732_v48 = vpop.xlane.xlu2 %731 }
 0x270   :  { %vm754_vm7 = vcmp.ge.f32.partialorder %v4843_v14, %v732_v48 }
 0x271   :  { %v770_v6 = vsel %vm754_vm7, %v4378_v24, 128.0 }
 0x272   :  { %795 = vmin.xlane.f32.xlu0 %v770_v6 }
 0x277   :  { %v734_v54 = vpop.xlane.xlu2 %733 }
 0x278   :  { %vm755_vm6 = vcmp.ge.f32.partialorder %v4858_v16, %v734_v54 }
 0x279   :  { %v771_v46 = vsel %vm755_vm6, %v4378_v24, 128.0 }
 0x27a   :  { %797 = vmin.xlane.f32.xlu0 %v771_v46 }
 0x27f   :  { %v4971_v57 = vpop.xlane.xlu0 %787  ;;  %v736_v60 = vpop.xlane.xlu2 %735 }
 0x280   :  { %8493 = vst [vmem:[#allocation21_spill] sm:$0xff] %v4971_v57  ;;  %vm756_vm8 = vcmp.ge.f32.partialorder %v4874_v8, %v736_v60 }
 0x281   :  { %v772_v1 = vsel %vm756_vm8, %v4378_v24, 128.0 }
 0x282   :  { %799 = vmin.xlane.f32.xlu0 %v772_v1 }
 0x287   :  { %v4975_v2 = vpop.xlane.xlu0 %779  ;;  %v738_v29 = vpop.xlane.xlu2 %737 }
 0x288   :  { %8494 = vst [vmem:[#allocation22_spill] sm:$0xff] %v4975_v2  ;;  %vm810_vm7 = vcmp.eq.f32.partialorder %v4378_v24, %v4975_v2  ;;  %vm757_vm11 = vcmp.ge.f32.partialorder %v4891_v32, %v738_v29 }
 0x289   :  { %3838 = vmatmul.msk.f32.gmra.mxu0 %vm810_vm7, %v8253_v4  ;;  %v4988_v35 = vsel %vm810_vm7, -inf, %v4761_v15  ;;  %v773_v37 = vsel %vm757_vm11, %v4378_v24, 128.0 }
 0x28a   :  { %972 = vmax.xlane.f32.xlu1 %v4988_v35  ;;  %801 = vmin.xlane.f32.xlu0 %v773_v37 }
 0x28f   :  { %v4992_v45 = vpop.xlane.xlu0 %781  ;;  %v740_v48 = vpop.xlane.xlu2 %739 }
 0x290   :  { %8495 = vst [vmem:[#allocation23_spill] sm:$0xff] %v4992_v45  ;;  %vm8432_vm6 = vcmp.eq.f32.partialorder %v4378_v24, %v4992_v45  ;;  %vm758_vm8 = vcmp.ge.f32.partialorder %v4908_v42, %v740_v48 }
 0x291   :  { %3839 = vmatmul.msk.f32.gmra.mxu0 %vm8432_vm6, %v8253_v4  ;;  %v5005_v15 = vsel %vm8432_vm6, -inf, %v4770_v51  ;;  %v774_v6 = vsel %vm758_vm8, %v4378_v24, 128.0 }
 0x292   :  { %974 = vmax.xlane.f32.xlu1 %v5005_v15  ;;  %803 = vmin.xlane.f32.xlu0 %v774_v6 }
 0x297   :  { %v5009_v54 = vpop.xlane.xlu0 %783  ;;  %v742_v46 = vpop.xlane.xlu2 %741 }
 0x298   :  { %8496 = vst [vmem:[#allocation24_spill] sm:$0xff] %v5009_v54  ;;  %vm8276_vm11 = vcmp.eq.f32.partialorder %v4378_v24, %v5009_v54  ;;  %vm759_vm4 = vcmp.ge.f32.partialorder %v4925_v55, %v742_v46 }
 0x299   :  { %3840 = vmatmul.msk.f32.gmra.mxu0 %vm8276_vm11, %v8253_v4  ;;  %v5022_v51 = vsel %vm8276_vm11, -inf, %v4779_v56  ;;  %v775_v60 = vsel %vm759_vm4, %v4378_v24, 128.0  ;;  %vm8246_vm4 = vcmp.eq.f32.partialorder %v4378_v24, %v4971_v57 }
 0x29a   :  { %976 = vmax.xlane.f32.xlu1 %v5022_v51  ;;  %805 = vmin.xlane.f32.xlu0 %v775_v60  ;;  %v5053_v48 = vsel %vm8246_vm4, -inf, %v4744_v40 }
 0x29f   :  { %v5026_v1 = vpop.xlane.xlu0 %785  ;;  %v744_v29 = vpop.xlane.xlu2 %743 }
 0x2a0   :  { %8497 = vst [vmem:[#allocation25_spill] sm:$0xff] %v5026_v1  ;;  %vm8261_vm8 = vcmp.eq.f32.partialorder %v4378_v24, %v5026_v1  ;;  %vm760_vm2 = vcmp.ge.f32.partialorder %v4942_v0, %v744_v29 }
 0x2a1   :  { %3841 = vmatmul.msk.f32.gmra.mxu0 %vm8261_vm8, %v8253_v4  ;;  %v5039_v56 = vsel %vm8261_vm8, -inf, %v4789_v61  ;;  %v776_v37 = vsel %vm760_vm2, %v4378_v24, 128.0 }
 0x2a2   :  { %978 = vmax.xlane.f32.xlu1 %v5039_v56  ;;  %807 = vmin.xlane.f32.xlu0 %v776_v37 }
 0x2a7   :  { %v5056_v61 = vpop.xlane.xlu0 %789 }
 0x2a8   :  { %8498 = vst [vmem:[#allocation26_spill] sm:$0xff] %v5056_v61  ;;  %vm8241_vm2 = vcmp.eq.f32.partialorder %v4378_v24, %v5056_v61 }
 0x2a9   :  { %3842 = vmatmul.msk.f32.gmra.mxu0 %vm8246_vm4, %v8253_v4  ;;  %v5068_v6 = vsel %vm8241_vm2, -inf, %v4796_v5 }
 0x2aa   :  { %980 = vmax.xlane.f32.xlu1 %v5053_v48 }
 0x2b1   :  { %3843 = vmatmul.msk.f32.gmra.mxu0 %vm8241_vm2, %v8253_v4 }
 0x2b2   :  { %982 = vmax.xlane.f32.xlu1 %v5068_v6 }
 0x2cd   :  { %v971_v40 = vpop.xlane.xlu1 %970 }
 0x2ce   :  { %vm1002_vm15 = vcmp.ge.f32.partialorder %v4960_v3, %v971_v40 }
 0x2cf   :  { %v1018_v46 = vsel %vm1002_vm15, %v4378_v24, 128.0 }
 0x2d0   :  { %1034 = vmin.xlane.f32.xlu2 %v1018_v46 }
 0x2d5   :  { %v5073_v60 = vpop.xlane.xlu0 %791 }
 0x2d6   :  { %8499 = vst [vmem:[#allocation27_spill] sm:$0xff] %v5073_v60  ;;  %vm8234_vm5 = vcmp.eq.f32.partialorder %v4378_v24, %v5073_v60 }
 0x2d7   :  { %3844 = vmatmul.msk.f32.gmra.mxu0 %vm8234_vm5, %v8253_v4  ;;  %v5085_v5 = vsel %vm8234_vm5, -inf, %v4813_v10 }
 0x2d8   :  { %984 = vmax.xlane.f32.xlu1 %v5085_v5 }
 0x2dd   :  { %v5088_v29 = vpop.xlane.xlu0 %793 }
 0x2de   :  { %8500 = vst [vmem:[#allocation28_spill] sm:$0xff] %v5088_v29  ;;  %vm8235_vm15 = vcmp.eq.f32.partialorder %v4378_v24, %v5088_v29 }
 0x2df   :  { %3845 = vmatmul.msk.f32.gmra.mxu0 %vm8235_vm15, %v8253_v4  ;;  %v5100_v37 = vsel %vm8235_vm15, -inf, %v4828_v38 }
 0x2e0   :  { %986 = vmax.xlane.f32.xlu1 %v5100_v37 }
 0x2e5   :  { %v5103_v10 = vpop.xlane.xlu0 %795 }
 0x2e6   :  { %8501 = vst [vmem:[#allocation29_spill] sm:$0xff] %v5103_v10  ;;  %vm8236_vm5 = vcmp.eq.f32.partialorder %v4378_v24, %v5103_v10 }
 0x2e7   :  { %3846 = vmatmul.msk.f32.gmra.mxu0 %vm8236_vm5, %v8253_v4  ;;  %v5115_v40 = vsel %vm8236_vm5, -inf, %v4843_v14 }
 0x2e8   :  { %988 = vmax.xlane.f32.xlu1 %v5115_v40 }
 0x2ed   :  { %v5118_v38 = vpop.xlane.xlu0 %797 }
 0x2ee   :  { %8502 = vst [vmem:[#allocation30_spill] sm:$0xff] %v5118_v38  ;;  %vm8240_vm15 = vcmp.eq.f32.partialorder %v4378_v24, %v5118_v38 }
 0x2ef   :  { %3847 = vmatmul.msk.f32.gmra.mxu0 %vm8240_vm15, %v8253_v4  ;;  %v5130_v46 = vsel %vm8240_vm15, -inf, %v4858_v16 }
 0x2f0   :  { %990 = vmax.xlane.f32.xlu1 %v5130_v46 }
 0x2f5   :  { %v5133_v14 = vpop.xlane.xlu0 %799 }
 0x2f6   :  { %8503 = vst [vmem:[#allocation31_spill] sm:$0xff] %v5133_v14  ;;  %vm8245_vm5 = vcmp.eq.f32.partialorder %v4378_v24, %v5133_v14 }
 0x2f7   :  { %3848 = vmatmul.msk.f32.gmra.mxu0 %vm8245_vm5, %v8253_v4  ;;  %v5145_v20 = vsel %vm8245_vm5, -inf, %v4874_v8 }
 0x2f8   :  { %992 = vmax.xlane.f32.xlu1 %v5145_v20 }
 0x2fd   :  { %v973_v16 = vpop.xlane.xlu1 %972  ;;  %v5148_v58 = vpop.xlane.xlu0 %801 }
 0x2fe   :  { %8504 = vst [vmem:[#allocation32_spill] sm:$0xff] %v5148_v58  ;;  %vm8248_vm15 = vcmp.eq.f32.partialorder %v4378_v24, %v5148_v58  ;;  %vm1003_vm2 = vcmp.ge.f32.partialorder %v4988_v35, %v973_v16 }
 0x2ff   :  { %3849 = vmatmul.msk.f32.gmra.mxu0 %vm8248_vm15, %v8253_v4  ;;  %v1019_v50 = vsel %vm1003_vm2, %v4378_v24, 128.0  ;;  %v5162_v8 = vsel %vm8248_vm15, -inf, %v4891_v32 }
 0x300   :  { %1036 = vmin.xlane.f32.xlu2 %v1019_v50  ;;  %994 = vmax.xlane.f32.xlu1 %v5162_v8 }
 0x305   :  { %v975_v41 = vpop.xlane.xlu1 %974  ;;  %v5165_v30 = vpop.xlane.xlu0 %803 }
 0x306   :  { %8505 = vst [vmem:[#allocation33_spill] sm:$0xff] %v5165_v30  ;;  %vm8250_vm5 = vcmp.eq.f32.partialorder %v4378_v24, %v5165_v30  ;;  %vm1004_vm4 = vcmp.ge.f32.partialorder %v5005_v15, %v975_v41 }
 0x307   :  { %3850 = vmatmul.msk.f32.gmra.mxu0 %vm8250_vm5, %v8253_v4  ;;  %v1020_v16 = vsel %vm1004_vm4, %v4378_v24, 128.0  ;;  %v5179_v32 = vsel %vm8250_vm5, -inf, %v4908_v42 }
 0x308   :  { %1038 = vmin.xlane.f32.xlu2 %v1020_v16  ;;  %996 = vmax.xlane.f32.xlu1 %v5179_v32 }
 0x30d   :  { %v977_v50 = vpop.xlane.xlu1 %976  ;;  %v5182_v58 = vpop.xlane.xlu0 %805 }
 0x30e   :  { %8506 = vst [vmem:[#allocation34_spill] sm:$0xff] %v5182_v58  ;;  %vm8252_vm2 = vcmp.eq.f32.partialorder %v4378_v24, %v5182_v58  ;;  %vm1005_vm15 = vcmp.ge.f32.partialorder %v5022_v51, %v977_v50 }
 0x30f   :  { %3851 = vmatmul.msk.f32.gmra.mxu0 %vm8252_vm2, %v8253_v4  ;;  %v1021_v41 = vsel %vm1005_vm15, %v4378_v24, 128.0  ;;  %v5196_v42 = vsel %vm8252_vm2, -inf, %v4925_v55 }
 0x310   :  { %1040 = vmin.xlane.f32.xlu2 %v1021_v41  ;;  %998 = vmax.xlane.f32.xlu1 %v5196_v42 }
 0x315   :  { %v979_v16 = vpop.xlane.xlu1 %978  ;;  %v5199_v30 = vpop.xlane.xlu0 %807 }
 0x316   :  { %8507 = vst [vmem:[#allocation35_spill] sm:$0xff] %v5199_v30  ;;  %vm8257_vm4 = vcmp.eq.f32.partialorder %v4378_v24, %v5199_v30  ;;  %vm1006_vm5 = vcmp.ge.f32.partialorder %v5039_v56, %v979_v16 }
 0x317   :  { %3852 = vmatmul.msk.f32.gmra.mxu0 %vm8257_vm4, %v8253_v4  ;;  %v1022_v50 = vsel %vm1006_vm5, %v4378_v24, 128.0  ;;  %v5213_v55 = vsel %vm8257_vm4, -inf, %v4942_v0  ;;  %v8509_v0 = vmov 1.0  }
 0x318   :  { %1042 = vmin.xlane.f32.xlu2 %v1022_v50  ;;  %1000 = vmax.xlane.f32.xlu1 %v5213_v55 }
 0x31d   :  { %v981_v41 = vpop.xlane.xlu1 %980 }
 0x31e   :  { %vm1007_vm15 = vcmp.ge.f32.partialorder %v5053_v48, %v981_v41 }
 0x31f   :  { %v1023_v16 = vsel %vm1007_vm15, %v4378_v24, 128.0 }
 0x320   :  { %1044 = vmin.xlane.f32.xlu2 %v1023_v16 }
 0x325   :  { %v983_v58 = vpop.xlane.xlu1 %982 }
 0x326   :  { %vm1008_vm2 = vcmp.ge.f32.partialorder %v5068_v6, %v983_v58 }
 0x327   :  { %v1024_v4 = vsel %vm1008_vm2, %v4378_v24, 128.0 }
 0x328   :  { %1046 = vmin.xlane.f32.xlu2 %v1024_v4 }
 0x343   :  { %v5220_v14 = vpop.xlane.xlu2 %1034 }
 0x344   :  { %8508 = vst [vmem:[#allocation36_spill] sm:$0xff] %v5220_v14  ;;  %vm1066_vm5 = vcmp.eq.f32.partialorder %v4378_v24, %v5220_v14 }
 0x345   :  { %3869 = vmatmul.msk.f32.vlgmr.msra.gmra.mxu1 %vm1066_vm5, %v8509_v0  ;;  %v5232_v50 = vsel %vm1066_vm5, -inf, %v4960_v3 }
 0x346   :  { %1227 = vmax.xlane.f32.xlu0 %v5232_v50 }
 0x34b   :  { %v985_v58 = vpop.xlane.xlu1 %984 }
 0x34c   :  { %vm1009_vm2 = vcmp.ge.f32.partialorder %v5085_v5, %v985_v58 }
 0x34d   :  { %v1025_v4 = vsel %vm1009_vm2, %v4378_v24, 128.0 }
 0x34e   :  { %1048 = vmin.xlane.f32.xlu2 %v1025_v4 }
 0x353   :  { %v987_v41 = vpop.xlane.xlu1 %986 }
 0x354   :  { %vm1010_vm15 = vcmp.ge.f32.partialorder %v5100_v37, %v987_v41 }
 0x355   :  { %v1026_v16 = vsel %vm1010_vm15, %v4378_v24, 128.0 }
 0x356   :  { %1050 = vmin.xlane.f32.xlu2 %v1026_v16 }
 0x35b   :  { %v989_v30 = vpop.xlane.xlu1 %988 }
 0x35c   :  { %vm1011_vm4 = vcmp.ge.f32.partialorder %v5115_v40, %v989_v30 }
 0x35d   :  { %v1027_v3 = vsel %vm1011_vm4, %v4378_v24, 128.0 }
 0x35e   :  { %1052 = vmin.xlane.f32.xlu2 %v1027_v3 }
 0x363   :  { %v991_v62 = vpop.xlane.xlu1 %990 }
 0x364   :  { %vm1012_vm3 = vcmp.ge.f32.partialorder %v5130_v46, %v991_v62 }
 0x365   :  { %v1028_v58 = vsel %vm1012_vm3, %v4378_v24, 128.0 }
 0x366   :  { %1054 = vmin.xlane.f32.xlu2 %v1028_v58 }
 0x36b   :  { %v993_v38 = vpop.xlane.xlu1 %992 }
 0x36c   :  { %vm1013_vm2 = vcmp.ge.f32.partialorder %v5145_v20, %v993_v38 }
 0x36d   :  { %v1029_v4 = vsel %vm1013_vm2, %v4378_v24, 128.0 }
 0x36e   :  { %1056 = vmin.xlane.f32.xlu2 %v1029_v4  ;;  %v37_v4 = vld [vmem:[%s8220_s3 + $0x8] sm:$0xff] }
 0x36f   :  { %422 = vmatpush.msrb.mxu2 %v37_v4  ;;  %v4234_v4 = vld [vmem:[%s8221_s0 + $0x8] sm:$0xff] }
 0x371   :  { %1403 = vmatpush.msra.mxu2 %v4553_v59 }
 0x373   :  { %v995_v41 = vpop.xlane.xlu1 %994  ;;  %v5245_v16 = vpop.xlane.xlu2 %1036  ;;  %1404 = vmatpush.msra.mxu2 %v4545_v49 }
 0x374   :  { %8510 = vst [vmem:[#allocation37_spill] sm:$0xff] %v5245_v16  ;;  %vm1067_vm15 = vcmp.eq.f32.partialorder %v4378_v24, %v5245_v16  ;;  %vm1014_vm4 = vcmp.ge.f32.partialorder %v5162_v8, %v995_v41  ;;  %v4233_v41 = vld [vmem:[%s8221_s0] sm:$0xff] }
 0x375   :  { %3870 = vmatmul.msk.f32.gmra.mxu1 %vm1067_vm15, %v8509_v0  ;;  %v1030_v62 = vsel %vm1014_vm4, %v4378_v24, 128.0  ;;  %v5259_v30 = vsel %vm1067_vm15, -inf, %v4988_v35  ;;  %3773 = vmatmul.msk.f32.vlgmr.msrb.gmra.mxu2 %vm77_vm0, %v4233_v41 }
 0x376   :  { %1058 = vmin.xlane.f32.xlu2 %v1030_v62  ;;  %1229 = vmax.xlane.f32.xlu0 %v5259_v30 }
 0x377   :  { %1405 = vmatpush.msra.mxu2 %v4536_v36 }
 0x379   :  { %1406 = vmatpush.msra.mxu2 %v4527_v12 }
 0x37b   :  { %v997_v38 = vpop.xlane.xlu1 %996  ;;  %v5262_v3 = vpop.xlane.xlu2 %1038  ;;  %1407 = vmatpush.msra.mxu2 %v4517_v63 }
 0x37c   :  { %8511 = vst [vmem:[#allocation38_spill] sm:$0xff] %v5262_v3  ;;  %vm8428_vm3 = vcmp.eq.f32.partialorder %v4378_v24, %v5262_v3  ;;  %vm1015_vm2 = vcmp.ge.f32.partialorder %v5179_v32, %v997_v38 }
 0x37d   :  { %3871 = vmatmul.msk.f32.gmra.mxu1 %vm8428_vm3, %v8509_v0  ;;  %v1031_v58 = vsel %vm1015_vm2, %v4378_v24, 128.0  ;;  %v5276_v35 = vsel %vm8428_vm3, -inf, %v5005_v15  ;;  %3774 = vmatmul.msk.f32.gmra.mxu2 %vm77_vm0, %v4234_v4  ;;  %v4235_v4 = vld [vmem:[%s8221_s0 + $0x10] sm:$0xff] }
 0x37e   :  { %1060 = vmin.xlane.f32.xlu2 %v1031_v58  ;;  %1231 = vmax.xlane.f32.xlu0 %v5276_v35 }
 0x37f   :  { %1408 = vmatpush.msra.mxu2 %v4508_v53 }
 0x381   :  { %1409 = vmatpush.msra.mxu2 %v4499_v44 }
 0x383   :  { %v999_v62 = vpop.xlane.xlu1 %998  ;;  %v5287_v38 = vpop.xlane.xlu2 %1040  ;;  %1410 = vmatpush.msra.mxu2 %v4491_v34 }
 0x384   :  { %8512 = vst [vmem:[#allocation39_spill] sm:$0xff] %v5287_v38  ;;  %vm8275_vm4 = vcmp.eq.f32.partialorder %v4378_v24, %v5287_v38  ;;  %vm1016_vm2 = vcmp.ge.f32.partialorder %v5196_v42, %v999_v62 }
 0x385   :  { %3872 = vmatmul.msk.f32.gmra.mxu1 %vm8275_vm4, %v8509_v0  ;;  %v1032_v15 = vsel %vm1016_vm2, %v4378_v24, 128.0  ;;  %v5302_v58 = vsel %vm8275_vm4, -inf, %v5022_v51  ;;  %3775 = vmatmul.msk.f32.gmra.mxu2 %vm77_vm0, %v4235_v4 }
 0x386   :  { %1062 = vmin.xlane.f32.xlu2 %v1032_v15  ;;  %1233 = vmax.xlane.f32.xlu0 %v5302_v58 }
 0x387   :  { %1411 = vmatpush.msra.mxu2 %v4488_v27 }
 0x389   :  { %1412 = vmatpush.msra.mxu2 %v4485_v25 }
 0x38b   :  { %v1001_v41 = vpop.xlane.xlu1 %1000  ;;  %v5312_v62 = vpop.xlane.xlu2 %1042  ;;  %1413 = vmatpush.msra.mxu2 %v4483_v23 }
 0x38c   :  { %8513 = vst [vmem:[#allocation40_spill] sm:$0xff] %v5312_v62  ;;  %vm8264_vm2 = vcmp.eq.f32.partialorder %v4378_v24, %v5312_v62  ;;  %vm1017_vm8 = vcmp.ge.f32.partialorder %v5213_v55, %v1001_v41 }
 0x38d   :  { %3873 = vmatmul.msk.f32.gmra.mxu1 %vm8264_vm2, %v8509_v0  ;;  %v1033_v51 = vsel %vm1017_vm8, %v4378_v24, 128.0  ;;  %v5327_v15 = vsel %vm8264_vm2, -inf, %v5039_v56  ;;  %1414 = vmatpush.msra.mxu2 %v4481_v22 }
 0x38e   :  { %1064 = vmin.xlane.f32.xlu2 %v1033_v51  ;;  %1235 = vmax.xlane.f32.xlu0 %v5327_v15  ;;  %v4236_v51 = vld [vmem:[%s8221_s0 + $0x18] sm:$0xff] }
 0x38f   :  { %3776 = vmatmul.msk.f32.gmra.mxu2 %vm77_vm0, %v4236_v51  ;;  %v4237_v51 = vld [vmem:[%s8221_s0 + $0x20] sm:$0xff] }
 0x390   :  { %1415 = vmatpush.msra.mxu2 %v4479_v21 }
 0x392   :  { %1416 = vmatpush.msra.mxu2 %v4477_v19 }
 0x393   :  { %v5337_v41 = vpop.xlane.xlu2 %1044 }
 0x394   :  { %8514 = vst [vmem:[#allocation41_spill] sm:$0xff] %v5337_v41  ;;  %vm8262_vm8 = vcmp.eq.f32.partialorder %v4378_v24, %v5337_v41  ;;  %1417 = vmatpush.msra.mxu2 %v4475_v18 }
 0x395   :  { %3874 = vmatmul.msk.f32.gmra.mxu1 %vm8262_vm8, %v8509_v0  ;;  %v5350_v56 = vsel %vm8262_vm8, -inf, %v5053_v48 }
 0x396   :  { %1237 = vmax.xlane.f32.xlu0 %v5350_v56  ;;  %1418 = vmatpush.msra.mxu2 %v4472_v17 }
 0x397   :  { %3777 = vmatmul.msk.f32.gmra.mxu2 %vm77_vm0, %v4237_v51 }
 0x398   :  { %2415 = vmatpush.msrb.mxu2 %v4553_v59 }
 0x39a   :  { %2416 = vmatpush.msrb.mxu2 %v4545_v49 }
 0x39b   :  { %v5360_v4 = vpop.xlane.xlu2 %1046 }
 0x39c   :  { %8515 = vst [vmem:[#allocation42_spill] sm:$0xff] %v5360_v4  ;;  %vm8263_vm8 = vcmp.eq.f32.partialorder %v4378_v24, %v5360_v4  ;;  %2417 = vmatpush.msrb.mxu2 %v4536_v36  ;;  %v4239_v36 = vld [vmem:[%s8221_s0 + $0x30] sm:$0xff] }
 0x39d   :  { %3875 = vmatmul.msk.f32.gmra.mxu1 %vm8263_vm8, %v8509_v0  ;;  %v5373_v48 = vsel %vm8263_vm8, -inf, %v5068_v6  ;;  %v4238_v6 = vld [vmem:[%s8221_s0 + $0x28] sm:$0xff] }
 0x39e   :  { %1239 = vmax.xlane.f32.xlu0 %v5373_v48  ;;  %2418 = vmatpush.msrb.mxu2 %v4527_v12  ;;  %v4244_v12 = vld [vmem:[%s8221_s0 + $0x58] sm:$0xff] }
 0x39f   :  { %3778 = vmatmul.msk.f32.gmra.mxu2 %vm77_vm0, %v4238_v6 }
 0x3a0   :  { %2419 = vmatpush.msrb.mxu2 %v4517_v63 }
 0x3a2   :  { %2420 = vmatpush.msrb.mxu2 %v4508_v53 }
 0x3a4   :  { %2421 = vmatpush.msrb.mxu2 %v4499_v44  ;;  %v4240_v44 = vld [vmem:[%s8221_s0 + $0x38] sm:$0xff] }
 0x3a6   :  { %2422 = vmatpush.msrb.mxu2 %v4491_v34 }
 0x3a7   :  { %3779 = vmatmul.msk.f32.gmra.mxu2 %vm77_vm0, %v4239_v36 }
 0x3a8   :  { %2423 = vmatpush.msrb.mxu2 %v4488_v27 }
 0x3aa   :  { %2424 = vmatpush.msrb.mxu2 %v4485_v25  ;;  %v4243_v25 = vld [vmem:[%s8221_s0 + $0x50] sm:$0xff] }
 0x3ac   :  { %2425 = vmatpush.msrb.mxu2 %v4483_v23 }
 0x3ae   :  { %2426 = vmatpush.msrb.mxu2 %v4481_v22  ;;  %v4241_v22 = vld [vmem:[%s8221_s0 + $0x40] sm:$0xff] }
 0x3af   :  { %3780 = vmatmul.msk.f32.gmra.mxu2 %vm77_vm0, %v4240_v44  ;;  %v4247_v44 = vld [vmem:[%s8221_s0 + $0x70] sm:$0xff] }
 0x3b0   :  { %2427 = vmatpush.msrb.mxu2 %v4479_v21 }
 0x3b2   :  { %2428 = vmatpush.msrb.mxu2 %v4477_v19 }
 0x3b4   :  { %2429 = vmatpush.msrb.mxu2 %v4475_v18  ;;  %v4242_v18 = vld [vmem:[%s8221_s0 + $0x48] sm:$0xff] }
 0x3b6   :  { %2430 = vmatpush.msrb.mxu2 %v4472_v17 }
 0x3b7   :  { %3781 = vmatmul.msk.f32.gmra.mxu2 %vm77_vm0, %v4241_v22 }
 0x3b9   :  { %v1228_v34 = vpop.xlane.xlu0 %1227 }
 0x3ba   :  { %vm1259_vm8 = vcmp.ge.f32.partialorder %v5232_v50, %v1228_v34 }
 0x3bb   :  { %v1275_v53 = vsel %vm1259_vm8, %v4378_v24, 128.0 }
 0x3bc   :  { %1291 = vmin.xlane.f32.xlu1 %v1275_v53 }
 0x3bf   :  { %3782 = vmatmul.msk.f32.gmra.mxu2 %vm77_vm0, %v4242_v18  ;;  %v4248_v18 = vld [vmem:[%s8221_s0 + $0x78] sm:$0xff] }
 0x3c1   :  { %v5416_v23 = vpop.xlane.xlu2 %1048 }
 0x3c2   :  { %8516 = vst [vmem:[#allocation43_spill] sm:$0xff] %v5416_v23  ;;  %vm8265_vm2 = vcmp.eq.f32.partialorder %v4378_v24, %v5416_v23 }
 0x3c3   :  { %3876 = vmatmul.msk.f32.gmra.mxu1 %vm8265_vm2, %v8509_v0  ;;  %v5428_v17 = vsel %vm8265_vm2, -inf, %v5085_v5  ;;  %v4245_v5 = vld [vmem:[%s8221_s0 + $0x60] sm:$0xff] }
 0x3c4   :  { %1241 = vmax.xlane.f32.xlu0 %v5428_v17 }
 0x3c7   :  { %3783 = vmatmul.msk.f32.gmra.mxu2 %vm77_vm0, %v4243_v25 }
 0x3c9   :  { %v5435_v19 = vpop.xlane.xlu2 %1050 }
 0x3ca   :  { %8517 = vst [vmem:[#allocation44_spill] sm:$0xff] %v5435_v19  ;;  %vm8266_vm8 = vcmp.eq.f32.partialorder %v4378_v24, %v5435_v19 }
 0x3cb   :  { %3877 = vmatmul.msk.f32.gmra.mxu1 %vm8266_vm8, %v8509_v0  ;;  %v5447_v21 = vsel %vm8266_vm8, -inf, %v5100_v37 }
 0x3cc   :  { %1243 = vmax.xlane.f32.xlu0 %v5447_v21 }
 0x3cf   :  { %3784 = vmatmul.msk.f32.gmra.mxu2 %vm77_vm0, %v4244_v12 }
 0x3d1   :  { %v5454_v27 = vpop.xlane.xlu2 %1052 }
 0x3d2   :  { %8518 = vst [vmem:[#allocation45_spill] sm:$0xff] %v5454_v27  ;;  %vm8267_vm2 = vcmp.eq.f32.partialorder %v4378_v24, %v5454_v27 }
 0x3d3   :  { %3878 = vmatmul.msk.f32.gmra.mxu1 %vm8267_vm2, %v8509_v0  ;;  %v5466_v63 = vsel %vm8267_vm2, -inf, %v5115_v40 }
 0x3d4   :  { %1245 = vmax.xlane.f32.xlu0 %v5466_v63 }
 0x3d7   :  { %3785 = vmatmul.msk.f32.gmra.mxu2 %vm77_vm0, %v4245_v5 }
 0x3d9   :  { %v5473_v49 = vpop.xlane.xlu2 %1054 }
 0x3da   :  { %8519 = vst [vmem:[#allocation46_spill] sm:$0xff] %v5473_v49  ;;  %vm8268_vm8 = vcmp.eq.f32.partialorder %v4378_v24, %v5473_v49 }
 0x3db   :  { %3879 = vmatmul.msk.f32.gmra.mxu1 %vm8268_vm8, %v8509_v0  ;;  %v5485_v59 = vsel %vm8268_vm8, -inf, %v5130_v46  ;;  %v4246_v46 = vld [vmem:[%s8221_s0 + $0x68] sm:$0xff] }
 0x3dc   :  { %1247 = vmax.xlane.f32.xlu0 %v5485_v59 }
 0x3df   :  { %3786 = vmatmul.msk.f32.gmra.mxu2 %vm77_vm0, %v4246_v46 }
 0x3e1   :  { %v5492_v37 = vpop.xlane.xlu2 %1056 }
 0x3e2   :  { %8520 = vst [vmem:[#allocation47_spill] sm:$0xff] %v5492_v37  ;;  %vm8270_vm2 = vcmp.eq.f32.partialorder %v4378_v24, %v5492_v37 }
 0x3e3   :  { %3880 = vmatmul.msk.f32.gmra.mxu1 %vm8270_vm2, %v8509_v0  ;;  %v5504_v40 = vsel %vm8270_vm2, -inf, %v5145_v20 }
 0x3e4   :  { %1249 = vmax.xlane.f32.xlu0 %v5504_v40 }
 0x3e7   :  { %3787 = vmatmul.msk.f32.gmra.mxu2 %vm77_vm0, %v4247_v44 }
 0x3e9   :  { %v1230_v51 = vpop.xlane.xlu0 %1229  ;;  %v5511_v6 = vpop.xlane.xlu2 %1058 }
 0x3ea   :  { %8521 = vst [vmem:[#allocation48_spill] sm:$0xff] %v5511_v6  ;;  %vm8271_vm8 = vcmp.eq.f32.partialorder %v4378_v24, %v5511_v6  ;;  %vm1260_vm1 = vcmp.ge.f32.partialorder %v5259_v30, %v1230_v51 }
 0x3eb   :  { %3881 = vmatmul.msk.f32.gmra.mxu1 %vm8271_vm8, %v8509_v0  ;;  %v1276_v20 = vsel %vm1260_vm1, %v4378_v24, 128.0  ;;  %v5525_v36 = vsel %vm8271_vm8, -inf, %v5162_v8 }
 0x3ec   :  { %1293 = vmin.xlane.f32.xlu1 %v1276_v20  ;;  %1251 = vmax.xlane.f32.xlu0 %v5525_v36 }
 0x3ef   :  { %3788 = vmatmul.msk.f32.gmra.mxu2 %vm77_vm0, %v4248_v18 }
 0x3f1   :  { %v1232_v34 = vpop.xlane.xlu0 %1231  ;;  %v5532_v53 = vpop.xlane.xlu2 %1060 }
 0x3f2   :  { %8522 = vst [vmem:[#allocation49_spill] sm:$0xff] %v5532_v53  ;;  %vm8272_vm1 = vcmp.eq.f32.partialorder %v4378_v24, %v5532_v53  ;;  %vm1261_vm2 = vcmp.ge.f32.partialorder %v5276_v35, %v1232_v34 }
 0x3f3   :  { %3882 = vmatmul.msk.f32.gmra.mxu1 %vm8272_vm1, %v8509_v0  ;;  %v1277_v8 = vsel %vm1261_vm2, %v4378_v24, 128.0  ;;  %v5546_v22 = vsel %vm8272_vm1, -inf, %v5179_v32 }
 0x3f4   :  { %1295 = vmin.xlane.f32.xlu1 %v1277_v8  ;;  %1253 = vmax.xlane.f32.xlu0 %v5546_v22 }
 0x3f9   :  { %v1234_v25 = vpop.xlane.xlu0 %1233  ;;  %v5553_v12 = vpop.xlane.xlu2 %1062 }
 0x3fa   :  { %8523 = vst [vmem:[#allocation50_spill] sm:$0xff] %v5553_v12  ;;  %vm8273_vm2 = vcmp.eq.f32.partialorder %v4378_v24, %v5553_v12  ;;  %vm1262_vm8 = vcmp.ge.f32.partialorder %v5302_v58, %v1234_v25  ;;  %v5716_v12 = vpop.f32.mrf.mxu2 }
 0x3fb   :  { %3883 = vmatmul.msk.f32.gmra.mxu1 %vm8273_vm2, %v8509_v0  ;;  %v1278_v32 = vsel %vm1262_vm8, %v4378_v24, 128.0  ;;  %v5567_v5 = vsel %vm8273_vm2, -inf, %v5196_v42 }
 0x3fc   :  { %1297 = vmin.xlane.f32.xlu1 %v1278_v32  ;;  %1255 = vmax.xlane.f32.xlu0 %v5567_v5 }
 0x401   :  { %v1236_v46 = vpop.xlane.xlu0 %1235  ;;  %v5570_v51 = vpop.xlane.xlu2 %1064 }
 0x402   :  { %8524 = vst [vmem:[#allocation51_spill] sm:$0xff] %v5570_v51  ;;  %vm8274_vm0 = vcmp.eq.f32.partialorder %v4378_v24, %v5570_v51  ;;  %vm1263_vm1 = vcmp.ge.f32.partialorder %v5327_v15, %v1236_v46 }
 0x403   :  { %3884 = vmatmul.msk.f32.gmra.mxu1 %vm8274_vm0, %v8509_v0  ;;  %v1279_v20 = vsel %vm1263_vm1, %v4378_v24, 128.0  ;;  %v5584_v42 = vsel %vm8274_vm0, -inf, %v5213_v55 }
 0x404   :  { %1299 = vmin.xlane.f32.xlu1 %v1279_v20  ;;  %1257 = vmax.xlane.f32.xlu0 %v5584_v42 }
 0x409   :  { %v1238_v44 = vpop.xlane.xlu0 %1237 }
 0x40a   :  { %vm1264_vm8 = vcmp.ge.f32.partialorder %v5350_v56, %v1238_v44 }
 0x40b   :  { %v1280_v34 = vsel %vm1264_vm8, %v4378_v24, 128.0 }
 0x40c   :  { %1301 = vmin.xlane.f32.xlu1 %v1280_v34 }
 0x411   :  { %v1240_v8 = vpop.xlane.xlu0 %1239 }
 0x412   :  { %vm1265_vm2 = vcmp.ge.f32.partialorder %v5373_v48, %v1240_v8 }
 0x413   :  { %v1281_v18 = vsel %vm1265_vm2, %v4378_v24, 128.0 }
 0x414   :  { %1303 = vmin.xlane.f32.xlu1 %v1281_v18 }
 0x42f   :  { %v5591_v25 = vpop.xlane.xlu1 %1291 }
 0x430   :  { %8525 = vst [vmem:[#allocation52_spill] sm:$0xff] %v5591_v25  ;;  %vm1323_vm1 = vcmp.eq.f32.partialorder %v4378_v24, %v5591_v25 }
 0x431   :  { %3901 = vmatmul.msk.f32.vlgmr.msra.gmra.mxu2 %vm1323_vm1, %v8509_v0  ;;  %v5603_v55 = vsel %vm1323_vm1, -inf, %v5232_v50 }
 0x432   :  { %1484 = vmax.xlane.f32.xlu2 %v5603_v55 }
 0x437   :  { %v1242_v32 = vpop.xlane.xlu0 %1241 }
 0x438   :  { %vm1266_vm2 = vcmp.ge.f32.partialorder %v5428_v17, %v1242_v32 }
 0x439   :  { %v1282_v46 = vsel %vm1266_vm2, %v4378_v24, 128.0 }
 0x43a   :  { %1305 = vmin.xlane.f32.xlu1 %v1282_v46 }
 0x43f   :  { %v1244_v20 = vpop.xlane.xlu0 %1243 }
 0x440   :  { %vm1267_vm8 = vcmp.ge.f32.partialorder %v5447_v21, %v1244_v20 }
 0x441   :  { %v1283_v44 = vsel %vm1267_vm8, %v4378_v24, 128.0 }
 0x442   :  { %1307 = vmin.xlane.f32.xlu1 %v1283_v44 }
 0x447   :  { %v1246_v34 = vpop.xlane.xlu0 %1245 }
 0x448   :  { %vm1268_vm0 = vcmp.ge.f32.partialorder %v5466_v63, %v1246_v34 }
 0x449   :  { %v1284_v50 = vsel %vm1268_vm0, %v4378_v24, 128.0 }
 0x44a   :  { %1309 = vmin.xlane.f32.xlu1 %v1284_v50 }
 0x44f   :  { %v1248_v8 = vpop.xlane.xlu0 %1247 }
 0x450   :  { %vm1269_vm4 = vcmp.ge.f32.partialorder %v5485_v59, %v1248_v8 }
 0x451   :  { %v1285_v18 = vsel %vm1269_vm4, %v4378_v24, 128.0 }
 0x452   :  { %1311 = vmin.xlane.f32.xlu1 %v1285_v18 }
 0x457   :  { %v1250_v32 = vpop.xlane.xlu0 %1249 }
 0x458   :  { %vm1270_vm2 = vcmp.ge.f32.partialorder %v5504_v40, %v1250_v32 }
 0x459   :  { %v1286_v46 = vsel %vm1270_vm2, %v4378_v24, 128.0 }
 0x45a   :  { %1313 = vmin.xlane.f32.xlu1 %v1286_v46 }
 0x45f   :  { %v5616_v20 = vpop.xlane.xlu1 %1293  ;;  %v1252_v44 = vpop.xlane.xlu0 %1251 }
 0x460   :  { %8526 = vst [vmem:[#allocation53_spill] sm:$0xff] %v5616_v20  ;;  %vm1271_vm8 = vcmp.ge.f32.partialorder %v5525_v36, %v1252_v44  ;;  %vm1324_vm0 = vcmp.eq.f32.partialorder %v4378_v24, %v5616_v20 }
 0x461   :  { %3902 = vmatmul.msk.f32.gmra.mxu2 %vm1324_vm0, %v8509_v0  ;;  %v5629_v34 = vsel %vm1324_vm0, -inf, %v5259_v30  ;;  %v1287_v50 = vsel %vm1271_vm8, %v4378_v24, 128.0 }
 0x462   :  { %1486 = vmax.xlane.f32.xlu2 %v5629_v34  ;;  %1315 = vmin.xlane.f32.xlu1 %v1287_v50 }
 0x467   :  { %v5633_v8 = vpop.xlane.xlu1 %1295  ;;  %v1254_v18 = vpop.xlane.xlu0 %1253 }
 0x468   :  { %8527 = vst [vmem:[#allocation54_spill] sm:$0xff] %v5633_v8  ;;  %vm1272_vm4 = vcmp.ge.f32.partialorder %v5546_v22, %v1254_v18  ;;  %vm8425_vm2 = vcmp.eq.f32.partialorder %v4378_v24, %v5633_v8 }
 0x469   :  { %3903 = vmatmul.msk.f32.gmra.mxu2 %vm8425_vm2, %v8509_v0  ;;  %v5646_v30 = vsel %vm8425_vm2, -inf, %v5276_v35  ;;  %v1288_v32 = vsel %vm1272_vm4, %v4378_v24, 128.0 }
 0x46a   :  { %1488 = vmax.xlane.f32.xlu2 %v5646_v30  ;;  %1317 = vmin.xlane.f32.xlu1 %v1288_v32 }
 0x46f   :  { %v5650_v46 = vpop.xlane.xlu1 %1297  ;;  %v1256_v44 = vpop.xlane.xlu0 %1255 }
 0x470   :  { %8528 = vst [vmem:[#allocation55_spill] sm:$0xff] %v5650_v46  ;;  %vm8300_vm8 = vcmp.eq.f32.partialorder %v4378_v24, %v5650_v46  ;;  %vm1273_vm11 = vcmp.ge.f32.partialorder %v5567_v5, %v1256_v44 }
 0x471   :  { %3904 = vmatmul.msk.f32.gmra.mxu2 %vm8300_vm8, %v8509_v0  ;;  %v5663_v35 = vsel %vm8300_vm8, -inf, %v5302_v58  ;;  %v1289_v50 = vsel %vm1273_vm11, %v4378_v24, 128.0 }
 0x472   :  { %1490 = vmax.xlane.f32.xlu2 %v5663_v35  ;;  %1319 = vmin.xlane.f32.xlu1 %v1289_v50 }
 0x477   :  { %v5667_v18 = vpop.xlane.xlu1 %1299  ;;  %v1258_v32 = vpop.xlane.xlu0 %1257 }
 0x478   :  { %8529 = vst [vmem:[#allocation56_spill] sm:$0xff] %v5667_v18  ;;  %vm8282_vm4 = vcmp.eq.f32.partialorder %v4378_v24, %v5667_v18  ;;  %vm1274_vm14 = vcmp.ge.f32.partialorder %v5584_v42, %v1258_v32 }
 0x479   :  { %3905 = vmatmul.msk.f32.gmra.mxu2 %vm8282_vm4, %v8509_v0  ;;  %v5680_v58 = vsel %vm8282_vm4, -inf, %v5327_v15  ;;  %v1290_v44 = vsel %vm1274_vm14, %v4378_v24, 128.0 }
 0x47a   :  { %1492 = vmax.xlane.f32.xlu2 %v5680_v58  ;;  %1321 = vmin.xlane.f32.xlu1 %v1290_v44 }
 0x47f   :  { %v5684_v50 = vpop.xlane.xlu1 %1301 }
 0x480   :  { %8530 = vst [vmem:[#allocation57_spill] sm:$0xff] %v5684_v50  ;;  %vm8278_vm11 = vcmp.eq.f32.partialorder %v4378_v24, %v5684_v50 }
 0x481   :  { %3906 = vmatmul.msk.f32.gmra.mxu2 %vm8278_vm11, %v8509_v0  ;;  %v5696_v15 = vsel %vm8278_vm11, -inf, %v5350_v56 }
 0x482   :  { %1494 = vmax.xlane.f32.xlu2 %v5696_v15 }
 0x487   :  { %v5699_v32 = vpop.xlane.xlu1 %1303 }
 0x488   :  { %8531 = vst [vmem:[#allocation58_spill] sm:$0xff] %v5699_v32  ;;  %vm8295_vm14 = vcmp.eq.f32.partialorder %v4378_v24, %v5699_v32 }
 0x489   :  { %3907 = vmatmul.msk.f32.gmra.mxu2 %vm8295_vm14, %v8509_v0  ;;  %v5711_v44 = vsel %vm8295_vm14, -inf, %v5373_v48 }
 0x48a   :  { %1496 = vmax.xlane.f32.xlu2 %v5711_v44 }
 0x4a5   :  { %v1485_v56 = vpop.xlane.xlu2 %1484 }
 0x4a6   :  { %vm1516_vm11 = vcmp.ge.f32.partialorder %v5603_v55, %v1485_v56  ;;  %v5733_v56 = vpop.f32.mrf.mxu2 }
 0x4a7   :  { %v1532_v51 = vsel %vm1516_vm11, %v4378_v24, 128.0 }
 0x4a8   :  { %1548 = vmin.xlane.f32.xlu0 %v1532_v51 }
 0x4ad   :  { %v5718_v53 = vpop.xlane.xlu1 %1305 }
 0x4ae   :  { %8532 = vst [vmem:[#allocation59_spill] sm:$0xff] %v5718_v53  ;;  %vm8285_vm4 = vcmp.eq.f32.partialorder %v4378_v24, %v5718_v53  ;;  %v5750_v6 = vpop.f32.mrf.mxu2 }
 0x4af   :  { %3908 = vmatmul.msk.f32.gmra.mxu2 %vm8285_vm4, %v8509_v0  ;;  %v5730_v48 = vsel %vm8285_vm4, -inf, %v5428_v17 }
 0x4b0   :  { %1498 = vmax.xlane.f32.xlu2 %v5730_v48 }
 0x4b5   :  { %v5735_v51 = vpop.xlane.xlu1 %1307 }
 0x4b6   :  { %8533 = vst [vmem:[#allocation60_spill] sm:$0xff] %v5735_v51  ;;  %vm8288_vm11 = vcmp.eq.f32.partialorder %v4378_v24, %v5735_v51  ;;  %v5769_v52 = vpop.f32.mrf.mxu2 }
 0x4b7   :  { %3909 = vmatmul.msk.f32.gmra.mxu2 %vm8288_vm11, %v8509_v0  ;;  %v5747_v17 = vsel %vm8288_vm11, -inf, %v5447_v21 }
 0x4b8   :  { %1500 = vmax.xlane.f32.xlu2 %v5747_v17 }
 0x4bd   :  { %v5752_v37 = vpop.xlane.xlu1 %1309 }
 0x4be   :  { %8534 = vst [vmem:[#allocation61_spill] sm:$0xff] %v5752_v37  ;;  %vm8290_vm4 = vcmp.eq.f32.partialorder %v4378_v24, %v5752_v37 }
 0x4bf   :  { %3910 = vmatmul.msk.f32.gmra.mxu2 %vm8290_vm4, %v8509_v0  ;;  %v5764_v21 = vsel %vm8290_vm4, -inf, %v5466_v63 }
 0x4c0   :  { %1502 = vmax.xlane.f32.xlu2 %v5764_v21 }
 0x4c5   :  { %v5767_v49 = vpop.xlane.xlu1 %1311 }
 0x4c6   :  { %8535 = vst [vmem:[#allocation62_spill] sm:$0xff] %v5767_v49  ;;  %vm8294_vm11 = vcmp.eq.f32.partialorder %v4378_v24, %v5767_v49 }
 0x4c7   :  { %3911 = vmatmul.msk.f32.gmra.mxu2 %vm8294_vm11, %v8509_v0  ;;  %v5781_v63 = vsel %vm8294_vm11, -inf, %v5485_v59  ;;  %v5798_v59 = vpop.f32.mrf.mxu2 }
 0x4c8   :  { %1504 = vmax.xlane.f32.xlu2 %v5781_v63 }
 0x4cd   :  { %v5784_v37 = vpop.xlane.xlu1 %1313 }
 0x4ce   :  { %8536 = vst [vmem:[#allocation63_spill] sm:$0xff] %v5784_v37  ;;  %vm8299_vm4 = vcmp.eq.f32.partialorder %v4378_v24, %v5784_v37 }
 0x4cf   :  { %3912 = vmatmul.msk.f32.gmra.mxu2 %vm8299_vm4, %v8509_v0  ;;  %v5796_v27 = vsel %vm8299_vm4, -inf, %v5504_v40  ;;  %v5818_v43 = vpop.f32.mrf.mxu2 }
 0x4d0   :  { %1506 = vmax.xlane.f32.xlu2 %v5796_v27 }
 0x4d5   :  { %v5801_v49 = vpop.xlane.xlu1 %1315  ;;  %v1487_v10 = vpop.xlane.xlu2 %1486 }
 0x4d6   :  { %8537 = vst [vmem:[#allocation64_spill] sm:$0xff] %v5801_v49  ;;  %vm8303_vm11 = vcmp.eq.f32.partialorder %v4378_v24, %v5801_v49  ;;  %vm1517_vm14 = vcmp.ge.f32.partialorder %v5629_v34, %v1487_v10 }
 0x4d7   :  { %3913 = vmatmul.msk.f32.gmra.mxu2 %vm8303_vm11, %v8509_v0  ;;  %v5814_v40 = vsel %vm8303_vm11, -inf, %v5525_v36  ;;  %v1533_v37 = vsel %vm1517_vm14, %v4378_v24, 128.0  ;;  %v5837_v49 = vpop.f32.mrf.mxu2 }
 0x4d8   :  { %1508 = vmax.xlane.f32.xlu2 %v5814_v40  ;;  %1550 = vmin.xlane.f32.xlu0 %v1533_v37 }
 0x4dd   :  { %v5820_v51 = vpop.xlane.xlu1 %1317  ;;  %v1489_v10 = vpop.xlane.xlu2 %1488 }
 0x4de   :  { %8538 = vst [vmem:[#allocation65_spill] sm:$0xff] %v5820_v51  ;;  %vm8306_vm4 = vcmp.eq.f32.partialorder %v4378_v24, %v5820_v51  ;;  %vm1518_vm8 = vcmp.ge.f32.partialorder %v5646_v30, %v1489_v10 }
 0x4df   :  { %3914 = vmatmul.msk.f32.gmra.mxu2 %vm8306_vm4, %v8509_v0  ;;  %v5833_v37 = vsel %vm8306_vm4, -inf, %v5546_v22  ;;  %v1534_v36 = vsel %vm1518_vm8, %v4378_v24, 128.0 }
 0x4e0   :  { %1510 = vmax.xlane.f32.xlu2 %v5833_v37  ;;  %1552 = vmin.xlane.f32.xlu0 %v1534_v36 }
 0x4e5   :  { %v5839_v19 = vpop.xlane.xlu1 %1319  ;;  %v1491_v10 = vpop.xlane.xlu2 %1490 }
 0x4e6   :  { %8539 = vst [vmem:[#allocation66_spill] sm:$0xff] %v5839_v19  ;;  %vm8309_vm14 = vcmp.eq.f32.partialorder %v4378_v24, %v5839_v19  ;;  %vm1519_vm11 = vcmp.ge.f32.partialorder %v5663_v35, %v1491_v10  ;;  %v5861_v10 = vpop.f32.mrf.mxu2 }
 0x4e7   :  { %3915 = vmatmul.msk.f32.gmra.mxu2 %vm8309_vm14, %v8509_v0  ;;  %v5852_v22 = vsel %vm8309_vm14, -inf, %v5567_v5  ;;  %v1535_v36 = vsel %vm1519_vm11, %v4378_v24, 128.0 }
 0x4e8   :  { %1512 = vmax.xlane.f32.xlu2 %v5852_v22  ;;  %1554 = vmin.xlane.f32.xlu0 %v1535_v36 }
 0x4ed   :  { %v5856_v51 = vpop.xlane.xlu1 %1321  ;;  %v1493_v29 = vpop.xlane.xlu2 %1492 }
 0x4ee   :  { %8540 = vst [vmem:[#allocation67_spill] sm:$0xff] %v5856_v51  ;;  %vm8312_vm8 = vcmp.eq.f32.partialorder %v4378_v24, %v5856_v51  ;;  %vm1520_vm4 = vcmp.ge.f32.partialorder %v5680_v58, %v1493_v29 }
 0x4ef   :  { %3916 = vmatmul.msk.f32.gmra.mxu2 %vm8312_vm8, %v8509_v0  ;;  %v5871_v5 = vsel %vm8312_vm8, -inf, %v5584_v42  ;;  %v1536_v36 = vsel %vm1520_vm4, %v4378_v24, 128.0 }
 0x4f0   :  { %1514 = vmax.xlane.f32.xlu2 %v5871_v5  ;;  %1556 = vmin.xlane.f32.xlu0 %v1536_v36 }
 0x4f5   :  { %v1495_v19 = vpop.xlane.xlu2 %1494 }
 0x4f6   :  { %vm1521_vm11 = vcmp.ge.f32.partialorder %v5696_v15, %v1495_v19 }
 0x4f7   :  { %v1537_v29 = vsel %vm1521_vm11, %v4378_v24, 128.0 }
 0x4f8   :  { %1558 = vmin.xlane.f32.xlu0 %v1537_v29 }
 0x4fd   :  { %v1497_v13 = vpop.xlane.xlu2 %1496 }
 0x4fe   :  { %vm1522_vm14 = vcmp.ge.f32.partialorder %v5711_v44, %v1497_v13 }
 0x4ff   :  { %v1538_v53 = vsel %vm1522_vm14, %v4378_v24, 128.0 }
 0x500   :  { %1560 = vmin.xlane.f32.xlu0 %v1538_v53 }
 0x51b   :  { %v5879_v51 = vpop.xlane.xlu0 %1548 }
 0x51c   :  { %8541 = vst [vmem:[#allocation68_spill] sm:$0xff] %v5879_v51  ;;  %vm8314_vm4 = vcmp.eq.f32.partialorder %v4378_v24, %v5879_v51 }
 0x51d   :  { %3933 = vmatmul.msk.f32.vlgmr.msra.gmra.mxu3 %vm8314_vm4, %v8509_v0  ;;  %v5891_v19 = vsel %vm8314_vm4, -inf, %v5603_v55 }
 0x51e   :  { %1741 = vmax.xlane.f32.xlu1 %v5891_v19 }
 0x523   :  { %v1499_v13 = vpop.xlane.xlu2 %1498 }
 0x524   :  { %vm1523_vm14 = vcmp.ge.f32.partialorder %v5730_v48, %v1499_v13 }
 0x525   :  { %v1539_v53 = vsel %vm1523_vm14, %v4378_v24, 128.0 }
 0x526   :  { %1562 = vmin.xlane.f32.xlu0 %v1539_v53 }
 0x52b   :  { %v1501_v42 = vpop.xlane.xlu2 %1500 }
 0x52c   :  { %vm1524_vm11 = vcmp.ge.f32.partialorder %v5747_v17, %v1501_v42 }
 0x52d   :  { %v1540_v36 = vsel %vm1524_vm11, %v4378_v24, 128.0 }
 0x52e   :  { %1564 = vmin.xlane.f32.xlu0 %v1540_v36 }
 0x533   :  { %v1503_v29 = vpop.xlane.xlu2 %1502 }
 0x534   :  { %vm1525_vm8 = vcmp.ge.f32.partialorder %v5764_v21, %v1503_v29 }
 0x535   :  { %v1541_v55 = vsel %vm1525_vm8, %v4378_v24, 128.0 }
 0x536   :  { %1566 = vmin.xlane.f32.xlu0 %v1541_v55 }
 0x53b   :  { %v1505_v51 = vpop.xlane.xlu2 %1504 }
 0x53c   :  { %vm1526_vm4 = vcmp.ge.f32.partialorder %v5781_v63, %v1505_v51 }
 0x53d   :  { %v1542_v13 = vsel %vm1526_vm4, %v4378_v24, 128.0 }
 0x53e   :  { %1568 = vmin.xlane.f32.xlu0 %v1542_v13 }
 0x543   :  { %v1507_v23 = vpop.xlane.xlu2 %1506 }
 0x544   :  { %vm1527_vm14 = vcmp.ge.f32.partialorder %v5796_v27, %v1507_v23 }
 0x545   :  { %v1543_v53 = vsel %vm1527_vm14, %v4378_v24, 128.0 }
 0x546   :  { %1570 = vmin.xlane.f32.xlu0 %v1543_v53 }
 0x54b   :  { %v5904_v42 = vpop.xlane.xlu0 %1550  ;;  %v1509_v36 = vpop.xlane.xlu2 %1508 }
 0x54c   :  { %8542 = vst [vmem:[#allocation69_spill] sm:$0xff] %v5904_v42  ;;  %vm8352_vm11 = vcmp.eq.f32.partialorder %v4378_v24, %v5904_v42  ;;  %vm1528_vm8 = vcmp.ge.f32.partialorder %v5814_v40, %v1509_v36 }
 0x54d   :  { %v1544_v29 = vsel %vm1528_vm8, %v4378_v24, 128.0  ;;  %3934 = vmatmul.msk.f32.gmra.mxu3 %vm8352_vm11, %v8509_v0  ;;  %v5918_v23 = vsel %vm8352_vm11, -inf, %v5629_v34 }
 0x54e   :  { %1743 = vmax.xlane.f32.xlu1 %v5918_v23  ;;  %1572 = vmin.xlane.f32.xlu0 %v1544_v29 }
 0x553   :  { %v5921_v51 = vpop.xlane.xlu0 %1552  ;;  %v1511_v55 = vpop.xlane.xlu2 %1510 }
 0x554   :  { %8543 = vst [vmem:[#allocation70_spill] sm:$0xff] %v5921_v51  ;;  %vm8316_vm4 = vcmp.eq.f32.partialorder %v4378_v24, %v5921_v51  ;;  %vm1529_vm14 = vcmp.ge.f32.partialorder %v5833_v37, %v1511_v55 }
 0x555   :  { %v1545_v13 = vsel %vm1529_vm14, %v4378_v24, 128.0  ;;  %3935 = vmatmul.msk.f32.gmra.mxu3 %vm8316_vm4, %v8509_v0  ;;  %v5935_v34 = vsel %vm8316_vm4, -inf, %v5646_v30 }
 0x556   :  { %1745 = vmax.xlane.f32.xlu1 %v5935_v34  ;;  %1574 = vmin.xlane.f32.xlu0 %v1545_v13 }
 0x55b   :  { %v5938_v53 = vpop.xlane.xlu0 %1554  ;;  %v1513_v36 = vpop.xlane.xlu2 %1512 }
 0x55c   :  { %8544 = vst [vmem:[#allocation71_spill] sm:$0xff] %v5938_v53  ;;  %vm8317_vm8 = vcmp.eq.f32.partialorder %v4378_v24, %v5938_v53  ;;  %vm1530_vm14 = vcmp.ge.f32.partialorder %v5852_v22, %v1513_v36 }
 0x55d   :  { %v1546_v29 = vsel %vm1530_vm14, %v4378_v24, 128.0  ;;  %3936 = vmatmul.msk.f32.gmra.mxu3 %vm8317_vm8, %v8509_v0  ;;  %v5952_v30 = vsel %vm8317_vm8, -inf, %v5663_v35 }
 0x55e   :  { %1747 = vmax.xlane.f32.xlu1 %v5952_v30  ;;  %1576 = vmin.xlane.f32.xlu0 %v1546_v29 }
 0x563   :  { %v5955_v55 = vpop.xlane.xlu0 %1556  ;;  %v1515_v13 = vpop.xlane.xlu2 %1514 }
 0x564   :  { %8545 = vst [vmem:[#allocation72_spill] sm:$0xff] %v5955_v55  ;;  %vm8322_vm14 = vcmp.eq.f32.partialorder %v4378_v24, %v5955_v55  ;;  %vm1531_vm4 = vcmp.ge.f32.partialorder %v5871_v5, %v1515_v13  ;;  %v6004_v55 = vpop.f32.mrf.mxu3 }
 0x565   :  { %v1547_v36 = vsel %vm1531_vm4, %v4378_v24, 128.0  ;;  %3937 = vmatmul.msk.f32.gmra.mxu3 %vm8322_vm14, %v8509_v0  ;;  %v5969_v35 = vsel %vm8322_vm14, -inf, %v5680_v58 }
 0x566   :  { %1749 = vmax.xlane.f32.xlu1 %v5969_v35  ;;  %1578 = vmin.xlane.f32.xlu0 %v1547_v36 }
 0x56b   :  { %v5972_v29 = vpop.xlane.xlu0 %1558 }
 0x56c   :  { %8546 = vst [vmem:[#allocation73_spill] sm:$0xff] %v5972_v29  ;;  %vm8318_vm8 = vcmp.eq.f32.partialorder %v4378_v24, %v5972_v29 }
 0x56d   :  { %3938 = vmatmul.msk.f32.gmra.mxu3 %vm8318_vm8, %v8509_v0  ;;  %v5984_v13 = vsel %vm8318_vm8, -inf, %v5696_v15 }
 0x56e   :  { %1751 = vmax.xlane.f32.xlu1 %v5984_v13 }
 0x573   :  { %v5987_v58 = vpop.xlane.xlu0 %1560 }
 0x574   :  { %8547 = vst [vmem:[#allocation74_spill] sm:$0xff] %v5987_v58  ;;  %vm8335_vm4 = vcmp.eq.f32.partialorder %v4378_v24, %v5987_v58 }
 0x575   :  { %3939 = vmatmul.msk.f32.gmra.mxu3 %vm8335_vm4, %v8509_v0  ;;  %v5999_v36 = vsel %vm8335_vm4, -inf, %v5711_v44 }
 0x576   :  { %1753 = vmax.xlane.f32.xlu1 %v5999_v36 }
 0x591   :  { %v1742_v15 = vpop.xlane.xlu1 %1741 }
 0x592   :  { %vm1773_vm8 = vcmp.ge.f32.partialorder %v5891_v19, %v1742_v15 }
 0x593   :  { %v1789_v29 = vsel %vm1773_vm8, %v4378_v24, 128.0 }
 0x594   :  { %1805 = vmin.xlane.f32.xlu2 %v1789_v29  ;;  %v6021_v29 = vpop.f32.mrf.mxu3 }
 0x599   :  { %v6006_v53 = vpop.xlane.xlu0 %1562 }
 0x59a   :  { %8548 = vst [vmem:[#allocation75_spill] sm:$0xff] %v6006_v53  ;;  %vm8325_vm14 = vcmp.eq.f32.partialorder %v4378_v24, %v6006_v53 }
 0x59b   :  { %3940 = vmatmul.msk.f32.gmra.mxu3 %vm8325_vm14, %v8509_v0  ;;  %v6018_v44 = vsel %vm8325_vm14, -inf, %v5730_v48 }
 0x59c   :  { %1755 = vmax.xlane.f32.xlu1 %v6018_v44  ;;  %v6040_v58 = vpop.f32.mrf.mxu3 }
 0x5a1   :  { %v6023_v15 = vpop.xlane.xlu0 %1564 }
 0x5a2   :  { %8549 = vst [vmem:[#allocation76_spill] sm:$0xff] %v6023_v15  ;;  %vm8327_vm8 = vcmp.eq.f32.partialorder %v4378_v24, %v6023_v15 }
 0x5a3   :  { %3941 = vmatmul.msk.f32.gmra.mxu3 %vm8327_vm8, %v8509_v0  ;;  %v6035_v48 = vsel %vm8327_vm8, -inf, %v5747_v17 }
 0x5a4   :  { %1757 = vmax.xlane.f32.xlu1 %v6035_v48 }
 0x5a9   :  { %v6038_v53 = vpop.xlane.xlu0 %1566 }
 0x5aa   :  { %8550 = vst [vmem:[#allocation77_spill] sm:$0xff] %v6038_v53  ;;  %vm8330_vm14 = vcmp.eq.f32.partialorder %v4378_v24, %v6038_v53 }
 0x5ab   :  { %3942 = vmatmul.msk.f32.gmra.mxu3 %vm8330_vm14, %v8509_v0  ;;  %v6052_v17 = vsel %vm8330_vm14, -inf, %v5764_v21  ;;  %v6069_v21 = vpop.f32.mrf.mxu3 }
 0x5ac   :  { %1759 = vmax.xlane.f32.xlu1 %v6052_v17 }
 0x5b1   :  { %v6055_v15 = vpop.xlane.xlu0 %1568 }
 0x5b2   :  { %8551 = vst [vmem:[#allocation78_spill] sm:$0xff] %v6055_v15  ;;  %vm8334_vm8 = vcmp.eq.f32.partialorder %v4378_v24, %v6055_v15 }
 0x5b3   :  { %3943 = vmatmul.msk.f32.gmra.mxu3 %vm8334_vm8, %v8509_v0  ;;  %v6067_v51 = vsel %vm8334_vm8, -inf, %v5781_v63  ;;  %v6087_v15 = vpop.f32.mrf.mxu3 }
 0x5b4   :  { %1761 = vmax.xlane.f32.xlu1 %v6067_v51 }
 0x5b9   :  { %v6072_v53 = vpop.xlane.xlu0 %1570 }
 0x5ba   :  { %8552 = vst [vmem:[#allocation79_spill] sm:$0xff] %v6072_v53  ;;  %vm8339_vm14 = vcmp.eq.f32.partialorder %v4378_v24, %v6072_v53 }
 0x5bb   :  { %3944 = vmatmul.msk.f32.gmra.mxu3 %vm8339_vm14, %v8509_v0  ;;  %v6084_v63 = vsel %vm8339_vm14, -inf, %v5796_v27 }
 0x5bc   :  { %1763 = vmax.xlane.f32.xlu1 %v6084_v63 }
 0x5c1   :  { %v1744_v42 = vpop.xlane.xlu1 %1743  ;;  %v6089_v60 = vpop.xlane.xlu0 %1572 }
 0x5c2   :  { %8553 = vst [vmem:[#allocation80_spill] sm:$0xff] %v6089_v60  ;;  %vm1774_vm8 = vcmp.ge.f32.partialorder %v5918_v23, %v1744_v42  ;;  %vm8341_vm4 = vcmp.eq.f32.partialorder %v4378_v24, %v6089_v60  ;;  %v6106_v42 = vpop.f32.mrf.mxu3 }
 0x5c3   :  { %v1790_v7 = vsel %vm1774_vm8, %v4378_v24, 128.0  ;;  %3945 = vmatmul.msk.f32.gmra.mxu3 %vm8341_vm4, %v8509_v0  ;;  %v6103_v27 = vsel %vm8341_vm4, -inf, %v5814_v40 }
 0x5c4   :  { %1807 = vmin.xlane.f32.xlu2 %v1790_v7  ;;  %1765 = vmax.xlane.f32.xlu1 %v6103_v27 }
 0x5c9   :  { %v1746_v53 = vpop.xlane.xlu1 %1745  ;;  %v6108_v32 = vpop.xlane.xlu0 %1574 }
 0x5ca   :  { %8554 = vst [vmem:[#allocation81_spill] sm:$0xff] %v6108_v32  ;;  %vm1775_vm8 = vcmp.ge.f32.partialorder %v5935_v34, %v1746_v53  ;;  %vm8344_vm14 = vcmp.eq.f32.partialorder %v4378_v24, %v6108_v32  ;;  %v6130_v60 = vpop.f32.mrf.mxu3 }
 0x5cb   :  { %v1791_v4 = vsel %vm1775_vm8, %v4378_v24, 128.0  ;;  %3946 = vmatmul.msk.f32.gmra.mxu3 %vm8344_vm14, %v8509_v0  ;;  %v6122_v7 = vsel %vm8344_vm14, -inf, %v5833_v37 }
 0x5cc   :  { %1809 = vmin.xlane.f32.xlu2 %v1791_v4  ;;  %1767 = vmax.xlane.f32.xlu1 %v6122_v7 }
 0x5d1   :  { %v1748_v40 = vpop.xlane.xlu1 %1747  ;;  %v6125_v53 = vpop.xlane.xlu0 %1576 }
 0x5d2   :  { %8555 = vst [vmem:[#allocation82_spill] sm:$0xff] %v6125_v53  ;;  %vm1776_vm4 = vcmp.ge.f32.partialorder %v5952_v30, %v1748_v40  ;;  %vm8347_vm8 = vcmp.eq.f32.partialorder %v4378_v24, %v6125_v53  ;;  %v6149_v32 = vpop.f32.mrf.mxu3 }
 0x5d3   :  { %v1792_v61 = vsel %vm1776_vm4, %v4378_v24, 128.0  ;;  %3947 = vmatmul.msk.f32.gmra.mxu3 %vm8347_vm8, %v8509_v0  ;;  %v6141_v4 = vsel %vm8347_vm8, -inf, %v5852_v22 }
 0x5d4   :  { %1811 = vmin.xlane.f32.xlu2 %v1792_v61  ;;  %1769 = vmax.xlane.f32.xlu1 %v6141_v4 }
 0x5d9   :  { %v1750_v37 = vpop.xlane.xlu1 %1749  ;;  %v6144_v40 = vpop.xlane.xlu0 %1578 }
 0x5da   :  { %8556 = vst [vmem:[#allocation83_spill] sm:$0xff] %v6144_v40  ;;  %vm1777_vm14 = vcmp.ge.f32.partialorder %v5969_v35, %v1750_v37  ;;  %vm8351_vm4 = vcmp.eq.f32.partialorder %v4378_v24, %v6144_v40 }
 0x5db   :  { %v1793_v47 = vsel %vm1777_vm14, %v4378_v24, 128.0  ;;  %3948 = vmatmul.msk.f32.gmra.mxu3 %vm8351_vm4, %v8509_v0  ;;  %v6160_v61 = vsel %vm8351_vm4, -inf, %v5871_v5 }
 0x5dc   :  { %1813 = vmin.xlane.f32.xlu2 %v1793_v47  ;;  %1771 = vmax.xlane.f32.xlu1 %v6160_v61 }
 0x5e1   :  { %v1752_v22 = vpop.xlane.xlu1 %1751 }
 0x5e2   :  { %vm1778_vm8 = vcmp.ge.f32.partialorder %v5984_v13, %v1752_v22 }
 0x5e3   :  { %v1794_v37 = vsel %vm1778_vm8, %v4378_v24, 128.0 }
 0x5e4   :  { %1815 = vmin.xlane.f32.xlu2 %v1794_v37 }
 0x5e9   :  { %v1754_v53 = vpop.xlane.xlu1 %1753 }
 0x5ea   :  { %vm1779_vm14 = vcmp.ge.f32.partialorder %v5999_v36, %v1754_v53 }
 0x5eb   :  { %v1795_v50 = vsel %vm1779_vm14, %v4378_v24, 128.0 }
 0x5ec   :  { %1817 = vmin.xlane.f32.xlu2 %v1795_v50 }
 0x607   :  { %v6167_v41 = vpop.xlane.xlu2 %1805 }
 0x608   :  { %8557 = vst [vmem:[#allocation84_spill] sm:$0xff] %v6167_v41  ;;  %vm8354_vm4 = vcmp.eq.f32.partialorder %v4378_v24, %v6167_v41 }
 0x609   :  { %3965 = vmatmul.msk.f32.vlgmr.msra.gmra.mxu0 %vm8354_vm4, %v8509_v0  ;;  %v6179_v47 = vsel %vm8354_vm4, -inf, %v5891_v19 }
 0x60a   :  { %1998 = vmax.xlane.f32.xlu0 %v6179_v47 }
 0x60f   :  { %v1756_v5 = vpop.xlane.xlu1 %1755 }
 0x610   :  { %vm1780_vm8 = vcmp.ge.f32.partialorder %v6018_v44, %v1756_v5 }
 0x611   :  { %v1796_v50 = vsel %vm1780_vm8, %v4378_v24, 128.0 }
 0x612   :  { %1819 = vmin.xlane.f32.xlu2 %v1796_v50 }
 0x617   :  { %v1758_v53 = vpop.xlane.xlu1 %1757 }
 0x618   :  { %vm1781_vm14 = vcmp.ge.f32.partialorder %v6035_v48, %v1758_v53 }
 0x619   :  { %v1797_v22 = vsel %vm1781_vm14, %v4378_v24, 128.0 }
 0x61a   :  { %1821 = vmin.xlane.f32.xlu2 %v1797_v22 }
 0x61f   :  { %v1760_v37 = vpop.xlane.xlu1 %1759 }
 0x620   :  { %vm1782_vm11 = vcmp.ge.f32.partialorder %v6052_v17, %v1760_v37 }
 0x621   :  { %v1798_v19 = vsel %vm1782_vm11, %v4378_v24, 128.0 }
 0x622   :  { %1823 = vmin.xlane.f32.xlu2 %v1798_v19 }
 0x627   :  { %v1762_v40 = vpop.xlane.xlu1 %1761 }
 0x628   :  { %vm1783_vm4 = vcmp.ge.f32.partialorder %v6067_v51, %v1762_v40 }
 0x629   :  { %v1799_v5 = vsel %vm1783_vm4, %v4378_v24, 128.0 }
 0x62a   :  { %1825 = vmin.xlane.f32.xlu2 %v1799_v5 }
 0x62f   :  { %v1764_v41 = vpop.xlane.xlu1 %1763 }
 0x630   :  { %vm1784_vm8 = vcmp.ge.f32.partialorder %v6084_v63, %v1764_v41 }
 0x631   :  { %v1800_v50 = vsel %vm1784_vm8, %v4378_v24, 128.0 }
 0x632   :  { %1827 = vmin.xlane.f32.xlu2 %v1800_v50 }
 0x637   :  { %v1766_v53 = vpop.xlane.xlu1 %1765  ;;  %v6192_v22 = vpop.xlane.xlu2 %1807 }
 0x638   :  { %8558 = vst [vmem:[#allocation85_spill] sm:$0xff] %v6192_v22  ;;  %vm1785_vm14 = vcmp.ge.f32.partialorder %v6103_v27, %v1766_v53  ;;  %vm8392_vm11 = vcmp.eq.f32.partialorder %v4378_v24, %v6192_v22 }
 0x639   :  { %v1801_v37 = vsel %vm1785_vm14, %v4378_v24, 128.0  ;;  %3966 = vmatmul.msk.f32.gmra.mxu0 %vm8392_vm11, %v8509_v0  ;;  %v6206_v41 = vsel %vm8392_vm11, -inf, %v5918_v23 }
 0x63a   :  { %1829 = vmin.xlane.f32.xlu2 %v1801_v37  ;;  %2000 = vmax.xlane.f32.xlu0 %v6206_v41 }
 0x63f   :  { %v1768_v40 = vpop.xlane.xlu1 %1767  ;;  %v6209_v19 = vpop.xlane.xlu2 %1809 }
 0x640   :  { %8559 = vst [vmem:[#allocation86_spill] sm:$0xff] %v6209_v19  ;;  %vm1786_vm4 = vcmp.ge.f32.partialorder %v6122_v7, %v1768_v40  ;;  %vm8356_vm8 = vcmp.eq.f32.partialorder %v4378_v24, %v6209_v19 }
 0x641   :  { %v1802_v5 = vsel %vm1786_vm4, %v4378_v24, 128.0  ;;  %3967 = vmatmul.msk.f32.gmra.mxu0 %vm8356_vm8, %v8509_v0  ;;  %v6223_v23 = vsel %vm8356_vm8, -inf, %v5935_v34 }
 0x642   :  { %1831 = vmin.xlane.f32.xlu2 %v1802_v5  ;;  %2002 = vmax.xlane.f32.xlu0 %v6223_v23 }
 0x647   :  { %v1770_v50 = vpop.xlane.xlu1 %1769  ;;  %v6226_v53 = vpop.xlane.xlu2 %1811 }
 0x648   :  { %8560 = vst [vmem:[#allocation87_spill] sm:$0xff] %v6226_v53  ;;  %vm1787_vm14 = vcmp.ge.f32.partialorder %v6141_v4, %v1770_v50  ;;  %vm8357_vm4 = vcmp.eq.f32.partialorder %v4378_v24, %v6226_v53 }
 0x649   :  { %v1803_v37 = vsel %vm1787_vm14, %v4378_v24, 128.0  ;;  %3968 = vmatmul.msk.f32.gmra.mxu0 %vm8357_vm4, %v8509_v0  ;;  %v6240_v34 = vsel %vm8357_vm4, -inf, %v5952_v30 }
 0x64a   :  { %1833 = vmin.xlane.f32.xlu2 %v1803_v37  ;;  %2004 = vmax.xlane.f32.xlu0 %v6240_v34 }
 0x64f   :  { %v1772_v40 = vpop.xlane.xlu1 %1771  ;;  %v6243_v5 = vpop.xlane.xlu2 %1813 }
 0x650   :  { %8561 = vst [vmem:[#allocation88_spill] sm:$0xff] %v6243_v5  ;;  %vm1788_vm8 = vcmp.ge.f32.partialorder %v6160_v61, %v1772_v40  ;;  %vm8362_vm14 = vcmp.eq.f32.partialorder %v4378_v24, %v6243_v5  ;;  %v6292_v5 = vpop.f32.mrf.mxu0 }
 0x651   :  { %v1804_v50 = vsel %vm1788_vm8, %v4378_v24, 128.0  ;;  %3969 = vmatmul.msk.f32.gmra.mxu0 %vm8362_vm14, %v8509_v0  ;;  %v6257_v30 = vsel %vm8362_vm14, -inf, %v5969_v35 }
 0x652   :  { %1835 = vmin.xlane.f32.xlu2 %v1804_v50  ;;  %2006 = vmax.xlane.f32.xlu0 %v6257_v30 }
 0x657   :  { %v6260_v37 = vpop.xlane.xlu2 %1815 }
 0x658   :  { %8562 = vst [vmem:[#allocation89_spill] sm:$0xff] %v6260_v37  ;;  %vm8358_vm4 = vcmp.eq.f32.partialorder %v4378_v24, %v6260_v37 }
 0x659   :  { %3970 = vmatmul.msk.f32.gmra.mxu0 %vm8358_vm4, %v8509_v0  ;;  %v6272_v40 = vsel %vm8358_vm4, -inf, %v5984_v13 }
 0x65a   :  { %2008 = vmax.xlane.f32.xlu0 %v6272_v40 }
 0x65f   :  { %v6275_v35 = vpop.xlane.xlu2 %1817 }
 0x660   :  { %8563 = vst [vmem:[#allocation90_spill] sm:$0xff] %v6275_v35  ;;  %vm8375_vm8 = vcmp.eq.f32.partialorder %v4378_v24, %v6275_v35 }
 0x661   :  { %3971 = vmatmul.msk.f32.gmra.mxu0 %vm8375_vm8, %v8509_v0  ;;  %v6287_v50 = vsel %vm8375_vm8, -inf, %v5999_v36 }
 0x662   :  { %2010 = vmax.xlane.f32.xlu0 %v6287_v50 }
 0x67d   :  { %v1999_v13 = vpop.xlane.xlu0 %1998 }
 0x67e   :  { %vm2030_vm4 = vcmp.ge.f32.partialorder %v6179_v47, %v1999_v13 }
 0x67f   :  { %v2046_v37 = vsel %vm2030_vm4, %v4378_v24, 128.0 }
 0x680   :  { %2062 = vmin.xlane.f32.xlu1 %v2046_v37  ;;  %v6309_v37 = vpop.f32.mrf.mxu0 }
 0x685   :  { %v6294_v53 = vpop.xlane.xlu2 %1819 }
 0x686   :  { %8564 = vst [vmem:[#allocation91_spill] sm:$0xff] %v6294_v53  ;;  %vm8365_vm14 = vcmp.eq.f32.partialorder %v4378_v24, %v6294_v53 }
 0x687   :  { %3972 = vmatmul.msk.f32.gmra.mxu0 %vm8365_vm14, %v8509_v0  ;;  %v6306_v36 = vsel %vm8365_vm14, -inf, %v6018_v44 }
 0x688   :  { %2012 = vmax.xlane.f32.xlu0 %v6306_v36  ;;  %v6328_v35 = vpop.f32.mrf.mxu0 }
 0x68d   :  { %v6311_v13 = vpop.xlane.xlu2 %1821 }
 0x68e   :  { %8565 = vst [vmem:[#allocation92_spill] sm:$0xff] %v6311_v13  ;;  %vm8367_vm4 = vcmp.eq.f32.partialorder %v4378_v24, %v6311_v13 }
 0x68f   :  { %3973 = vmatmul.msk.f32.gmra.mxu0 %vm8367_vm4, %v8509_v0  ;;  %v6323_v44 = vsel %vm8367_vm4, -inf, %v6035_v48 }
 0x690   :  { %2014 = vmax.xlane.f32.xlu0 %v6323_v44 }
 0x695   :  { %v6326_v53 = vpop.xlane.xlu2 %1823 }
 0x696   :  { %8566 = vst [vmem:[#allocation93_spill] sm:$0xff] %v6326_v53  ;;  %vm8370_vm14 = vcmp.eq.f32.partialorder %v4378_v24, %v6326_v53 }
 0x697   :  { %3974 = vmatmul.msk.f32.gmra.mxu0 %vm8370_vm14, %v8509_v0  ;;  %v6340_v48 = vsel %vm8370_vm14, -inf, %v6052_v17  ;;  %v6357_v17 = vpop.f32.mrf.mxu0 }
 0x698   :  { %2016 = vmax.xlane.f32.xlu0 %v6340_v48 }
 0x69d   :  { %v6343_v13 = vpop.xlane.xlu2 %1825 }
 0x69e   :  { %8567 = vst [vmem:[#allocation94_spill] sm:$0xff] %v6343_v13  ;;  %vm8374_vm4 = vcmp.eq.f32.partialorder %v4378_v24, %v6343_v13 }
 0x69f   :  { %3975 = vmatmul.msk.f32.gmra.mxu0 %vm8374_vm4, %v8509_v0  ;;  %v6355_v19 = vsel %vm8374_vm4, -inf, %v6067_v51  ;;  %v6375_v13 = vpop.f32.mrf.mxu0 }
 0x6a0   :  { %2018 = vmax.xlane.f32.xlu0 %v6355_v19 }
 0x6a5   :  { %v6360_v53 = vpop.xlane.xlu2 %1827 }
 0x6a6   :  { %8568 = vst [vmem:[#allocation95_spill] sm:$0xff] %v6360_v53  ;;  %vm8379_vm14 = vcmp.eq.f32.partialorder %v4378_v24, %v6360_v53 }
 0x6a7   :  { %3976 = vmatmul.msk.f32.gmra.mxu0 %vm8379_vm14, %v8509_v0  ;;  %v6372_v51 = vsel %vm8379_vm14, -inf, %v6084_v63 }
 0x6a8   :  { %2020 = vmax.xlane.f32.xlu0 %v6372_v51 }
 0x6ad   :  { %v2001_v22 = vpop.xlane.xlu0 %2000  ;;  %v6377_v57 = vpop.xlane.xlu2 %1829 }
 0x6ae   :  { %8569 = vst [vmem:[#allocation96_spill] sm:$0xff] %v6377_v57  ;;  %vm2031_vm4 = vcmp.ge.f32.partialorder %v6206_v41, %v2001_v22  ;;  %vm8381_vm8 = vcmp.eq.f32.partialorder %v4378_v24, %v6377_v57  ;;  %v6394_v22 = vpop.f32.mrf.mxu0 }
 0x6af   :  { %v2047_v39 = vsel %vm2031_vm4, %v4378_v24, 128.0  ;;  %3977 = vmatmul.msk.f32.gmra.mxu0 %vm8381_vm8, %v8509_v0  ;;  %v6391_v63 = vsel %vm8381_vm8, -inf, %v6103_v27 }
 0x6b0   :  { %2064 = vmin.xlane.f32.xlu1 %v2047_v39  ;;  %2022 = vmax.xlane.f32.xlu0 %v6391_v63 }
 0x6b5   :  { %v2003_v53 = vpop.xlane.xlu0 %2002  ;;  %v6396_v18 = vpop.xlane.xlu2 %1831 }
 0x6b6   :  { %8570 = vst [vmem:[#allocation97_spill] sm:$0xff] %v6396_v18  ;;  %vm2032_vm4 = vcmp.ge.f32.partialorder %v6223_v23, %v2003_v53  ;;  %vm8384_vm14 = vcmp.eq.f32.partialorder %v4378_v24, %v6396_v18  ;;  %v6418_v57 = vpop.f32.mrf.mxu0 }
 0x6b7   :  { %v2048_v62 = vsel %vm2032_vm4, %v4378_v24, 128.0  ;;  %3978 = vmatmul.msk.f32.gmra.mxu0 %vm8384_vm14, %v8509_v0  ;;  %v6410_v39 = vsel %vm8384_vm14, -inf, %v6122_v7 }
 0x6b8   :  { %2066 = vmin.xlane.f32.xlu1 %v2048_v62  ;;  %2024 = vmax.xlane.f32.xlu0 %v6410_v39 }
 0x6bd   :  { %v2005_v27 = vpop.xlane.xlu0 %2004  ;;  %v6413_v53 = vpop.xlane.xlu2 %1833 }
 0x6be   :  { %8571 = vst [vmem:[#allocation98_spill] sm:$0xff] %v6413_v53  ;;  %vm2033_vm8 = vcmp.ge.f32.partialorder %v6240_v34, %v2005_v27  ;;  %vm8387_vm4 = vcmp.eq.f32.partialorder %v4378_v24, %v6413_v53  ;;  %v6437_v18 = vpop.f32.mrf.mxu0 }
 0x6bf   :  { %v2049_v1 = vsel %vm2033_vm8, %v4378_v24, 128.0  ;;  %3979 = vmatmul.msk.f32.gmra.mxu0 %vm8387_vm4, %v8509_v0  ;;  %v6429_v62 = vsel %vm8387_vm4, -inf, %v6141_v4 }
 0x6c0   :  { %2068 = vmin.xlane.f32.xlu1 %v2049_v1  ;;  %2026 = vmax.xlane.f32.xlu0 %v6429_v62 }
 0x6c5   :  { %v2007_v7 = vpop.xlane.xlu0 %2006  ;;  %v6432_v27 = vpop.xlane.xlu2 %1835 }
 0x6c6   :  { %8572 = vst [vmem:[#allocation99_spill] sm:$0xff] %v6432_v27  ;;  %vm2034_vm14 = vcmp.ge.f32.partialorder %v6257_v30, %v2007_v7  ;;  %vm8391_vm8 = vcmp.eq.f32.partialorder %v4378_v24, %v6432_v27 }
 0x6c7   :  { %v2050_v33 = vsel %vm2034_vm14, %v4378_v24, 128.0  ;;  %3980 = vmatmul.msk.f32.gmra.mxu0 %vm8391_vm8, %v8509_v0  ;;  %v6448_v1 = vsel %vm8391_vm8, -inf, %v6160_v61 }
 0x6c8   :  { %2070 = vmin.xlane.f32.xlu1 %v2050_v33  ;;  %2028 = vmax.xlane.f32.xlu0 %v6448_v1 }
 0x6cd   :  { %v2009_v4 = vpop.xlane.xlu0 %2008 }
 0x6ce   :  { %vm2035_vm4 = vcmp.ge.f32.partialorder %v6272_v40, %v2009_v4 }
 0x6cf   :  { %v2051_v7 = vsel %vm2035_vm4, %v4378_v24, 128.0 }
 0x6d0   :  { %2072 = vmin.xlane.f32.xlu1 %v2051_v7 }
 0x6d5   :  { %v2011_v53 = vpop.xlane.xlu0 %2010 }
 0x6d6   :  { %vm2036_vm14 = vcmp.ge.f32.partialorder %v6287_v50, %v2011_v53 }
 0x6d7   :  { %v2052_v46 = vsel %vm2036_vm14, %v4378_v24, 128.0 }
 0x6d8   :  { %2074 = vmin.xlane.f32.xlu1 %v2052_v46 }
 0x6f3   :  { %v6455_v38 = vpop.xlane.xlu1 %2062 }
 0x6f4   :  { %8573 = vst [vmem:[#allocation100_spill] sm:$0xff] %v6455_v38  ;;  %vm8394_vm8 = vcmp.eq.f32.partialorder %v4378_v24, %v6455_v38 }
 0x6f5   :  { %3997 = vmatmul.msk.f32.vlgmr.msrb.gmra.mxu1 %vm8394_vm8, %v8509_v0  ;;  %v6467_v33 = vsel %vm8394_vm8, -inf, %v6179_v47 }
 0x6f6   :  { %2255 = vmax.xlane.f32.xlu2 %v6467_v33 }
 0x6fb   :  { %v2013_v61 = vpop.xlane.xlu0 %2012 }
 0x6fc   :  { %vm2037_vm4 = vcmp.ge.f32.partialorder %v6306_v36, %v2013_v61 }
 0x6fd   :  { %v2053_v46 = vsel %vm2037_vm4, %v4378_v24, 128.0 }
 0x6fe   :  { %2076 = vmin.xlane.f32.xlu1 %v2053_v46 }
 0x703   :  { %v2015_v53 = vpop.xlane.xlu0 %2014 }
 0x704   :  { %vm2038_vm14 = vcmp.ge.f32.partialorder %v6323_v44, %v2015_v53 }
 0x705   :  { %v2054_v4 = vsel %vm2038_vm14, %v4378_v24, 128.0 }
 0x706   :  { %2078 = vmin.xlane.f32.xlu1 %v2054_v4 }
 0x70b   :  { %v2017_v7 = vpop.xlane.xlu0 %2016 }
 0x70c   :  { %vm2039_vm11 = vcmp.ge.f32.partialorder %v6340_v48, %v2017_v7 }
 0x70d   :  { %v2055_v47 = vsel %vm2039_vm11, %v4378_v24, 128.0 }
 0x70e   :  { %2080 = vmin.xlane.f32.xlu1 %v2055_v47 }
 0x713   :  { %v2019_v27 = vpop.xlane.xlu0 %2018 }
 0x714   :  { %vm2040_vm8 = vcmp.ge.f32.partialorder %v6355_v19, %v2019_v27 }
 0x715   :  { %v2056_v61 = vsel %vm2040_vm8, %v4378_v24, 128.0 }
 0x716   :  { %2082 = vmin.xlane.f32.xlu1 %v2056_v61 }
 0x71b   :  { %v2021_v38 = vpop.xlane.xlu0 %2020 }
 0x71c   :  { %vm2041_vm4 = vcmp.ge.f32.partialorder %v6372_v51, %v2021_v38 }
 0x71d   :  { %v2057_v46 = vsel %vm2041_vm4, %v4378_v24, 128.0 }
 0x71e   :  { %2084 = vmin.xlane.f32.xlu1 %v2057_v46 }
 0x723   :  { %v6480_v53 = vpop.xlane.xlu1 %2064  ;;  %v2023_v4 = vpop.xlane.xlu0 %2022 }
 0x724   :  { %8574 = vst [vmem:[#allocation101_spill] sm:$0xff] %v6480_v53  ;;  %vm8424_vm14 = vcmp.eq.f32.partialorder %v4378_v24, %v6480_v53  ;;  %vm2042_vm11 = vcmp.ge.f32.partialorder %v6391_v63, %v2023_v4 }
 0x725   :  { %v2058_v7 = vsel %vm2042_vm11, %v4378_v24, 128.0  ;;  %3998 = vmatmul.msk.f32.gmra.mxu1 %vm8424_vm14, %v8509_v0  ;;  %v6494_v38 = vsel %vm8424_vm14, -inf, %v6206_v41 }
 0x726   :  { %2257 = vmax.xlane.f32.xlu2 %v6494_v38  ;;  %2086 = vmin.xlane.f32.xlu1 %v2058_v7 }
 0x72b   :  { %v6497_v27 = vpop.xlane.xlu1 %2066  ;;  %v2025_v47 = vpop.xlane.xlu0 %2024 }
 0x72c   :  { %8575 = vst [vmem:[#allocation102_spill] sm:$0xff] %v6497_v27  ;;  %vm8396_vm8 = vcmp.eq.f32.partialorder %v4378_v24, %v6497_v27  ;;  %vm2043_vm4 = vcmp.ge.f32.partialorder %v6410_v39, %v2025_v47 }
 0x72d   :  { %v2059_v61 = vsel %vm2043_vm4, %v4378_v24, 128.0  ;;  %3999 = vmatmul.msk.f32.gmra.mxu1 %vm8396_vm8, %v8509_v0  ;;  %v6511_v41 = vsel %vm8396_vm8, -inf, %v6223_v23 }
 0x72e   :  { %2259 = vmax.xlane.f32.xlu2 %v6511_v41  ;;  %2088 = vmin.xlane.f32.xlu1 %v2059_v61 }
 0x733   :  { %v6514_v46 = vpop.xlane.xlu1 %2068  ;;  %v2027_v4 = vpop.xlane.xlu0 %2026 }
 0x734   :  { %8576 = vst [vmem:[#allocation103_spill] sm:$0xff] %v6514_v46  ;;  %vm8397_vm11 = vcmp.eq.f32.partialorder %v4378_v24, %v6514_v46  ;;  %vm2044_vm4 = vcmp.ge.f32.partialorder %v6429_v62, %v2027_v4 }
 0x735   :  { %v2060_v7 = vsel %vm2044_vm4, %v4378_v24, 128.0  ;;  %4000 = vmatmul.msk.f32.gmra.mxu1 %vm8397_vm11, %v8509_v0  ;;  %v6528_v23 = vsel %vm8397_vm11, -inf, %v6240_v34 }
 0x736   :  { %2261 = vmax.xlane.f32.xlu2 %v6528_v23  ;;  %2090 = vmin.xlane.f32.xlu1 %v2060_v7 }
 0x73b   :  { %v6531_v47 = vpop.xlane.xlu1 %2070  ;;  %v2029_v61 = vpop.xlane.xlu0 %2028 }
 0x73c   :  { %8577 = vst [vmem:[#allocation104_spill] sm:$0xff] %v6531_v47  ;;  %vm8402_vm4 = vcmp.eq.f32.partialorder %v4378_v24, %v6531_v47  ;;  %vm2045_vm8 = vcmp.ge.f32.partialorder %v6448_v1, %v2029_v61  ;;  %v6580_v47 = vpop.f32.mrf.mxu1 }
 0x73d   :  { %v2061_v4 = vsel %vm2045_vm8, %v4378_v24, 128.0  ;;  %4001 = vmatmul.msk.f32.gmra.mxu1 %vm8402_vm4, %v8509_v0  ;;  %v6545_v34 = vsel %vm8402_vm4, -inf, %v6257_v30 }
 0x73e   :  { %2263 = vmax.xlane.f32.xlu2 %v6545_v34  ;;  %2092 = vmin.xlane.f32.xlu1 %v2061_v4 }
 0x743   :  { %v6548_v7 = vpop.xlane.xlu1 %2072 }
 0x744   :  { %8578 = vst [vmem:[#allocation105_spill] sm:$0xff] %v6548_v7  ;;  %vm8398_vm11 = vcmp.eq.f32.partialorder %v4378_v24, %v6548_v7 }
 0x745   :  { %4002 = vmatmul.msk.f32.gmra.mxu1 %vm8398_vm11, %v8509_v0  ;;  %v6560_v61 = vsel %vm8398_vm11, -inf, %v6272_v40 }
 0x746   :  { %2265 = vmax.xlane.f32.xlu2 %v6560_v61 }
 0x74b   :  { %v6563_v30 = vpop.xlane.xlu1 %2074 }
 0x74c   :  { %8579 = vst [vmem:[#allocation106_spill] sm:$0xff] %v6563_v30  ;;  %vm8418_vm8 = vcmp.eq.f32.partialorder %v4378_v24, %v6563_v30 }
 0x74d   :  { %4003 = vmatmul.msk.f32.gmra.mxu1 %vm8418_vm8, %v8509_v0  ;;  %v6575_v4 = vsel %vm8418_vm8, -inf, %v6287_v50 }
 0x74e   :  { %2267 = vmax.xlane.f32.xlu2 %v6575_v4 }
 0x769   :  { %v2256_v40 = vpop.xlane.xlu2 %2255 }
 0x76a   :  { %vm2287_vm11 = vcmp.ge.f32.partialorder %v6467_v33, %v2256_v40  ;;  %v6597_v33 = vpop.f32.mrf.mxu1  ;;  %v6601_v40 = vpop.f32.mrf.mxu2 }
 0x76b   :  { %v2303_v7 = vsel %vm2287_vm11, %v4378_v24, 128.0 }
 0x76c   :  { %2319 = vmin.xlane.f32.xlu0 %v2303_v7 }
 0x771   :  { %v6582_v46 = vpop.xlane.xlu1 %2076 }
 0x772   :  { %8580 = vst [vmem:[#allocation107_spill] sm:$0xff] %v6582_v46  ;;  %vm8405_vm4 = vcmp.eq.f32.partialorder %v4378_v24, %v6582_v46  ;;  %v6618_v30 = vpop.f32.mrf.mxu1 }
 0x773   :  { %4004 = vmatmul.msk.f32.gmra.mxu1 %vm8405_vm4, %v8509_v0  ;;  %v6594_v50 = vsel %vm8405_vm4, -inf, %v6306_v36 }
 0x774   :  { %2269 = vmax.xlane.f32.xlu2 %v6594_v50 }
 0x779   :  { %v6599_v7 = vpop.xlane.xlu1 %2078 }
 0x77a   :  { %8581 = vst [vmem:[#allocation108_spill] sm:$0xff] %v6599_v7  ;;  %vm8408_vm11 = vcmp.eq.f32.partialorder %v4378_v24, %v6599_v7  ;;  %v6632_v7 = vpop.f32.mrf.mxu2 }
 0x77b   :  { %4005 = vmatmul.msk.f32.gmra.mxu1 %vm8408_vm11, %v8509_v0  ;;  %v6613_v36 = vsel %vm8408_vm11, -inf, %v6323_v44  ;;  %8583 = vst [vmem:[#allocation110_spill] sm:$0xff] %v6632_v7 }
 0x77c   :  { %2271 = vmax.xlane.f32.xlu2 %v6613_v36 }
 0x781   :  { %v6616_v46 = vpop.xlane.xlu1 %2080 }
 0x782   :  { %8582 = vst [vmem:[#allocation109_spill] sm:$0xff] %v6616_v46  ;;  %vm8412_vm4 = vcmp.eq.f32.partialorder %v4378_v24, %v6616_v46  ;;  %v6649_v46 = vpop.f32.mrf.mxu1  ;;  %v6652_v53 = vpop.f32.mrf.mxu2 }
 0x783   :  { %4006 = vmatmul.msk.f32.gmra.mxu1 %vm8412_vm4, %v8509_v0  ;;  %v6630_v44 = vsel %vm8412_vm4, -inf, %v6340_v48  ;;  %8585 = vst [vmem:[#allocation112_spill] sm:$0xff] %v6652_v53 }
 0x784   :  { %2273 = vmax.xlane.f32.xlu2 %v6630_v44 }
 0x789   :  { %v6635_v27 = vpop.xlane.xlu1 %2082 }
 0x78a   :  { %8584 = vst [vmem:[#allocation111_spill] sm:$0xff] %v6635_v27  ;;  %vm8417_vm11 = vcmp.eq.f32.partialorder %v4378_v24, %v6635_v27  ;;  %v6669_v27 = vpop.f32.mrf.mxu1  ;;  %v6671_v26 = vpop.f32.mrf.mxu2 }
 0x78b   :  { %4007 = vmatmul.msk.f32.gmra.mxu1 %vm8417_vm11, %v8509_v0  ;;  %v6647_v48 = vsel %vm8417_vm11, -inf, %v6355_v19  ;;  %8587 = vst [vmem:[#allocation114_spill] sm:$0xff] %v6671_v26 }
 0x78c   :  { %2275 = vmax.xlane.f32.xlu2 %v6647_v48 }
 0x791   :  { %v6654_v54 = vpop.xlane.xlu1 %2084 }
 0x792   :  { %8586 = vst [vmem:[#allocation113_spill] sm:$0xff] %v6654_v54  ;;  %vm8423_vm4 = vcmp.eq.f32.partialorder %v4378_v24, %v6654_v54  ;;  %v6687_v20 = vpop.f32.mrf.mxu2 }
 0x793   :  { %4008 = vmatmul.msk.f32.gmra.mxu1 %vm8423_vm4, %v8509_v0  ;;  %v6666_v19 = vsel %vm8423_vm4, -inf, %v6372_v51  ;;  %v6683_v51 = vpop.f32.mrf.mxu1  ;;  %8590 = vst [vmem:[#allocation117_spill] sm:$0xff] %v6687_v20 }
 0x794   :  { %2277 = vmax.xlane.f32.xlu1 %v6666_v19 }
 0x799   :  { %v6673_v8 = vpop.xlane.xlu1 %2086  ;;  %v2258_v3 = vpop.xlane.xlu2 %2257 }
 0x79a   :  { %8588 = vst [vmem:[#allocation115_spill] sm:$0xff] %v6673_v8  ;;  %vm8447_vm11 = vcmp.eq.f32.partialorder %v4378_v24, %v6673_v8  ;;  %vm2288_vm8 = vcmp.ge.f32.partialorder %v6494_v38, %v2258_v3 }
 0x79b   :  { %v2304_v45 = vsel %vm2288_vm8, %v4378_v24, 128.0  ;;  %4009 = vmatmul.msk.f32.gmra.mxu1 %vm8447_vm11, %v8509_v0  ;;  %v6702_v16 = vpop.f32.mrf.mxu1 }
 0x79c   :  { %2321 = vmin.xlane.f32.xlu0 %v2304_v45 }
 0x7a1   :  { %v6685_v54 = vpop.xlane.xlu1 %2088  ;;  %v2260_v11 = vpop.xlane.xlu2 %2259 }
 0x7a2   :  { %8589 = vst [vmem:[#allocation116_spill] sm:$0xff] %v6685_v54  ;;  %vm8445_vm4 = vcmp.eq.f32.partialorder %v4378_v24, %v6685_v54  ;;  %vm2289_vm14 = vcmp.ge.f32.partialorder %v6511_v41, %v2260_v11  ;;  %v6709_v41 = vpop.f32.mrf.mxu2 }
 0x7a3   :  { %v2305_v3 = vsel %vm2289_vm14, %v4378_v24, 128.0  ;;  %4010 = vmatmul.msk.f32.gmra.mxu1 %vm8445_vm4, %v8509_v0  ;;  %8592 = vst [vmem:[#allocation119_spill] sm:$0xff] %v6709_v41 }
 0x7a4   :  { %2323 = vmin.xlane.f32.xlu0 %v2305_v3 }
 0x7a9   :  { %v6697_v45 = vpop.xlane.xlu1 %2090  ;;  %v2262_v38 = vpop.xlane.xlu2 %2261 }
 0x7aa   :  { %8591 = vst [vmem:[#allocation118_spill] sm:$0xff] %v6697_v45  ;;  %vm8443_vm8 = vcmp.eq.f32.partialorder %v4378_v24, %v6697_v45  ;;  %vm2290_vm2 = vcmp.ge.f32.partialorder %v6528_v23, %v2262_v38  ;;  %v6716_v23 = vpop.f32.mrf.mxu1  ;;  %v6723_v9 = vpop.f32.mrf.mxu2 }
 0x7ab   :  { %v2306_v11 = vsel %vm2290_vm2, %v4378_v24, 128.0  ;;  %4011 = vmatmul.msk.f32.gmra.mxu1 %vm8443_vm8, %v8509_v0  ;;  %8594 = vst [vmem:[#allocation121_spill] sm:$0xff] %v6723_v9 }
 0x7ac   :  { %2325 = vmin.xlane.f32.xlu0 %v2306_v11 }
 0x7b1   :  { %v6711_v3 = vpop.xlane.xlu1 %2092  ;;  %v2264_v2 = vpop.xlane.xlu2 %2263 }
 0x7b2   :  { %8593 = vst [vmem:[#allocation120_spill] sm:$0xff] %v6711_v3  ;;  %vm8441_vm14 = vcmp.eq.f32.partialorder %v4378_v24, %v6711_v3  ;;  %vm2291_vm3 = vcmp.ge.f32.partialorder %v6545_v34, %v2264_v2  ;;  %v6727_v14 = vpop.f32.mrf.mxu2  ;;  %v6793_v3 = vpop.f32.mrf.mxu3 }
 0x7b3   :  { %v2307_v38 = vsel %vm2291_vm3, %v4378_v24, 128.0  ;;  %4012 = vmatmul.msk.f32.gmra.mxu1 %vm8441_vm14, %v8509_v0  ;;  %8595 = vst [vmem:[#allocation122_spill] sm:$0xff] %v6727_v14 }
 0x7b4   :  { %2327 = vmin.xlane.f32.xlu0 %v2307_v38  ;;  %v6735_v38 = vsel %vm8447_vm11, -inf, %v6391_v63 }
 0x7b9   :  { %v2266_v11 = vpop.xlane.xlu2 %2265 }
 0x7ba   :  { %vm2292_vm2 = vcmp.ge.f32.partialorder %v6560_v61, %v2266_v11  ;;  %v6738_v61 = vpop.f32.mrf.mxu2 }
 0x7bb   :  { %v2308_v25 = vsel %vm2292_vm2, %v4378_v24, 128.0 }
 0x7bc   :  { %2329 = vmin.xlane.f32.xlu0 %v2308_v25  ;;  %v6744_v25 = vsel %vm8445_vm4, -inf, %v6410_v39 }
 0x7c1   :  { %v2268_v2 = vpop.xlane.xlu2 %2267 }
 0x7c2   :  { %vm2293_vm6 = vcmp.ge.f32.partialorder %v6575_v4, %v2268_v2  ;;  %v6747_v4 = vpop.f32.mrf.mxu2 }
 0x7c3   :  { %v2309_v34 = vsel %vm2293_vm6, %v4378_v24, 128.0 }
 0x7c4   :  { %2279 = vmax.xlane.f32.xlu0 %v6735_v38  ;;  %2331 = vmin.xlane.f32.xlu2 %v2309_v34 }
 0x7ca   :  { %v6749_v11 = vpop.f32.mrf.mxu2 }
 0x7cc   :  { %2281 = vmax.xlane.f32.xlu2 %v6744_v25 }
 0x7d2   :  { %v6759_v63 = vpop.f32.mrf.mxu2 }
 0x7da   :  { %v6763_v8 = vpop.f32.mrf.mxu2 }
 0x7df   :  { %v6751_v2 = vpop.xlane.xlu0 %2319 }
 0x7e0   :  { %8596 = vst [vmem:[#allocation123_spill] sm:$0xff] %v6751_v2  ;;  %vm2351_vm6 = vcmp.eq.f32.partialorder %v4378_v24, %v6751_v2  ;;  %v6771_v2 = vsel %vm8443_vm8, -inf, %v6429_v62 }
 0x7e1   :  { %4029 = vmatmul.msk.f32.vlgmr.msrb.gmra.mxu2 %vm2351_vm6, %v8509_v0 }
 0x7e7   :  { %v2270_v39 = vpop.xlane.xlu2 %2269 }
 0x7e8   :  { %vm2294_vm3 = vcmp.ge.f32.partialorder %v6594_v50, %v2270_v39 }
 0x7e9   :  { %v2310_v34 = vsel %vm2294_vm3, %v4378_v24, 128.0 }
 0x7ea   :  { %2333 = vmin.xlane.f32.xlu1 %v2310_v34 }
 0x7ef   :  { %v2272_v54 = vpop.xlane.xlu2 %2271 }
 0x7f0   :  { %vm2295_vm2 = vcmp.ge.f32.partialorder %v6613_v36, %v2272_v54  ;;  %v6780_v54 = vsel %vm8441_vm14, -inf, %v6448_v1  ;;  %v6782_v36 = vpop.f32.mrf.mxu2 }
 0x7f1   :  { %v2311_v28 = vsel %vm2295_vm2, %v4378_v24, 128.0 }
 0x7f2   :  { %2283 = vmax.xlane.f32.xlu1 %v6771_v2  ;;  %2335 = vmin.xlane.f32.xlu0 %v2311_v28 }
 0x7f7   :  { %v2274_v50 = vpop.xlane.xlu2 %2273 }
 0x7f8   :  { %vm2296_vm3 = vcmp.ge.f32.partialorder %v6630_v44, %v2274_v50  ;;  %v6787_v44 = vpop.f32.mrf.mxu2 }
 0x7f9   :  { %v2312_v39 = vsel %vm2296_vm3, %v4378_v24, 128.0 }
 0x7fa   :  { %2285 = vmax.xlane.f32.xlu0 %v6780_v54  ;;  %2337 = vmin.xlane.f32.xlu2 %v2312_v39  ;;  %v6797_v39 = vpop.f32.mrf.mxu0 }
 0x7ff   :  { %v2276_v62 = vpop.xlane.xlu2 %2275 }
 0x800   :  { %vm2297_vm2 = vcmp.ge.f32.partialorder %v6647_v48, %v2276_v62  ;;  %v6791_v1 = vpop.f32.mrf.mxu2  ;;  %v6805_v48 = vpop.f32.mrf.mxu1 }
 0x801   :  { %v2313_v28 = vsel %vm2297_vm2, %v4378_v24, 128.0 }
 0x802   :  { %2339 = vmin.xlane.f32.xlu1 %v2313_v28  ;;  %v6811_v28 = vpop.f32.mrf.mxu3 }
 0x807   :  { %v2278_v34 = vpop.xlane.xlu1 %2277 }
 0x808   :  { %vm2298_vm3 = vcmp.ge.f32.partialorder %v6666_v19, %v2278_v34  ;;  %v6807_v19 = vpop.f32.mrf.mxu2  ;;  %v6819_v34 = vpop.f32.mrf.mxu0 }
 0x809   :  { %v2314_v50 = vsel %vm2298_vm3, %v4378_v24, 128.0 }
 0x80a   :  { %2341 = vmin.xlane.f32.xlu2 %v2314_v50  ;;  %v6821_v50 = vpop.f32.mrf.mxu1  ;;  %v6833_v14 = vpop.f32.mrf.mxu3 }
 0x80b   :  { %8600 = vst [vmem:[#allocation127_spill] sm:$0xff] %v6833_v14 }
 0x80f   :  { %v6795_v45 = vpop.xlane.xlu0 %2321 }
 0x810   :  { %8597 = vst [vmem:[#allocation124_spill] sm:$0xff] %v6795_v45  ;;  %vm2352_vm2 = vcmp.eq.f32.partialorder %v4378_v24, %v6795_v45  ;;  %v6825_v31 = vpop.f32.mrf.mxu2 }
 0x811   :  { %4030 = vmatmul.msk.f32.gmra.mxu2 %vm2352_vm2, %v8509_v0 }
 0x812   :  { %v6837_v9 = vpop.f32.mrf.mxu1 }
 0x813   :  { %8602 = vst [vmem:[#allocation129_spill] sm:$0xff] %v6837_v9 }
 0x817   :  { %v6809_v62 = vpop.xlane.xlu0 %2323 }
 0x818   :  { %8598 = vst [vmem:[#allocation125_spill] sm:$0xff] %v6809_v62  ;;  %vm8456_vm3 = vcmp.eq.f32.partialorder %v4378_v24, %v6809_v62  ;;  %v6835_v62 = vpop.f32.mrf.mxu0  ;;  %v6847_v20 = vpop.f32.mrf.mxu2 }
 0x819   :  { %4031 = vmatmul.msk.f32.gmra.mxu2 %vm8456_vm3, %v8509_v0  ;;  %8601 = vst [vmem:[#allocation128_spill] sm:$0xff] %v6835_v62 }
 0x81a   :  { %8604 = vst [vmem:[#allocation131_spill] sm:$0xff] %v6847_v20  ;;  %v6855_v7 = vpop.f32.mrf.mxu1 }
 0x81b   :  { %8608 = vst [vmem:[#allocation135_spill] sm:$0xff] %v6855_v7 }
 0x81f   :  { %v6823_v45 = vpop.xlane.xlu0 %2325 }
 0x820   :  { %8599 = vst [vmem:[#allocation126_spill] sm:$0xff] %v6823_v45  ;;  %vm8455_vm14 = vcmp.eq.f32.partialorder %v4378_v24, %v6823_v45  ;;  %v6849_v45 = vpop.f32.mrf.mxu3  ;;  %v6851_v26 = vpop.f32.mrf.mxu0 }
 0x821   :  { %4032 = vmatmul.msk.f32.gmra.mxu2 %vm8455_vm14, %v8509_v0  ;;  %8605 = vst [vmem:[#allocation132_spill] sm:$0xff] %v6849_v45  ;;  %vm2560_vm14 = vcmask 130048  }
 0x822   :  { %8606 = vst [vmem:[#allocation133_spill] sm:$0xff] %v6851_v26 }
 0x827   :  { %v6839_v41 = vpop.xlane.xlu0 %2327 }
 0x828   :  { %8603 = vst [vmem:[#allocation130_spill] sm:$0xff] %v6839_v41  ;;  %vm8448_vm8 = vcmp.eq.f32.partialorder %v4378_v24, %v6839_v41  ;;  %v6863_v41 = vpop.f32.mrf.mxu2  ;;  %v6865_v9 = vpop.f32.mrf.mxu3 }
 0x829   :  { %4033 = vmatmul.msk.f32.gmra.mxu2 %vm8448_vm8, %v8509_v0  ;;  %8609 = vst [vmem:[#allocation136_spill] sm:$0xff] %v6863_v41  ;;  %v6869_v26 = vpop.f32.mrf.mxu0 }
 0x82a   :  { %8610 = vst [vmem:[#allocation137_spill] sm:$0xff] %v6865_v9 }
 0x82b   :  { %8612 = vst [vmem:[#allocation139_spill] sm:$0xff] %v6869_v26 }
 0x82f   :  { %v6853_v53 = vpop.xlane.xlu0 %2329 }
 0x830   :  { %8607 = vst [vmem:[#allocation134_spill] sm:$0xff] %v6853_v53  ;;  %vm8450_vm4 = vcmp.eq.f32.partialorder %v4378_v24, %v6853_v53  ;;  %v6879_v53 = vpop.f32.mrf.mxu1  ;;  %v6881_v9 = vpop.f32.mrf.mxu2 }
 0x831   :  { %4034 = vmatmul.msk.f32.gmra.mxu2 %vm8450_vm4, %v8509_v0  ;;  %8613 = vst [vmem:[#allocation140_spill] sm:$0xff] %v6879_v53  ;;  %v6883_v14 = vpop.f32.mrf.mxu3 }
 0x832   :  { %8614 = vst [vmem:[#allocation141_spill] sm:$0xff] %v6881_v9 }
 0x833   :  { %8615 = vst [vmem:[#allocation142_spill] sm:$0xff] %v6883_v14 }
 0x837   :  { %v2280_v20 = vpop.xlane.xlu0 %2279  ;;  %v6867_v45 = vpop.xlane.xlu2 %2331 }
 0x838   :  { %8611 = vst [vmem:[#allocation138_spill] sm:$0xff] %v6867_v45  ;;  %vm2299_vm11 = vcmp.ge.f32.partialorder %v6735_v38, %v2280_v20  ;;  %vm8454_vm8 = vcmp.eq.f32.partialorder %v4378_v24, %v6867_v45  ;;  %v6887_v38 = vpop.f32.mrf.mxu0  ;;  %v6889_v26 = vpop.f32.mrf.mxu1 }
 0x839   :  { %v2315_v7 = vsel %vm2299_vm11, %v4378_v24, 128.0  ;;  %4035 = vmatmul.msk.f32.gmra.mxu2 %vm8454_vm8, %v8509_v0  ;;  %8616 = vst [vmem:[#allocation143_spill] sm:$0xff] %v6887_v38  ;;  %v6891_v62 = vpop.f32.mrf.mxu2  ;;  %v6896_v45 = vpop.f32.mrf.mxu3 }
 0x83a   :  { %2343 = vmin.xlane.f32.xlu0 %v2315_v7  ;;  %8617 = vst [vmem:[#allocation144_spill] sm:$0xff] %v6889_v26  ;;  %v41_v7 = vld [vmem:[%s8220_s3 + $0x28] sm:$0xff] }
 0x83b   :  { %8618 = vst [vmem:[#allocation145_spill] sm:$0xff] %v6891_v62  ;;  %2689 = vmatpush.msrb.mxu0 %v41_v7  ;;  %v954_v7 = vmax.f32 %v6004_v55, %v6292_v5  ;;  %v6930_v5 = vld [vmem:[%s8222_s4] ss:$0 sm:$0xff] }
 0x83c   :  { %8619 = vst [vmem:[#allocation146_spill] sm:$0xff] %v6896_v45 }
 0x83d   :  { %v1211_v45 = vmax.f32 %v954_v7, %v6580_v47  ;;  %v425_v7 = vadd.f32 %v6930_v5, %v5716_v12 }
 0x83f   :  { %v2282_v41 = vpop.xlane.xlu2 %2281 }
 0x840   :  { %vm2300_vm4 = vcmp.ge.f32.partialorder %v6744_v25, %v2282_v41  ;;  %v40_v41 = vld [vmem:[%s8220_s3 + $0x20] sm:$0xff]  ;;  %v6901_v25 = vpop.f32.mrf.mxu0  ;;  %v6903_v14 = vpop.f32.mrf.mxu1 }
 0x841   :  { %v2316_v20 = vsel %vm2300_vm4, %v4378_v24, 128.0  ;;  %2690 = vmatpush.msrb.mxu0 %v40_v41  ;;  %8620 = vst [vmem:[#allocation147_spill] sm:$0xff] %v6901_v25  ;;  %v6907_v26 = vpop.f32.mrf.mxu3  ;;  %v1468_v25 = vmax.f32 %v1211_v45, %v6738_v61 }
 0x842   :  { %2345 = vmin.xlane.f32.xlu1 %v2316_v20  ;;  %8621 = vst [vmem:[#allocation148_spill] sm:$0xff] %v6903_v14  ;;  %v6905_v20 = vpop.f32.mrf.mxu2 }
 0x843   :  { %8622 = vst [vmem:[#allocation149_spill] sm:$0xff] %v6905_v20  ;;  %v428_v20 = vadd.f32 %v6930_v5, %v5733_v56 }
 0x844   :  { %8623 = vst [vmem:[#allocation150_spill] sm:$0xff] %v6907_v26 }
 0x848   :  { %v6909_v62 = vpop.f32.mrf.mxu0  ;;  %v6911_v38 = vpop.f32.mrf.mxu1 }
 0x849   :  { %8624 = vst [vmem:[#allocation151_spill] sm:$0xff] %v6909_v62  ;;  %v1677_v41 = vpop.f32.mrf.mxu3 }
 0x84a   :  { %8625 = vst [vmem:[#allocation152_spill] sm:$0xff] %v6911_v38  ;;  %v6916_v9 = vpop.f32.mrf.mxu2  ;;  %v1725_v26 = vmax.f32 %v1468_v25, %v1677_v41 }
 0x84b   :  { %8626 = vst [vmem:[#allocation153_spill] sm:$0xff] %v6916_v9 }
 0x850   :  { %v1934_v14 = vpop.f32.mrf.mxu0  ;;  %v2191_v55 = vpop.f32.mrf.mxu1 }
 0x851   :  { %v1982_v47 = vmax.f32 %v1725_v26, %v1934_v14 }
 0x853   :  { %v2239_v45 = vmax.f32 %v1982_v47, %v2191_v55 }
 0x858   :  { %v1937_v55 = vpop.f32.mrf.mxu0  ;;  %v2194_v47 = vpop.f32.mrf.mxu1 }
 0x85d   :  { %v6919_v53 = vpop.xlane.xlu1 %2333 }
 0x85e   :  { %8627 = vst [vmem:[#allocation154_spill] sm:$0xff] %v6919_v53  ;;  %vm8452_vm4 = vcmp.eq.f32.partialorder %v4378_v24, %v6919_v53 }
 0x85f   :  { %4036 = vmatmul.msk.f32.gmra.mxu2 %vm8452_vm4, %v8509_v0 }
 0x864   :  { %v2432_v61 = vpop.f32.mrf.mxu2 }
 0x865   :  { %v2480_v9 = vmax.f32 %v2239_v45, %v2432_v61  ;;  %v2284_v38 = vpop.xlane.xlu1 %2283  ;;  %v6934_v25 = vpop.xlane.xlu0 %2335  ;;  %v955_v45 = vmax.f32 %v6021_v29, %v6309_v37 }
 0x866   :  { %8628 = vst [vmem:[#allocation155_spill] sm:$0xff] %v6934_v25  ;;  %vm2301_vm11 = vcmp.ge.f32.partialorder %v6771_v2, %v2284_v38  ;;  %vm2359_vm4 = vcmp.eq.f32.partialorder %v4378_v24, %v6934_v25  ;;  %v1680_v38 = vpop.f32.mrf.mxu3 }
 0x867   :  { %v2496_v41 = vadd.f32 %v2480_v9, %v425_v7  ;;  %v2317_v53 = vsel %vm2301_vm11, %v4378_v24, 128.0  ;;  %4037 = vmatmul.msk.f32.gmra.mxu2 %vm2359_vm4, %v8509_v0  ;;  %v1212_v61 = vmax.f32 %v955_v45, %v6597_v33 }
 0x868   :  { %2347 = vmin.xlane.f32.xlu2 %v2317_v53 }
 0x869   :  { %vm2512_vm8 = vcmp.gt.f32.partialorder %v2496_v41, 0.0  ;;  %v2528_v26 = vmul.f32 0.2, %v2496_v41 }
 0x86b   :  { %v6944_v14 = vsel %vm2512_vm8, %v2496_v41, %v2528_v26  ;;  %v1469_v41 = vmax.f32 %v1212_v61, %v6747_v4  ;;  %v1940_v26 = vpop.f32.mrf.mxu0 }
 0x86c   :  { %4061 = vmatmul.msk.f32.vlgmr.msrb.gmra.mxu0 %vm2560_vm14, %v6944_v14 }
 0x86d   :  { %v2286_v12 = vpop.xlane.xlu0 %2285  ;;  %v6948_v2 = vpop.xlane.xlu2 %2337 }
 0x86e   :  { %8629 = vst [vmem:[#allocation156_spill] sm:$0xff] %v6948_v2  ;;  %vm2302_vm3 = vcmp.ge.f32.partialorder %v6780_v54, %v2286_v12  ;;  %vm8464_vm11 = vcmp.eq.f32.partialorder %v4378_v24, %v6948_v2  ;;  %v1683_v7 = vpop.f32.mrf.mxu3  ;;  %v1726_v12 = vmax.f32 %v1469_v41, %v1680_v38  ;;  %v957_v38 = vmax.f32 %v6069_v21, %v6357_v17 }
 0x86f   :  { %v2318_v9 = vsel %vm2302_vm3, %v4378_v24, 128.0  ;;  %4038 = vmatmul.msk.f32.gmra.mxu2 %vm8464_vm11, %v8509_v0 }
 0x870   :  { %2349 = vmin.xlane.f32.xlu0 %v2318_v9  ;;  %v2197_v9 = vpop.f32.mrf.mxu1  ;;  %v1983_v2 = vmax.f32 %v1726_v12, %v1937_v55 }
 0x872   :  { %v2240_v25 = vmax.f32 %v1983_v2, %v2194_v47 }
 0x873   :  { %v1943_v61 = vpop.f32.mrf.mxu0 }
 0x875   :  { %v6958_v53 = vpop.xlane.xlu1 %2339 }
 0x876   :  { %8630 = vst [vmem:[#allocation157_spill] sm:$0xff] %v6958_v53  ;;  %vm8462_vm8 = vcmp.eq.f32.partialorder %v4378_v24, %v6958_v53  ;;  %v956_v53 = vmax.f32 %v6040_v58, %v6328_v35  ;;  %v1686_v33 = vpop.f32.mrf.mxu3 }
 0x877   :  { %4039 = vmatmul.msk.f32.gmra.mxu2 %vm8462_vm8, %v8509_v0 }
 0x878   :  { %v2200_v35 = vpop.f32.mrf.mxu1 }
 0x87b   :  { %v1946_v47 = vpop.f32.mrf.mxu0 }
 0x87d   :  { %v6966_v54 = vpop.xlane.xlu2 %2341 }
 0x87e   :  { %8631 = vst [vmem:[#allocation158_spill] sm:$0xff] %v6966_v54  ;;  %vm8461_vm3 = vcmp.eq.f32.partialorder %v4378_v24, %v6966_v54  ;;  %v1213_v54 = vmax.f32 %v956_v53, %v6618_v30  ;;  %v1214_v30 = vmax.f32 %v957_v38, %v6649_v46 }
 0x87f   :  { %4040 = vmatmul.msk.f32.gmra.mxu2 %vm8461_vm3, %v8509_v0 }
 0x880   :  { %v1470_v29 = vmax.f32 %v1213_v54, %v6749_v11  ;;  %v431_v11 = vadd.f32 %v6930_v5, %v5750_v6  ;;  %v958_v54 = vmax.f32 %v6087_v15, %v6375_v13 }
 0x882   :  { %v1727_v45 = vmax.f32 %v1470_v29, %v1683_v7  ;;  %v1215_v7 = vmax.f32 %v958_v54, %v6669_v27 }
 0x884   :  { %v1984_v41 = vmax.f32 %v1727_v45, %v1940_v26  ;;  %v1472_v29 = vmax.f32 %v1215_v7, %v6763_v8 }
 0x886   :  { %v2241_v2 = vmax.f32 %v1984_v41, %v2197_v9  ;;  %v2203_v9 = vpop.f32.mrf.mxu1 }
 0x894   :  { %v2435_v62 = vpop.f32.mrf.mxu2 }
 0x895   :  { %v2481_v37 = vmax.f32 %v2240_v25, %v2435_v62  ;;  %v1471_v62 = vmax.f32 %v1214_v30, %v6759_v63  ;;  %v1689_v25 = vpop.f32.mrf.mxu3  ;;  %v434_v63 = vadd.f32 %v6930_v5, %v5769_v52  ;;  %v437_v52 = vadd.f32 %v6930_v5, %v5798_v59  ;;  %v2206_v30 = vpop.f32.mrf.mxu1 }
 0x896   :  { %v1729_v13 = vmax.f32 %v1472_v29, %v1689_v25  ;;  %v440_v25 = vadd.f32 %v6930_v5, %v5818_v43 }
 0x897   :  { %v2497_v4 = vadd.f32 %v2481_v37, %v428_v20  ;;  %v1728_v21 = vmax.f32 %v1471_v62, %v1686_v33  ;;  %v959_v33 = vmax.f32 %v6106_v42, %v6394_v22 }
 0x898   :  { %v1986_v27 = vmax.f32 %v1729_v13, %v1946_v47 }
 0x899   :  { %vm2513_vm3 = vcmp.gt.f32.partialorder %v2497_v4, 0.0  ;;  %v2529_v58 = vmul.f32 0.2, %v2497_v4  ;;  %v1985_v46 = vmax.f32 %v1728_v21, %v1943_v61  ;;  %v1216_v61 = vmax.f32 %v959_v33, %v6683_v51  ;;  %v38_v33 = vld [vmem:[%s8220_s3 + $0x10] sm:$0xff] }
 0x89a   :  { %v2243_v38 = vmax.f32 %v1986_v27, %v2203_v9 }
 0x89b   :  { %v6987_v53 = vsel %vm2513_vm3, %v2497_v4, %v2529_v58  ;;  %v2242_v26 = vmax.f32 %v1985_v46, %v2200_v35  ;;  %v1949_v58 = vpop.f32.mrf.mxu0  ;;  %v1473_v8 = vmax.f32 %v1216_v61, %v6782_v36 }
 0x89c   :  { %v2438_v56 = vpop.f32.mrf.mxu2  ;;  %4062 = vmatmul.msk.f32.gmra.mxu0 %vm2560_vm14, %v6987_v53 }
 0x89d   :  { %v2482_v20 = vmax.f32 %v2241_v2, %v2438_v56  ;;  %v1692_v4 = vpop.f32.mrf.mxu3  ;;  %v960_v56 = vmax.f32 %v6130_v60, %v6418_v57  ;;  %v2209_v47 = vpop.f32.mrf.mxu1 }
 0x89e   :  { %v1730_v51 = vmax.f32 %v1473_v8, %v1692_v4  ;;  %v961_v4 = vmax.f32 %v6149_v32, %v6437_v18  ;;  %v962_v18 = vmax.f32 %v6793_v3, %v6797_v39  ;;  %v963_v39 = vmax.f32 %v6811_v28, %v6819_v34 }
 0x89f   :  { %v2498_v17 = vadd.f32 %v2482_v20, %v431_v11  ;;  %v1217_v11 = vmax.f32 %v960_v56, %v6702_v16 }
 0x8a0   :  { %v1987_v59 = vmax.f32 %v1730_v51, %v1949_v58  ;;  %v1218_v61 = vmax.f32 %v961_v4, %v6716_v23  ;;  %v446_v51 = vadd.f32 %v6930_v5, %v5861_v10 }
 0x8a1   :  { %vm2514_vm8 = vcmp.gt.f32.partialorder %v2498_v17, 0.0  ;;  %v2530_v55 = vmul.f32 0.2, %v2498_v17  ;;  %v1474_v54 = vmax.f32 %v1217_v11, %v6787_v44 }
 0x8a2   :  { %v2244_v62 = vmax.f32 %v1987_v59, %v2206_v30 }
 0x8a3   :  { %v6997_v12 = vsel %vm2514_vm8, %v2498_v17, %v2530_v55  ;;  %v1952_v60 = vpop.f32.mrf.mxu0 }
 0x8a4   :  { %v2441_v6 = vpop.f32.mrf.mxu2  ;;  %4063 = vmatmul.msk.f32.gmra.mxu0 %vm2560_vm14, %v6997_v12 }
 0x8a5   :  { %v2483_v15 = vmax.f32 %v2242_v26, %v2441_v6  ;;  %v1695_v21 = vpop.f32.mrf.mxu3  ;;  %v443_v6 = vadd.f32 %v6930_v5, %v5837_v49 }
 0x8a6   :  { %v1731_v16 = vmax.f32 %v1474_v54, %v1695_v21 }
 0x8a7   :  { %v2499_v37 = vadd.f32 %v2483_v15, %v434_v63 }
 0x8a8   :  { %v1988_v7 = vmax.f32 %v1731_v16, %v1952_v60 }
 0x8a9   :  { %vm2515_vm3 = vcmp.gt.f32.partialorder %v2499_v37, 0.0  ;;  %v2531_v45 = vmul.f32 0.2, %v2499_v37 }
 0x8aa   :  { %v2245_v26 = vmax.f32 %v1988_v7, %v2209_v47 }
 0x8ab   :  { %v7007_v41 = vsel %vm2515_vm3, %v2499_v37, %v2531_v45  ;;  %v39_v37 = vld [vmem:[%s8220_s3 + $0x18] sm:$0xff]  ;;  %v1955_v27 = vpop.f32.mrf.mxu0  ;;  %v2212_v45 = vpop.f32.mrf.mxu1 }
 0x8ac   :  { %v2444_v35 = vpop.f32.mrf.mxu2  ;;  %4064 = vmatmul.msk.f32.gmra.mxu0 %vm2560_vm14, %v7007_v41  ;;  %2623 = vmatpush.msra.mxu3 %v39_v37 }
 0x8ad   :  { %v2484_v42 = vmax.f32 %v2243_v38, %v2444_v35  ;;  %v7014_v22 = vpop.xlane.xlu0 %2343  ;;  %v1698_v49 = vpop.f32.mrf.mxu3  ;;  %v1475_v38 = vmax.f32 %v1218_v61, %v6791_v1  ;;  %v1219_v1 = vmax.f32 %v962_v18, %v6805_v48  ;;  %v8637_v61 = vld [vmem:[#allocation133_spill] sm:$0xff]  ;;  %v8639_v18 = vld [vmem:[#allocation135_spill] sm:$0xff] }
 0x8ae   :  { %vm8463_vm8 = vcmp.eq.f32.partialorder %v4378_v24, %v7014_v22  ;;  %2624 = vmatpush.msra.mxu3 %v38_v33  ;;  %v8636_v33 = vld [vmem:[#allocation131_spill] sm:$0xff] }
 0x8af   :  { %v2500_v2 = vadd.f32 %v2484_v42, %v437_v52  ;;  %4041 = vmatmul.msk.f32.gmra.mxu2 %vm8463_vm8, %v8509_v0  ;;  %v1732_v52 = vmax.f32 %v1475_v38, %v1698_v49  ;;  %v8638_v38 = vld [vmem:[#allocation132_spill] sm:$0xff] }
 0x8b1   :  { %vm2516_vm3 = vcmp.gt.f32.partialorder %v2500_v2, 0.0  ;;  %v2532_v36 = vmul.f32 0.2, %v2500_v2  ;;  %v1989_v32 = vmax.f32 %v1732_v52, %v1955_v27 }
 0x8b3   :  { %v7025_v20 = vsel %vm2516_vm3, %v2500_v2, %v2532_v36  ;;  %v1958_v8 = vpop.f32.mrf.mxu0  ;;  %v2215_v23 = vpop.f32.mrf.mxu1  ;;  %v2246_v42 = vmax.f32 %v1989_v32, %v2212_v45  ;;  %v1476_v2 = vmax.f32 %v1219_v1, %v6807_v19 }
 0x8b4   :  { %v2447_v17 = vpop.f32.mrf.mxu2  ;;  %4065 = vmatmul.msk.f32.gmra.mxu0 %vm2560_vm14, %v7025_v20 }
 0x8b5   :  { %v2485_v46 = vmax.f32 %v2244_v62, %v2447_v17  ;;  %v7032_v57 = vpop.xlane.xlu1 %2345  ;;  %v1701_v35 = vpop.f32.mrf.mxu3  ;;  %v1220_v62 = vmax.f32 %v963_v39, %v6821_v50  ;;  %v8632_v50 = vld [vmem:[#allocation128_spill] sm:$0xff] }
 0x8b6   :  { %vm2364_vm8 = vcmp.eq.f32.partialorder %v4378_v24, %v7032_v57  ;;  %v1733_v36 = vmax.f32 %v1476_v2, %v1701_v35  ;;  %v965_v35 = vmax.f32 %v8638_v38, %v8637_v61 }
 0x8b7   :  { %v2501_v55 = vadd.f32 %v2485_v46, %v440_v25  ;;  %4042 = vmatmul.msk.f32.gmra.mxu2 %vm2364_vm8, %v8509_v0  ;;  %v449_v46 = vadd.f32 %v6930_v5, %v6601_v40  ;;  %v1477_v60 = vmax.f32 %v1220_v62, %v6825_v31  ;;  %v8635_v31 = vld [vmem:[#allocation110_spill] sm:$0xff] }
 0x8b8   :  { %v1990_v10 = vmax.f32 %v1733_v36, %v1958_v8  ;;  %v452_v37 = vadd.f32 %v6930_v5, %v8635_v31  ;;  %v1222_v32 = vmax.f32 %v965_v35, %v8639_v18 }
 0x8b9   :  { %vm2517_vm3 = vcmp.gt.f32.partialorder %v2501_v55, 0.0  ;;  %v2533_v43 = vmul.f32 0.2, %v2501_v55 }
 0x8ba   :  { %v2247_v21 = vmax.f32 %v1990_v10, %v2215_v23 }
 0x8bb   :  { %v7040_v44 = vsel %vm2517_vm3, %v2501_v55, %v2533_v43  ;;  %v1961_v19 = vpop.f32.mrf.mxu0  ;;  %v2218_v25 = vpop.f32.mrf.mxu1  ;;  %v8633_v55 = vld [vmem:[#allocation127_spill] sm:$0xff] }
 0x8bc   :  { %v2450_v9 = vpop.f32.mrf.mxu2  ;;  %4066 = vmatmul.msk.f32.gmra.mxu0 %vm2560_vm14, %v7040_v44  ;;  %v964_v47 = vmax.f32 %v8633_v55, %v8632_v50  ;;  %v8644_v50 = vld [vmem:[#allocation137_spill] sm:$0xff] }
 0x8bd   :  { %v2486_v63 = vmax.f32 %v2245_v26, %v2450_v9  ;;  %v1704_v3 = vpop.f32.mrf.mxu3  ;;  %v8634_v9 = vld [vmem:[#allocation129_spill] sm:$0xff] }
 0x8be   :  { %v1734_v34 = vmax.f32 %v1477_v60, %v1704_v3 }
 0x8bf   :  { %v2502_v29 = vadd.f32 %v2486_v63, %v443_v6  ;;  %v1221_v6 = vmax.f32 %v964_v47, %v8634_v9  ;;  %v8645_v47 = vld [vmem:[#allocation140_spill] sm:$0xff] }
 0x8c0   :  { %v1991_v7 = vmax.f32 %v1734_v34, %v1961_v19 }
 0x8c1   :  { %vm2518_vm11 = vcmp.gt.f32.partialorder %v2502_v29, 0.0  ;;  %v2534_v15 = vmul.f32 0.2, %v2502_v29 }
 0x8c2   :  { %v2248_v63 = vmax.f32 %v1991_v7, %v2218_v25 }
 0x8c3   :  { %v7046_v13 = vsel %vm2518_vm11, %v2502_v29, %v2534_v15  ;;  %v1964_v40 = vpop.f32.mrf.mxu0  ;;  %v2221_v27 = vpop.f32.mrf.mxu1 }
 0x8c4   :  { %4067 = vmatmul.msk.f32.gmra.mxu0 %vm2560_vm14, %v7046_v13 }
 0x8c5   :  { %v1707_v26 = vpop.f32.mrf.mxu3 }
 0x8cb   :  { %v2224_v10 = vpop.f32.mrf.mxu1 }
 0x8db   :  { %v7060_v58 = vpop.xlane.xlu2 %2347 }
 0x8dc   :  { %vm8465_vm11 = vcmp.eq.f32.partialorder %v4378_v24, %v7060_v58 }
 0x8dd   :  { %4043 = vmatmul.msk.f32.gmra.mxu2 %vm8465_vm11, %v8509_v0 }
 0x8e2   :  { %v2453_v30 = vpop.f32.mrf.mxu2 }
 0x8e3   :  { %v2487_v56 = vmax.f32 %v2246_v42, %v2453_v30  ;;  %v7074_v59 = vpop.xlane.xlu0 %2349  ;;  %v1710_v42 = vpop.f32.mrf.mxu3 }
 0x8e4   :  { %vm8466_vm3 = vcmp.eq.f32.partialorder %v4378_v24, %v7074_v59 }
 0x8e5   :  { %v2503_v11 = vadd.f32 %v2487_v56, %v446_v51  ;;  %4044 = vmatmul.msk.f32.vlgmr.msrb.gmra.mxu3 %vm8466_vm3, %v8509_v0  ;;  %v8640_v51 = vld [vmem:[#allocation112_spill] sm:$0xff] }
 0x8e6   :  { %v455_v2 = vadd.f32 %v6930_v5, %v8640_v51  ;;  %v8641_v56 = vld [vmem:[#allocation136_spill] sm:$0xff] }
 0x8e7   :  { %vm2519_vm11 = vcmp.gt.f32.partialorder %v2503_v11, 0.0  ;;  %v2535_v48 = vmul.f32 0.2, %v2503_v11  ;;  %v1479_v36 = vmax.f32 %v1222_v32, %v8641_v56 }
 0x8e9   :  { %v7085_v17 = vsel %vm2519_vm11, %v2503_v11, %v2535_v48  ;;  %v1967_v11 = vpop.f32.mrf.mxu0  ;;  %v1736_v3 = vmax.f32 %v1479_v36, %v1710_v42  ;;  %v8652_v42 = vld [vmem:[#allocation119_spill] sm:$0xff] }
 0x8ea   :  { %v2456_v54 = vpop.f32.mrf.mxu2  ;;  %4068 = vmatmul.msk.f32.gmra.mxu0 %vm2560_vm14, %v7085_v17 }
 0x8eb   :  { %v2488_v28 = vmax.f32 %v2247_v21, %v2456_v54  ;;  %v1993_v48 = vmax.f32 %v1736_v3, %v1967_v11  ;;  %v8642_v54 = vld [vmem:[#allocation114_spill] sm:$0xff]  ;;  %v1713_v55 = vpop.f32.mrf.mxu3 }
 0x8ed   :  { %v2504_v16 = vadd.f32 %v2488_v28, %v449_v46  ;;  %4045 = vmatmul.msk.f32.vlgmr.msra.gmra.mxu3 %vm2560_vm14, %v6944_v14  ;;  %v1478_v14 = vmax.f32 %v1221_v6, %v8636_v33  ;;  %v2250_v62 = vmax.f32 %v1993_v48, %v2224_v10  ;;  %v458_v46 = vadd.f32 %v6930_v5, %v8642_v54  ;;  %v2227_v6 = vpop.f32.mrf.mxu1  ;;  %v8657_v54 = vld [vmem:[#allocation151_spill] sm:$0xff] }
 0x8ef   :  { %vm2520_vm11 = vcmp.gt.f32.partialorder %v2504_v16, 0.0  ;;  %v2536_v43 = vmul.f32 0.2, %v2504_v16  ;;  %v1735_v45 = vmax.f32 %v1478_v14, %v1707_v26  ;;  %v8646_v26 = vld [vmem:[#allocation141_spill] sm:$0xff] }
 0x8f0   :  { %v8650_v14 = vld [vmem:[#allocation117_spill] sm:$0xff] }
 0x8f1   :  { %v2552_v29 = vsel %vm2520_vm11, %v2504_v16, %v2536_v43  ;;  %v1992_v52 = vmax.f32 %v1735_v45, %v1964_v40  ;;  %v8643_v16 = vld [vmem:[#allocation139_spill] sm:$0xff]  ;;  %v1970_v43 = vpop.f32.mrf.mxu0 }
 0x8f2   :  { %v2459_v15 = vpop.f32.mrf.mxu2  ;;  %4069 = vmatmul.msk.f32.gmra.mxu0 %vm2560_vm14, %v2552_v29 }
 0x8f3   :  { %v2489_v49 = vmax.f32 %v2248_v63, %v2459_v15  ;;  %v2249_v23 = vmax.f32 %v1992_v52, %v2221_v27  ;;  %v8648_v63 = vld [vmem:[#allocation142_spill] sm:$0xff]  ;;  %v8649_v15 = vld [vmem:[#allocation144_spill] sm:$0xff]  ;;  %v8651_v27 = vld [vmem:[#allocation145_spill] sm:$0xff] }
 0x8f5   :  { %v2505_v4 = vadd.f32 %v2489_v49, %v452_v37  ;;  %4046 = vmatmul.msk.f32.gmra.mxu3 %vm2560_vm14, %v6987_v53  ;;  %v1716_v37 = vpop.f32.mrf.mxu3  ;;  %v461_v49 = vadd.f32 %v6930_v5, %v8650_v14 }
 0x8f7   :  { %vm2521_vm11 = vcmp.gt.f32.partialorder %v2505_v4, 0.0  ;;  %v2537_v8 = vmul.f32 0.2, %v2505_v4 }
 0x8f9   :  { %v2553_v1 = vsel %vm2521_vm11, %v2505_v4, %v2537_v8  ;;  %v1973_v61 = vpop.f32.mrf.mxu0 }
 0x8fa   :  { %v2462_v30 = vpop.f32.mrf.mxu2  ;;  %4070 = vmatmul.msk.f32.gmra.mxu0 %vm2560_vm14, %v2553_v1 }
 0x8fb   :  { %v2490_v53 = vmax.f32 %v2249_v23, %v2462_v30  ;;  %v464_v30 = vadd.f32 %v6930_v5, %v8652_v42 }
 0x8fd   :  { %v2506_v39 = vadd.f32 %v2490_v53, %v455_v2  ;;  %4047 = vmatmul.msk.f32.gmra.mxu3 %vm2560_vm14, %v6997_v12  ;;  %v8654_v53 = vld [vmem:[#allocation146_spill] sm:$0xff]  ;;  %v1719_v3 = vpop.f32.mrf.mxu3 }
 0x8ff   :  { %vm2522_vm3 = vcmp.gt.f32.partialorder %v2506_v39, 0.0  ;;  %v2538_v19 = vmul.f32 0.2, %v2506_v39 }
 0x901   :  { %v2554_v21 = vsel %vm2522_vm3, %v2506_v39, %v2538_v19  ;;  %v8655_v39 = vld [vmem:[#allocation148_spill] sm:$0xff]  ;;  %v1976_v48 = vpop.f32.mrf.mxu0  ;;  %v8656_v19 = vld [vmem:[#allocation149_spill] sm:$0xff] }
 0x902   :  { %v2465_v25 = vpop.f32.mrf.mxu2  ;;  %4071 = vmatmul.msk.f32.gmra.mxu0 %vm2560_vm14, %v2554_v21 }
 0x903   :  { %v2491_v60 = vmax.f32 %v2250_v62, %v2465_v25 }
 0x905   :  { %v2507_v28 = vadd.f32 %v2491_v60, %v458_v46  ;;  %4048 = vmatmul.msk.f32.gmra.mxu3 %vm2560_vm14, %v7007_v41  ;;  %v966_v41 = vmax.f32 %v8644_v50, %v8643_v16  ;;  %v8658_v46 = vld [vmem:[#allocation150_spill] sm:$0xff]  ;;  %v1722_v50 = vpop.f32.mrf.mxu3 }
 0x906   :  { %v969_v60 = vmax.f32 %v8658_v46, %v8657_v54  ;;  %v8672_v46 = vld [vmem:[#allocation23_spill] sm:$0xff] }
 0x907   :  { %vm2523_vm11 = vcmp.gt.f32.partialorder %v2507_v28, 0.0  ;;  %v2539_v34 = vmul.f32 0.2, %v2507_v28  ;;  %v1223_v7 = vmax.f32 %v966_v41, %v8645_v47 }
 0x909   :  { %v2555_v12 = vsel %vm2523_vm11, %v2507_v28, %v2539_v34  ;;  %v1480_v9 = vmax.f32 %v1223_v7, %v8646_v26  ;;  %v8659_v34 = vld [vmem:[#allocation152_spill] sm:$0xff]  ;;  %v8661_v7 = vld [vmem:[#allocation153_spill] sm:$0xff] }
 0x90a   :  { %4072 = vmatmul.msk.f32.gmra.mxu0 %vm2560_vm14, %v2555_v12 }
 0x90d   :  { %4049 = vmatmul.msk.f32.gmra.mxu3 %vm2560_vm14, %v7025_v20  ;;  %v1737_v20 = vmax.f32 %v1480_v9, %v1713_v55  ;;  %v8660_v55 = vld [vmem:[#allocation121_spill] sm:$0xff]  ;;  %v1979_v9 = vpop.f32.mrf.mxu0 }
 0x90e   :  { %v467_v47 = vadd.f32 %v6930_v5, %v8660_v55 }
 0x915   :  { %4050 = vmatmul.msk.f32.gmra.mxu3 %vm2560_vm14, %v7040_v44  ;;  %v8647_v44 = vld [vmem:[#allocation143_spill] sm:$0xff] }
 0x916   :  { %v967_v40 = vmax.f32 %v8648_v63, %v8647_v44 }
 0x918   :  { %v1224_v31 = vmax.f32 %v967_v40, %v8649_v15 }
 0x91a   :  { %v1481_v45 = vmax.f32 %v1224_v31, %v8651_v27 }
 0x91c   :  { %v1738_v38 = vmax.f32 %v1481_v45, %v1716_v37 }
 0x91d   :  { %4051 = vmatmul.msk.f32.gmra.mxu3 %vm2560_vm14, %v7046_v13  ;;  %v1994_v13 = vmax.f32 %v1737_v20, %v1970_v43 }
 0x91e   :  { %v1995_v52 = vmax.f32 %v1738_v38, %v1973_v61 }
 0x925   :  { %4052 = vmatmul.msk.f32.gmra.mxu3 %vm2560_vm14, %v7085_v17  ;;  %v2251_v17 = vmax.f32 %v1994_v13, %v2227_v6 }
 0x92d   :  { %4053 = vmatmul.msk.f32.gmra.mxu3 %vm2560_vm14, %v2552_v29  ;;  %v2230_v29 = vpop.f32.mrf.mxu1 }
 0x92e   :  { %v2252_v18 = vmax.f32 %v1995_v52, %v2230_v29 }
 0x932   :  { %v2468_v33 = vpop.f32.mrf.mxu2 }
 0x933   :  { %v2492_v4 = vmax.f32 %v2251_v17, %v2468_v33  ;;  %v8662_v17 = vld [vmem:[#allocation122_spill] sm:$0xff] }
 0x934   :  { %v470_v37 = vadd.f32 %v6930_v5, %v8662_v17  ;;  %v8709_v17 = vld [vmem:[#allocation58_spill] sm:$0xff] }
 0x935   :  { %v2508_v35 = vadd.f32 %v2492_v4, %v461_v49  ;;  %4054 = vmatmul.msk.f32.gmra.mxu3 %vm2560_vm14, %v2553_v1  ;;  %v8653_v1 = vld [vmem:[#allocation147_spill] sm:$0xff] }
 0x936   :  { %v968_v11 = vmax.f32 %v8654_v53, %v8653_v1  ;;  %v8749_v53 = vld [vmem:[#allocation31_spill] sm:$0xff] }
 0x937   :  { %vm2524_vm3 = vcmp.gt.f32.partialorder %v2508_v35, 0.0  ;;  %v2540_v8 = vmul.f32 0.2, %v2508_v35 }
 0x938   :  { %v1225_v10 = vmax.f32 %v968_v11, %v8655_v39  ;;  %v8751_v11 = vld [vmem:[#allocation47_spill] sm:$0xff] }
 0x939   :  { %v2556_v32 = vsel %vm2524_vm3, %v2508_v35, %v2540_v8 }
 0x93a   :  { %v2471_v23 = vpop.f32.mrf.mxu2  ;;  %4073 = vmatmul.msk.f32.gmra.mxu0 %vm2560_vm14, %v2556_v32  ;;  %v1482_v62 = vmax.f32 %v1225_v10, %v8656_v19  ;;  %v8758_v19 = vld [vmem:[#allocation32_spill] sm:$0xff] }
 0x93b   :  { %v2493_v51 = vmax.f32 %v2252_v18, %v2471_v23 }
 0x93c   :  { %v1739_v25 = vmax.f32 %v1482_v62, %v1719_v3  ;;  %v8753_v3 = vld [vmem:[#allocation63_spill] sm:$0xff]  ;;  %v8760_v62 = vld [vmem:[#allocation48_spill] sm:$0xff] }
 0x93d   :  { %v2509_v2 = vadd.f32 %v2493_v51, %v464_v30  ;;  %4055 = vmatmul.msk.f32.gmra.mxu3 %vm2560_vm14, %v2554_v21  ;;  %v2233_v21 = vpop.f32.mrf.mxu1 }
 0x93e   :  { %v1996_v28 = vmax.f32 %v1739_v25, %v1976_v48  ;;  %v8756_v48 = vld [vmem:[#allocation16_spill] sm:$0xff] }
 0x93f   :  { %vm2525_vm11 = vcmp.gt.f32.partialorder %v2509_v2, 0.0  ;;  %v2541_v56 = vmul.f32 0.2, %v2509_v2 }
 0x940   :  { %v2253_v16 = vmax.f32 %v1996_v28, %v2233_v21  ;;  %v8676_v28 = vld [vmem:[#allocation54_spill] sm:$0xff]  ;;  %v8762_v21 = vld [vmem:[#allocation64_spill] sm:$0xff] }
 0x941   :  { %v2557_v36 = vsel %vm2525_vm11, %v2509_v2, %v2541_v56  ;;  %v7210_v56 = vpop.f32.mrf.mxu0 }
 0x942   :  { %4074 = vmatmul.msk.f32.gmra.mxu0 %vm2560_vm14, %v2557_v36 }
 0x945   :  { %4056 = vmatmul.msk.f32.gmra.mxu3 %vm2560_vm14, %v2555_v12  ;;  %v1226_v12 = vmax.f32 %v969_v60, %v8659_v34  ;;  %v2236_v44 = vpop.f32.mrf.mxu1  ;;  %v8674_v60 = vld [vmem:[#allocation38_spill] sm:$0xff] }
 0x947   :  { %v1483_v43 = vmax.f32 %v1226_v12, %v8661_v7  ;;  %v8678_v12 = vld [vmem:[#allocation7_spill] sm:$0xff]  ;;  %v8688_v7 = vld [vmem:[#allocation25_spill] sm:$0xff] }
 0x949   :  { %v1740_v6 = vmax.f32 %v1483_v43, %v1722_v50  ;;  %v8682_v50 = vld [vmem:[#allocation39_spill] sm:$0xff]  ;;  %v8690_v43 = vld [vmem:[#allocation40_spill] sm:$0xff] }
 0x94b   :  { %v1997_v63 = vmax.f32 %v1740_v6, %v1979_v9  ;;  %v8694_v6 = vld [vmem:[#allocation9_spill] sm:$0xff] }
 0x94d   :  { %4057 = vmatmul.msk.f32.gmra.mxu3 %vm2560_vm14, %v2556_v32  ;;  %v2254_v13 = vmax.f32 %v1997_v63, %v2236_v44  ;;  %v8698_v44 = vld [vmem:[#allocation41_spill] sm:$0xff] }
 0x94e   :  { %v8700_v63 = vld [vmem:[#allocation57_spill] sm:$0xff] }
 0x955   :  { %4058 = vmatmul.msk.f32.gmra.mxu3 %vm2560_vm14, %v2557_v36  ;;  %v7228_v36 = vpop.f32.mrf.mxu0 }
 0x95d   :  { %v7250_v1 = vpop.f32.mrf.mxu0 }
 0x960   :  { %v2474_v41 = vpop.f32.mrf.mxu2 }
 0x961   :  { %v2494_v26 = vmax.f32 %v2253_v16, %v2474_v41  ;;  %v8680_v16 = vld [vmem:[#allocation24_spill] sm:$0xff]  ;;  %v8684_v41 = vld [vmem:[#allocation55_spill] sm:$0xff] }
 0x963   :  { %v2510_v20 = vadd.f32 %v2494_v26, %v467_v47  ;;  %v8686_v47 = vld [vmem:[#allocation8_spill] sm:$0xff] }
 0x964   :  { %v8692_v26 = vld [vmem:[#allocation56_spill] sm:$0xff] }
 0x965   :  { %vm2526_vm3 = vcmp.gt.f32.partialorder %v2510_v20, 0.0  ;;  %v2542_v40 = vmul.f32 0.2, %v2510_v20  ;;  %v7284_v10 = vpop.f32.mrf.mxu0 }
 0x967   :  { %v2558_v15 = vsel %vm2526_vm3, %v2510_v20, %v2542_v40  ;;  %vm8691_vm3 = vcmp.eq.f32.partialorder %v4378_v24, %v8690_v43  ;;  %v8696_v20 = vld [vmem:[#allocation21_spill] sm:$0xff] }
 0x968   :  { %v2477_v31 = vpop.f32.mrf.mxu3  ;;  %4059 = vmatmul.msk.f32.gmra.mxu3 %vm2560_vm14, %v2558_v15  ;;  %4075 = vmatmul.msk.f32.gmra.mxu0 %vm2560_vm14, %v2558_v15  ;;  %v8705_v15 = vld [vmem:[#allocation26_spill] sm:$0xff] }
 0x969   :  { %v2495_v33 = vmax.f32 %v2254_v13, %v2477_v31  ;;  %v8703_v13 = vld [vmem:[#allocation10_spill] sm:$0xff] }
 0x96a   :  { %v8707_v31 = vld [vmem:[#allocation42_spill] sm:$0xff] }
 0x96b   :  { %v2511_v14 = vadd.f32 %v2495_v33, %v470_v37  ;;  %v8712_v33 = vld [vmem:[#allocation11_spill] sm:$0xff] }
 0x96d   :  { %vm2527_vm11 = vcmp.gt.f32.partialorder %v2511_v14, 0.0  ;;  %v2543_v49 = vmul.f32 0.2, %v2511_v14  ;;  %v7318_v25 = vpop.f32.mrf.mxu0 }
 0x96f   :  { %v2559_v27 = vsel %vm2527_vm11, %v2511_v14, %v2543_v49  ;;  %vm8693_vm11 = vcmp.eq.f32.partialorder %v4378_v24, %v8692_v26  ;;  %v8714_v14 = vld [vmem:[#allocation27_spill] sm:$0xff] }
 0x970   :  { %v7160_v45 = vpop.f32.mrf.mxu3  ;;  %4060 = vmatmul.msk.f32.gmra.mxu3 %vm2560_vm14, %v2559_v27  ;;  %4076 = vmatmul.msk.f32.gmra.mxu0 %vm2560_vm14, %v2559_v27  ;;  %v8716_v49 = vld [vmem:[#allocation43_spill] sm:$0xff] }
 0x971   :  { %v8718_v27 = vld [vmem:[#allocation59_spill] sm:$0xff] }
 0x975   :  { %v7352_v34 = vpop.f32.mrf.mxu0 }
 0x978   :  { %v7164_v4 = vpop.f32.mrf.mxu3 }
 0x97d   :  { %v7386_v55 = vpop.f32.mrf.mxu0 }
 0x980   :  { %v7166_v61 = vpop.f32.mrf.mxu3 }
 0x985   :  { %v7416_v9 = vpop.f32.mrf.mxu0 }
 0x988   :  { %v7168_v38 = vpop.f32.mrf.mxu3 }
 0x98d   :  { %v7434_v40 = vpop.f32.mrf.mxu0 }
 0x98e   :  { %8702 = vst [vmem:[#allocation128_spill] sm:$0xff] %v7434_v40 }
 0x990   :  { %v7170_v35 = vpop.f32.mrf.mxu3 }
 0x995   :  { %v7452_v37 = vpop.f32.mrf.mxu0 }
 0x996   :  { %8711 = vst [vmem:[#allocation127_spill] sm:$0xff] %v7452_v37 }
 0x998   :  { %v7172_v5 = vpop.f32.mrf.mxu3 }
 0x9a0   :  { %v7174_v29 = vpop.f32.mrf.mxu3 }
 0x9a8   :  { %v7176_v52 = vpop.f32.mrf.mxu3 }
 0x9b0   :  { %v7178_v8 = vpop.f32.mrf.mxu3 }
 0x9b8   :  { %v7180_v18 = vpop.f32.mrf.mxu3 }
 0x9c0   :  { %v7182_v32 = vpop.f32.mrf.mxu3 }
 0x9c8   :  { %v7184_v23 = vpop.f32.mrf.mxu3 }
 0x9d0   :  { %v7186_v42 = vpop.f32.mrf.mxu3 }
 0x9d8   :  { %v7188_v30 = vpop.f32.mrf.mxu3 }
 0x9eb   :  { %v7190_v51 = vpop.f32.mrf.mxu3 }
 0x9f3   :  { %v7192_v2 = vpop.f32.mrf.mxu3 }
 0x9f4   :  { %2756 = vmatpush.msra.mxu1 %v7192_v2  ;;  %2837 = vmatpush.msra.mxu2 %v7192_v2 }
 0x9f5   :  { %2934 = vmatpush.msrb.mxu3 %v7192_v2  ;;  %3031 = vmatpush.msra.mxu0 %v7192_v2 }
 0x9f6   :  { %2757 = vmatpush.msra.mxu1 %v7190_v51  ;;  %2838 = vmatpush.msra.mxu2 %v7190_v51 }
 0x9f7   :  { %2935 = vmatpush.msrb.mxu3 %v7190_v51  ;;  %3032 = vmatpush.msra.mxu0 %v7190_v51 }
 0x9f8   :  { %2758 = vmatpush.msra.mxu1 %v7188_v30  ;;  %2839 = vmatpush.msra.mxu2 %v7188_v30 }
 0x9f9   :  { %2936 = vmatpush.msrb.mxu3 %v7188_v30  ;;  %3033 = vmatpush.msra.mxu0 %v7188_v30 }
 0x9fa   :  { %2759 = vmatpush.msra.mxu1 %v7186_v42  ;;  %2840 = vmatpush.msra.mxu2 %v7186_v42 }
 0x9fb   :  { %2937 = vmatpush.msrb.mxu3 %v7186_v42  ;;  %3034 = vmatpush.msra.mxu0 %v7186_v42 }
 0x9fc   :  { %2760 = vmatpush.msra.mxu1 %v7184_v23  ;;  %2841 = vmatpush.msra.mxu2 %v7184_v23 }
 0x9fd   :  { %2938 = vmatpush.msrb.mxu3 %v7184_v23  ;;  %3035 = vmatpush.msra.mxu0 %v7184_v23 }
 0x9fe   :  { %2761 = vmatpush.msra.mxu1 %v7182_v32  ;;  %2842 = vmatpush.msra.mxu2 %v7182_v32 }
 0x9ff   :  { %2939 = vmatpush.msrb.mxu3 %v7182_v32  ;;  %3036 = vmatpush.msra.mxu0 %v7182_v32 }
 0xa00   :  { %2762 = vmatpush.msra.mxu1 %v7180_v18  ;;  %2843 = vmatpush.msra.mxu2 %v7180_v18 }
 0xa01   :  { %2940 = vmatpush.msrb.mxu3 %v7180_v18  ;;  %3037 = vmatpush.msra.mxu0 %v7180_v18 }
 0xa02   :  { %2763 = vmatpush.msra.mxu1 %v7178_v8  ;;  %2844 = vmatpush.msra.mxu2 %v7178_v8 }
 0xa03   :  { %2941 = vmatpush.msrb.mxu3 %v7178_v8  ;;  %3038 = vmatpush.msra.mxu0 %v7178_v8 }
 0xa04   :  { %2764 = vmatpush.msra.mxu1 %v7176_v52  ;;  %2845 = vmatpush.msra.mxu2 %v7176_v52 }
 0xa05   :  { %2942 = vmatpush.msrb.mxu3 %v7176_v52  ;;  %3039 = vmatpush.msra.mxu0 %v7176_v52 }
 0xa06   :  { %2765 = vmatpush.msra.mxu1 %v7174_v29  ;;  %2846 = vmatpush.msra.mxu2 %v7174_v29 }
 0xa07   :  { %2943 = vmatpush.msrb.mxu3 %v7174_v29  ;;  %3040 = vmatpush.msra.mxu0 %v7174_v29 }
 0xa08   :  { %2766 = vmatpush.msra.mxu1 %v7172_v5  ;;  %2847 = vmatpush.msra.mxu2 %v7172_v5 }
 0xa09   :  { %2944 = vmatpush.msrb.mxu3 %v7172_v5  ;;  %3041 = vmatpush.msra.mxu0 %v7172_v5 }
 0xa0a   :  { %2767 = vmatpush.msra.mxu1 %v7170_v35  ;;  %2848 = vmatpush.msra.mxu2 %v7170_v35 }
 0xa0b   :  { %2945 = vmatpush.msrb.mxu3 %v7170_v35  ;;  %3042 = vmatpush.msra.mxu0 %v7170_v35 }
 0xa0c   :  { %2768 = vmatpush.msra.mxu1 %v7168_v38  ;;  %2849 = vmatpush.msra.mxu2 %v7168_v38 }
 0xa0d   :  { %2946 = vmatpush.msrb.mxu3 %v7168_v38  ;;  %3043 = vmatpush.msra.mxu0 %v7168_v38 }
 0xa0e   :  { %2769 = vmatpush.msra.mxu1 %v7166_v61  ;;  %2850 = vmatpush.msra.mxu2 %v7166_v61 }
 0xa0f   :  { %2947 = vmatpush.msrb.mxu3 %v7166_v61  ;;  %3044 = vmatpush.msra.mxu0 %v7166_v61 }
 0xa10   :  { %2770 = vmatpush.msra.mxu1 %v7164_v4  ;;  %2851 = vmatpush.msra.mxu2 %v7164_v4 }
 0xa11   :  { %2948 = vmatpush.msrb.mxu3 %v7164_v4  ;;  %3045 = vmatpush.msra.mxu0 %v7164_v4 }
 0xa12   :  { %2771 = vmatpush.msra.mxu1 %v7160_v45  ;;  %2852 = vmatpush.msra.mxu2 %v7160_v45 }
 0xa13   :  { %2949 = vmatpush.msrb.mxu3 %v7160_v45  ;;  %3046 = vmatpush.msra.mxu0 %v7160_v45 }
 0xa14   :  { %4080 = vmatmul.msk.f32.vlgmr.msra.gmra.mxu1 %vm568_vm9, %v8509_v0  ;;  %4096 = vmatmul.msk.f32.vlgmr.msra.gmra.mxu2 %vm809_vm13, %v8509_v0  ;;  %vm8673_vm9 = vcmp.eq.f32.partialorder %v4378_v24, %v8672_v46  ;;  %vm8677_vm13 = vcmp.eq.f32.partialorder %v4378_v24, %v8676_v28  ;;  %v8765_v46 = vld [vmem:[#allocation17_spill] sm:$0xff] }
 0xa15   :  { %4112 = vmatmul.msk.f32.vlgmr.msrb.gmra.mxu3 %vm1066_vm5, %v8509_v0  ;;  %4128 = vmatmul.msk.f32.vlgmr.msra.gmra.mxu0 %vm1323_vm1, %v8509_v0  ;;  %vm8683_vm5 = vcmp.eq.f32.partialorder %v4378_v24, %v8682_v50  ;;  %vm8687_vm1 = vcmp.eq.f32.partialorder %v4378_v24, %v8686_v47  ;;  %v8769_v28 = vld [vmem:[#allocation49_spill] sm:$0xff]  ;;  %v8774_v50 = vld [vmem:[#allocation18_spill] sm:$0xff] }
 0xa16   :  { %3128 = vmatpush.msrb.mxu1 %v7192_v2  ;;  %3225 = vmatpush.msrb.mxu2 %v7192_v2  ;;  %v8778_v47 = vld [vmem:[#allocation50_spill] sm:$0xff] }
 0xa17   :  { %3322 = vmatpush.msra.mxu3 %v7192_v2  ;;  %3419 = vmatpush.msrb.mxu0 %v7192_v2  ;;  %v8747_v2 = vld [vmem:[#allocation15_spill] sm:$0xff] }
 0xa18   :  { %3129 = vmatpush.msrb.mxu1 %v7190_v51  ;;  %3226 = vmatpush.msrb.mxu2 %v7190_v51 }
 0xa19   :  { %3323 = vmatpush.msra.mxu3 %v7190_v51  ;;  %3420 = vmatpush.msrb.mxu0 %v7190_v51 }
 0xa1a   :  { %3130 = vmatpush.msrb.mxu1 %v7188_v30  ;;  %3227 = vmatpush.msrb.mxu2 %v7188_v30 }
 0xa1b   :  { %3324 = vmatpush.msra.mxu3 %v7188_v30  ;;  %3421 = vmatpush.msrb.mxu0 %v7188_v30  ;;  %v8744_v30 = vld [vmem:[#allocation62_spill] sm:$0xff] }
 0xa1c   :  { %3131 = vmatpush.msrb.mxu1 %v7186_v42  ;;  %3228 = vmatpush.msrb.mxu2 %v7186_v42 }
 0xa1d   :  { %3325 = vmatpush.msra.mxu3 %v7186_v42  ;;  %3422 = vmatpush.msrb.mxu0 %v7186_v42  ;;  %v8742_v42 = vld [vmem:[#allocation46_spill] sm:$0xff] }
 0xa1e   :  { %4081 = vmatmul.msk.f32.gmra.mxu1 %vm569_vm10, %v8509_v0  ;;  %4097 = vmatmul.msk.f32.gmra.mxu2 %vm810_vm7, %v8509_v0  ;;  %vm8675_vm10 = vcmp.eq.f32.partialorder %v4378_v24, %v8674_v60  ;;  %vm8681_vm7 = vcmp.eq.f32.partialorder %v4378_v24, %v8680_v16  ;;  %v8767_v60 = vld [vmem:[#allocation33_spill] sm:$0xff] }
 0xa1f   :  { %4113 = vmatmul.msk.f32.gmra.mxu3 %vm1067_vm15, %v8509_v0  ;;  %4129 = vmatmul.msk.f32.gmra.mxu0 %vm1324_vm0, %v8509_v0  ;;  %vm8685_vm15 = vcmp.eq.f32.partialorder %v4378_v24, %v8684_v41  ;;  %vm8689_vm0 = vcmp.eq.f32.partialorder %v4378_v24, %v8688_v7  ;;  %v8776_v41 = vld [vmem:[#allocation34_spill] sm:$0xff] }
 0xa20   :  { %3132 = vmatpush.msrb.mxu1 %v7184_v23  ;;  %3229 = vmatpush.msrb.mxu2 %v7184_v23  ;;  %v8780_v7 = vld [vmem:[#allocation66_spill] sm:$0xff] }
 0xa21   :  { %3326 = vmatpush.msra.mxu3 %v7184_v23  ;;  %3423 = vmatpush.msrb.mxu0 %v7184_v23  ;;  %v8740_v23 = vld [vmem:[#allocation30_spill] sm:$0xff] }
 0xa22   :  { %3133 = vmatpush.msrb.mxu1 %v7182_v32  ;;  %3230 = vmatpush.msrb.mxu2 %v7182_v32 }
 0xa23   :  { %3327 = vmatpush.msra.mxu3 %v7182_v32  ;;  %3424 = vmatpush.msrb.mxu0 %v7182_v32  ;;  %v8738_v32 = vld [vmem:[#allocation14_spill] sm:$0xff] }
 0xa24   :  { %3134 = vmatpush.msrb.mxu1 %v7180_v18  ;;  %3231 = vmatpush.msrb.mxu2 %v7180_v18 }
 0xa25   :  { %3328 = vmatpush.msra.mxu3 %v7180_v18  ;;  %3425 = vmatpush.msrb.mxu0 %v7180_v18 }
 0xa26   :  { %3135 = vmatpush.msrb.mxu1 %v7178_v8  ;;  %3232 = vmatpush.msrb.mxu2 %v7178_v8 }
 0xa27   :  { %3329 = vmatpush.msra.mxu3 %v7178_v8  ;;  %3426 = vmatpush.msrb.mxu0 %v7178_v8  ;;  %v8735_v8 = vld [vmem:[#allocation61_spill] sm:$0xff] }
 0xa28   :  { %4082 = vmatmul.msk.f32.gmra.mxu1 %vm570_vm12, %v8509_v0  ;;  %4098 = vmatmul.msk.f32.gmra.mxu2 %vm8673_vm9, %v8509_v0  ;;  %vm8679_vm12 = vcmp.eq.f32.partialorder %v4378_v24, %v8678_v12  ;;  %vm8695_vm9 = vcmp.eq.f32.partialorder %v4378_v24, %v8694_v6  ;;  %v8771_v12 = vld [vmem:[#allocation65_spill] sm:$0xff]  ;;  %v8782_v6 = vld [vmem:[#allocation19_spill] sm:$0xff] }
 0xa29   :  { %4114 = vmatmul.msk.f32.gmra.mxu3 %vm8675_vm10, %v8509_v0  ;;  %4130 = vmatmul.msk.f32.gmra.mxu0 %vm8677_vm13, %v8509_v0  ;;  %vm8697_vm10 = vcmp.eq.f32.partialorder %v4378_v24, %v8696_v20  ;;  %vm8699_vm13 = vcmp.eq.f32.partialorder %v4378_v24, %v8698_v44  ;;  %v8784_v20 = vld [vmem:[#allocation35_spill] sm:$0xff] }
 0xa2a   :  { %3136 = vmatpush.msrb.mxu1 %v7176_v52  ;;  %3233 = vmatpush.msrb.mxu2 %v7176_v52  ;;  %v8786_v44 = vld [vmem:[#allocation51_spill] sm:$0xff] }
 0xa2b   :  { %3330 = vmatpush.msra.mxu3 %v7176_v52  ;;  %3427 = vmatpush.msrb.mxu0 %v7176_v52  ;;  %v8733_v52 = vld [vmem:[#allocation45_spill] sm:$0xff] }
 0xa2c   :  { %3137 = vmatpush.msrb.mxu1 %v7174_v29  ;;  %3234 = vmatpush.msrb.mxu2 %v7174_v29 }
 0xa2d   :  { %3331 = vmatpush.msra.mxu3 %v7174_v29  ;;  %3428 = vmatpush.msrb.mxu0 %v7174_v29  ;;  %v8731_v29 = vld [vmem:[#allocation29_spill] sm:$0xff] }
 0xa2e   :  { %3138 = vmatpush.msrb.mxu1 %v7172_v5  ;;  %3235 = vmatpush.msrb.mxu2 %v7172_v5 }
 0xa2f   :  { %3332 = vmatpush.msra.mxu3 %v7172_v5  ;;  %3429 = vmatpush.msrb.mxu0 %v7172_v5  ;;  %v8729_v5 = vld [vmem:[#allocation13_spill] sm:$0xff] }
 0xa30   :  { %3139 = vmatpush.msrb.mxu1 %v7170_v35  ;;  %3236 = vmatpush.msrb.mxu2 %v7170_v35 }
 0xa31   :  { %3333 = vmatpush.msra.mxu3 %v7170_v35  ;;  %3430 = vmatpush.msrb.mxu0 %v7170_v35  ;;  %v8727_v35 = vld [vmem:[#allocation60_spill] sm:$0xff] }
 0xa32   :  { %4083 = vmatmul.msk.f32.gmra.mxu1 %vm8679_vm12, %v8509_v0  ;;  %4099 = vmatmul.msk.f32.gmra.mxu2 %vm8681_vm7, %v8509_v0  ;;  %vm8701_vm12 = vcmp.eq.f32.partialorder %v4378_v24, %v8700_v63  ;;  %vm8704_vm7 = vcmp.eq.f32.partialorder %v4378_v24, %v8703_v13  ;;  %v8788_v63 = vld [vmem:[#allocation67_spill] sm:$0xff] }
 0xa33   :  { %4115 = vmatmul.msk.f32.gmra.mxu3 %vm8683_vm5, %v8509_v0  ;;  %4131 = vmatmul.msk.f32.gmra.mxu0 %vm8685_vm15, %v8509_v0  ;;  %vm8706_vm5 = vcmp.eq.f32.partialorder %v4378_v24, %v8705_v15  ;;  %vm8708_vm15 = vcmp.eq.f32.partialorder %v4378_v24, %v8707_v31 }
 0xa34   :  { %3140 = vmatpush.msrb.mxu1 %v7168_v38  ;;  %3237 = vmatpush.msrb.mxu2 %v7168_v38 }
 0xa35   :  { %3334 = vmatpush.msra.mxu3 %v7168_v38  ;;  %3431 = vmatpush.msrb.mxu0 %v7168_v38  ;;  %v8725_v38 = vld [vmem:[#allocation44_spill] sm:$0xff] }
 0xa36   :  { %3141 = vmatpush.msrb.mxu1 %v7166_v61  ;;  %3238 = vmatpush.msrb.mxu2 %v7166_v61 }
 0xa37   :  { %3335 = vmatpush.msra.mxu3 %v7166_v61  ;;  %3432 = vmatpush.msrb.mxu0 %v7166_v61  ;;  %v8723_v61 = vld [vmem:[#allocation28_spill] sm:$0xff] }
 0xa38   :  { %3142 = vmatpush.msrb.mxu1 %v7164_v4  ;;  %3239 = vmatpush.msrb.mxu2 %v7164_v4 }
 0xa39   :  { %3336 = vmatpush.msra.mxu3 %v7164_v4  ;;  %3433 = vmatpush.msrb.mxu0 %v7164_v4  ;;  %v8721_v4 = vld [vmem:[#allocation12_spill] sm:$0xff] }
 0xa3a   :  { %3143 = vmatpush.msrb.mxu1 %v7160_v45  ;;  %3240 = vmatpush.msrb.mxu2 %v7160_v45 }
 0xa3b   :  { %3337 = vmatpush.msra.mxu3 %v7160_v45  ;;  %3434 = vmatpush.msrb.mxu0 %v7160_v45  ;;  %v7470_v45 = vpop.f32.mrf.mxu0 }
 0xa3c   :  { %4084 = vmatmul.msk.f32.gmra.mxu1 %vm8687_vm1, %v8509_v0  ;;  %4100 = vmatmul.msk.f32.gmra.mxu2 %vm8689_vm0, %v8509_v0  ;;  %vm8710_vm1 = vcmp.eq.f32.partialorder %v4378_v24, %v8709_v17  ;;  %vm8713_vm0 = vcmp.eq.f32.partialorder %v4378_v24, %v8712_v33  ;;  %8720 = vst [vmem:[#allocation129_spill] sm:$0xff] %v7470_v45  ;;  %v8790_v17 = vld [vmem:[#allocation68_spill] sm:$0xff] }
 0xa3d   :  { %4116 = vmatmul.msk.f32.gmra.mxu3 %vm8691_vm3, %v8509_v0  ;;  %4132 = vmatmul.msk.f32.gmra.mxu0 %vm8693_vm11, %v8509_v0  ;;  %vm8715_vm3 = vcmp.eq.f32.partialorder %v4378_v24, %v8714_v14  ;;  %vm8717_vm11 = vcmp.eq.f32.partialorder %v4378_v24, %v8716_v49  ;;  %v8792_v33 = vld [vmem:[#allocation84_spill] sm:$0xff] }
 0xa3e   :  { %v8794_v49 = vld [vmem:[#allocation100_spill] sm:$0xff] }
 0xa43   :  { %v7504_v18 = vpop.f32.mrf.mxu0 }
 0xa44   :  { %4085 = vmatmul.msk.f32.gmra.mxu1 %vm8695_vm9, %v8509_v0  ;;  %4101 = vmatmul.msk.f32.gmra.mxu2 %vm8697_vm10, %v8509_v0  ;;  %vm8719_vm9 = vcmp.eq.f32.partialorder %v4378_v24, %v8718_v27  ;;  %vm8722_vm10 = vcmp.eq.f32.partialorder %v4378_v24, %v8721_v4  ;;  %8737 = vst [vmem:[#allocation110_spill] sm:$0xff] %v7504_v18  ;;  %v4256_v18 = vld [vmem:[%s8221_s0 + $0x38] sm:$0xff] }
 0xa45   :  { %4117 = vmatmul.msk.f32.gmra.mxu3 %vm8699_vm13, %v8509_v0  ;;  %4133 = vmatmul.msk.f32.gmra.mxu0 %vm8701_vm12, %v8509_v0  ;;  %vm8724_vm13 = vcmp.eq.f32.partialorder %v4378_v24, %v8723_v61  ;;  %vm8726_vm12 = vcmp.eq.f32.partialorder %v4378_v24, %v8725_v38  ;;  %v8797_v38 = vld [vmem:[#allocation69_spill] sm:$0xff] }
 0xa4b   :  { %v7522_v51 = vpop.f32.mrf.mxu0 }
 0xa4c   :  { %4086 = vmatmul.msk.f32.gmra.mxu1 %vm8704_vm7, %v8509_v0  ;;  %4102 = vmatmul.msk.f32.gmra.mxu2 %vm8706_vm5, %v8509_v0  ;;  %vm8728_vm7 = vcmp.eq.f32.partialorder %v4378_v24, %v8727_v35  ;;  %vm8730_vm5 = vcmp.eq.f32.partialorder %v4378_v24, %v8729_v5  ;;  %8746 = vst [vmem:[#allocation131_spill] sm:$0xff] %v7522_v51  ;;  %v8799_v35 = vld [vmem:[#allocation85_spill] sm:$0xff] }
 0xa4d   :  { %4118 = vmatmul.msk.f32.gmra.mxu3 %vm8708_vm15, %v8509_v0  ;;  %4134 = vmatmul.msk.f32.gmra.mxu0 %vm8710_vm1, %v8509_v0  ;;  %vm8732_vm15 = vcmp.eq.f32.partialorder %v4378_v24, %v8731_v29  ;;  %vm8734_vm1 = vcmp.eq.f32.partialorder %v4378_v24, %v8733_v52  ;;  %v8801_v5 = vld [vmem:[#allocation101_spill] sm:$0xff] }
 0xa53   :  { %v7540_v39 = vpop.f32.mrf.mxu0 }
 0xa54   :  { %4087 = vmatmul.msk.f32.gmra.mxu1 %vm8713_vm0, %v8509_v0  ;;  %4103 = vmatmul.msk.f32.gmra.mxu2 %vm8715_vm3, %v8509_v0  ;;  %vm8736_vm0 = vcmp.eq.f32.partialorder %v4378_v24, %v8735_v8  ;;  %vm8739_vm3 = vcmp.eq.f32.partialorder %v4378_v24, %v8738_v32  ;;  %8755 = vst [vmem:[#allocation133_spill] sm:$0xff] %v7540_v39 }
 0xa55   :  { %4119 = vmatmul.msk.f32.gmra.mxu3 %vm8717_vm11, %v8509_v0  ;;  %4135 = vmatmul.msk.f32.gmra.mxu0 %vm8719_vm9, %v8509_v0  ;;  %vm8741_vm11 = vcmp.eq.f32.partialorder %v4378_v24, %v8740_v23  ;;  %vm8743_vm9 = vcmp.eq.f32.partialorder %v4378_v24, %v8742_v42  ;;  %v8804_v23 = vld [vmem:[#allocation70_spill] sm:$0xff] }
 0xa56   :  { %v8806_v42 = vld [vmem:[#allocation86_spill] sm:$0xff] }
 0xa5b   :  { %v7558_v54 = vpop.f32.mrf.mxu0 }
 0xa5c   :  { %4088 = vmatmul.msk.f32.gmra.mxu1 %vm8722_vm10, %v8509_v0  ;;  %4104 = vmatmul.msk.f32.gmra.mxu2 %vm8724_vm13, %v8509_v0  ;;  %vm8745_vm10 = vcmp.eq.f32.partialorder %v4378_v24, %v8744_v30  ;;  %vm8748_vm13 = vcmp.eq.f32.partialorder %v4378_v24, %v8747_v2  ;;  %8764 = vst [vmem:[#allocation132_spill] sm:$0xff] %v7558_v54 }
 0xa5d   :  { %4120 = vmatmul.msk.f32.gmra.mxu3 %vm8726_vm12, %v8509_v0  ;;  %4136 = vmatmul.msk.f32.gmra.mxu0 %vm8728_vm7, %v8509_v0  ;;  %vm8750_vm12 = vcmp.eq.f32.partialorder %v4378_v24, %v8749_v53  ;;  %vm8752_vm7 = vcmp.eq.f32.partialorder %v4378_v24, %v8751_v11  ;;  %v8808_v53 = vld [vmem:[#allocation102_spill] sm:$0xff]  ;;  %v8810_v11 = vld [vmem:[#allocation125_spill] sm:$0xff] }
 0xa63   :  { %v7576_v16 = vpop.f32.mrf.mxu0 }
 0xa64   :  { %4089 = vmatmul.msk.f32.gmra.mxu1 %vm8730_vm5, %v8509_v0  ;;  %4105 = vmatmul.msk.f32.gmra.mxu2 %vm8732_vm15, %v8509_v0  ;;  %vm8754_vm5 = vcmp.eq.f32.partialorder %v4378_v24, %v8753_v3  ;;  %vm8757_vm15 = vcmp.eq.f32.partialorder %v4378_v24, %v8756_v48  ;;  %8773 = vst [vmem:[#allocation135_spill] sm:$0xff] %v7576_v16  ;;  %v4255_v16 = vld [vmem:[%s8221_s0 + $0x30] sm:$0xff] }
 0xa65   :  { %4121 = vmatmul.msk.f32.gmra.mxu3 %vm8734_vm1, %v8509_v0  ;;  %4137 = vmatmul.msk.f32.gmra.mxu0 %vm8736_vm0, %v8509_v0  ;;  %vm8759_vm1 = vcmp.eq.f32.partialorder %v4378_v24, %v8758_v19  ;;  %vm8761_vm0 = vcmp.eq.f32.partialorder %v4378_v24, %v8760_v62  ;;  %v4254_v62 = vld [vmem:[%s8221_s0 + $0x28] sm:$0xff] }
 0xa6c   :  { %4090 = vmatmul.msk.f32.gmra.mxu1 %vm8739_vm3, %v8509_v0  ;;  %4106 = vmatmul.msk.f32.gmra.mxu2 %vm8741_vm11, %v8509_v0  ;;  %vm8763_vm3 = vcmp.eq.f32.partialorder %v4378_v24, %v8762_v21  ;;  %vm8766_vm11 = vcmp.eq.f32.partialorder %v4378_v24, %v8765_v46  ;;  %v8812_v21 = vld [vmem:[#allocation71_spill] sm:$0xff] }
 0xa6d   :  { %4122 = vmatmul.msk.f32.gmra.mxu3 %vm8743_vm9, %v8509_v0  ;;  %4138 = vmatmul.msk.f32.gmra.mxu0 %vm8745_vm10, %v8509_v0  ;;  %vm8768_vm9 = vcmp.eq.f32.partialorder %v4378_v24, %v8767_v60  ;;  %vm8770_vm10 = vcmp.eq.f32.partialorder %v4378_v24, %v8769_v28  ;;  %v8814_v46 = vld [vmem:[#allocation87_spill] sm:$0xff]  ;;  %v8818_v28 = vld [vmem:[#allocation126_spill] sm:$0xff] }
 0xa6e   :  { %v8816_v60 = vld [vmem:[#allocation103_spill] sm:$0xff] }
 0xa74   :  { %4091 = vmatmul.msk.f32.gmra.mxu1 %vm8748_vm13, %v8509_v0  ;;  %4107 = vmatmul.msk.f32.gmra.mxu2 %vm8750_vm12, %v8509_v0  ;;  %vm8772_vm13 = vcmp.eq.f32.partialorder %v4378_v24, %v8771_v12  ;;  %vm8775_vm12 = vcmp.eq.f32.partialorder %v4378_v24, %v8774_v50 }
 0xa75   :  { %4123 = vmatmul.msk.f32.gmra.mxu3 %vm8752_vm7, %v8509_v0  ;;  %4139 = vmatmul.msk.f32.gmra.mxu0 %vm8754_vm5, %v8509_v0  ;;  %vm8777_vm7 = vcmp.eq.f32.partialorder %v4378_v24, %v8776_v41  ;;  %vm8779_vm5 = vcmp.eq.f32.partialorder %v4378_v24, %v8778_v47 }
 0xa7c   :  { %4092 = vmatmul.msk.f32.gmra.mxu1 %vm8757_vm15, %v8509_v0  ;;  %4108 = vmatmul.msk.f32.gmra.mxu2 %vm8759_vm1, %v8509_v0  ;;  %vm8781_vm15 = vcmp.eq.f32.partialorder %v4378_v24, %v8780_v7  ;;  %vm8783_vm1 = vcmp.eq.f32.partialorder %v4378_v24, %v8782_v6 }
 0xa7d   :  { %4124 = vmatmul.msk.f32.gmra.mxu3 %vm8761_vm0, %v8509_v0  ;;  %4140 = vmatmul.msk.f32.gmra.mxu0 %vm8763_vm3, %v8509_v0  ;;  %vm8785_vm0 = vcmp.eq.f32.partialorder %v4378_v24, %v8784_v20  ;;  %vm8787_vm3 = vcmp.eq.f32.partialorder %v4378_v24, %v8786_v44  ;;  %v8820_v44 = vld [vmem:[#allocation72_spill] sm:$0xff] }
 0xa84   :  { %4093 = vmatmul.msk.f32.gmra.mxu1 %vm8766_vm11, %v8509_v0  ;;  %4109 = vmatmul.msk.f32.gmra.mxu2 %vm8768_vm9, %v8509_v0  ;;  %vm8789_vm11 = vcmp.eq.f32.partialorder %v4378_v24, %v8788_v63  ;;  %vm8791_vm9 = vcmp.eq.f32.partialorder %v4378_v24, %v8790_v17  ;;  %v8822_v63 = vld [vmem:[#allocation88_spill] sm:$0xff] }
 0xa85   :  { %4125 = vmatmul.msk.f32.gmra.mxu3 %vm8770_vm10, %v8509_v0  ;;  %4141 = vmatmul.msk.f32.gmra.mxu0 %vm8772_vm13, %v8509_v0  ;;  %vm8793_vm10 = vcmp.eq.f32.partialorder %v4378_v24, %v8792_v33  ;;  %vm8795_vm13 = vcmp.eq.f32.partialorder %v4378_v24, %v8794_v49  ;;  %v8824_v17 = vld [vmem:[#allocation104_spill] sm:$0xff]  ;;  %v8826_v33 = vld [vmem:[#allocation130_spill] sm:$0xff] }
 0xa8c   :  { %4094 = vmatmul.msk.f32.gmra.mxu1 %vm8775_vm12, %v8509_v0  ;;  %4110 = vmatmul.msk.f32.gmra.mxu2 %vm8777_vm7, %v8509_v0  ;;  %vm8798_vm12 = vcmp.eq.f32.partialorder %v4378_v24, %v8797_v38  ;;  %vm8800_vm7 = vcmp.eq.f32.partialorder %v4378_v24, %v8799_v35 }
 0xa8d   :  { %4126 = vmatmul.msk.f32.gmra.mxu3 %vm8779_vm5, %v8509_v0  ;;  %4142 = vmatmul.msk.f32.gmra.mxu0 %vm8781_vm15, %v8509_v0  ;;  %vm8802_vm5 = vcmp.eq.f32.partialorder %v4378_v24, %v8801_v5  ;;  %vm8807_vm15 = vcmp.eq.f32.partialorder %v4378_v24, %v8806_v42  ;;  %v8832_v42 = vld [vmem:[#allocation105_spill] sm:$0xff] }
 0xa91   :  { %v7594_v43 = vpop.f32.mrf.mxu1 }
 0xa92   :  { %v7596_v26 = vpop.f32.mrf.mxu0 }
 0xa94   :  { %4095 = vmatmul.msk.f32.gmra.mxu1 %vm8783_vm1, %v8509_v0  ;;  %4111 = vmatmul.msk.f32.gmra.mxu2 %vm8785_vm0, %v8509_v0  ;;  %vm8811_vm1 = vcmp.eq.f32.partialorder %v4378_v24, %v8810_v11  ;;  %vm8813_vm0 = vcmp.eq.f32.partialorder %v4378_v24, %v8812_v21 }
 0xa95   :  { %4127 = vmatmul.msk.f32.gmra.mxu3 %vm8787_vm3, %v8509_v0  ;;  %4143 = vmatmul.msk.f32.gmra.mxu0 %vm8789_vm11, %v8509_v0  ;;  %vm8815_vm3 = vcmp.eq.f32.partialorder %v4378_v24, %v8814_v46  ;;  %vm8817_vm11 = vcmp.eq.f32.partialorder %v4378_v24, %v8816_v60  ;;  %v8836_v60 = vld [vmem:[#allocation74_spill] sm:$0xff] }
 0xa97   :  { %v7614_v13 = vpop.f32.mrf.mxu2 }
 0xa98   :  { %v7616_v15 = vpop.f32.mrf.mxu3 }
 0xa9b   :  { %v7618_v31 = vpop.f32.mrf.mxu1 }
 0xa9c   :  { %4144 = vmatmul.msk.f32.vlgmr.msrb.gmra.mxu1 %vm8791_vm9, %v8509_v0  ;;  %4160 = vmatmul.msk.f32.vlgmr.msrb.gmra.mxu2 %vm8793_vm10, %v8509_v0  ;;  %v7628_v14 = vpop.f32.mrf.mxu0  ;;  %vm8819_vm9 = vcmp.eq.f32.partialorder %v4378_v24, %v8818_v28  ;;  %vm8821_vm10 = vcmp.eq.f32.partialorder %v4378_v24, %v8820_v44  ;;  %v8838_v28 = vld [vmem:[#allocation90_spill] sm:$0xff] }
 0xa9d   :  { %4176 = vmatmul.msk.f32.vlgmr.msra.gmra.mxu3 %vm8795_vm13, %v8509_v0  ;;  %4192 = vmatmul.msk.f32.vlgmr.msrb.gmra.mxu0 %vm2351_vm6, %v8509_v0  ;;  %vm8805_vm6 = vcmp.eq.f32.partialorder %v4378_v24, %v8804_v23  ;;  %vm8823_vm13 = vcmp.eq.f32.partialorder %v4378_v24, %v8822_v63 }
 0xaa1   :  { %v7638_v4 = vpop.f32.mrf.mxu2 }
 0xaa2   :  { %v7640_v61 = vpop.f32.mrf.mxu3 }
 0xaa4   :  { %4145 = vmatmul.msk.f32.gmra.mxu1 %vm8798_vm12, %v8509_v0  ;;  %4161 = vmatmul.msk.f32.gmra.mxu2 %vm8800_vm7, %v8509_v0  ;;  %vm8825_vm12 = vcmp.eq.f32.partialorder %v4378_v24, %v8824_v17  ;;  %vm8827_vm7 = vcmp.eq.f32.partialorder %v4378_v24, %v8826_v33 }
 0xaa5   :  { %4177 = vmatmul.msk.f32.gmra.mxu3 %vm8802_vm5, %v8509_v0  ;;  %4193 = vmatmul.msk.f32.gmra.mxu0 %vm2352_vm2, %v8509_v0  ;;  %v2779_v52 = vpop.f32.mrf.mxu1  ;;  %vm8809_vm2 = vcmp.eq.f32.partialorder %v4378_v24, %v8808_v53 }
 0xaa6   :  { %v7658_v8 = vpop.f32.mrf.mxu0 }
 0xaab   :  { %v2860_v32 = vpop.f32.mrf.mxu2 }
 0xaac   :  { %4146 = vmatmul.msk.f32.gmra.mxu1 %vm8805_vm6, %v8509_v0  ;;  %4162 = vmatmul.msk.f32.gmra.mxu2 %vm8807_vm15, %v8509_v0  ;;  %v2904_v30 = vmax.f32 %v2779_v52, %v2860_v32  ;;  %v2957_v2 = vpop.f32.mrf.mxu3  ;;  %v8828_v52 = vld [vmem:[#allocation73_spill] sm:$0xff]  ;;  %vm8833_vm15 = vcmp.eq.f32.partialorder %v4378_v24, %v8832_v42 }
 0xaad   :  { %4178 = vmatmul.msk.f32.gmra.mxu3 %vm8809_vm2, %v8509_v0  ;;  %4194 = vmatmul.msk.f32.gmra.mxu0 %vm8811_vm1, %v8509_v0  ;;  %vm8829_vm5 = vcmp.eq.f32.partialorder %v4378_v24, %v8828_v52  ;;  %v8830_v32 = vld [vmem:[#allocation89_spill] sm:$0xff]  ;;  %vm8837_vm1 = vcmp.eq.f32.partialorder %v4378_v24, %v8836_v60  ;;  %v8848_v52 = vld [vmem:[#allocation107_spill] sm:$0xff]  ;;  %v8852_v60 = vld [vmem:[#allocation76_spill] sm:$0xff] }
 0xaae   :  { %v7676_v3 = vmax.f32 %v2904_v30, %v2957_v2  ;;  %vm8831_vm6 = vcmp.eq.f32.partialorder %v4378_v24, %v8830_v32  ;;  %v8834_v30 = vld [vmem:[#allocation134_spill] sm:$0xff] }
 0xaaf   :  { %v2782_v48 = vpop.f32.mrf.mxu1  ;;  %vm8835_vm2 = vcmp.eq.f32.partialorder %v4378_v24, %v8834_v30  ;;  %v8850_v32 = vld [vmem:[#allocation154_spill] sm:$0xff] }
 0xab0   :  { %v7678_v19 = vpop.f32.mrf.mxu0 }
 0xab4   :  { %4147 = vmatmul.msk.f32.gmra.mxu1 %vm8813_vm0, %v8509_v0  ;;  %4163 = vmatmul.msk.f32.gmra.mxu2 %vm8815_vm3, %v8509_v0  ;;  %vm8839_vm0 = vcmp.eq.f32.partialorder %v4378_v24, %v8838_v28  ;;  %v8854_v28 = vld [vmem:[#allocation92_spill] sm:$0xff] }
 0xab5   :  { %4179 = vmatmul.msk.f32.gmra.mxu3 %vm8817_vm11, %v8509_v0  ;;  %4195 = vmatmul.msk.f32.gmra.mxu0 %vm8819_vm9, %v8509_v0  ;;  %v2863_v12 = vpop.f32.mrf.mxu2 }
 0xab6   :  { %v2905_v50 = vmax.f32 %v2782_v48, %v2863_v12  ;;  %v2960_v41 = vpop.f32.mrf.mxu3 }
 0xab8   :  { %v7698_v47 = vmax.f32 %v2905_v50, %v2960_v41  ;;  %v8840_v50 = vld [vmem:[#allocation106_spill] sm:$0xff] }
 0xab9   :  { %v2785_v7 = vpop.f32.mrf.mxu1  ;;  %vm8841_vm3 = vcmp.eq.f32.partialorder %v4378_v24, %v8840_v50  ;;  %v8842_v41 = vld [vmem:[#allocation138_spill] sm:$0xff] }
 0xaba   :  { %v7700_v6 = vpop.f32.mrf.mxu0  ;;  %vm8843_vm11 = vcmp.eq.f32.partialorder %v4378_v24, %v8842_v41  ;;  %v8856_v41 = vld [vmem:[#allocation108_spill] sm:$0xff] }
 0xabc   :  { %4148 = vmatmul.msk.f32.gmra.mxu1 %vm8821_vm10, %v8509_v0  ;;  %4164 = vmatmul.msk.f32.gmra.mxu2 %vm8823_vm13, %v8509_v0  ;;  %vm8849_vm13 = vcmp.eq.f32.partialorder %v4378_v24, %v8848_v52 }
 0xabd   :  { %4180 = vmatmul.msk.f32.gmra.mxu3 %vm8825_vm12, %v8509_v0  ;;  %4196 = vmatmul.msk.f32.gmra.mxu0 %vm8827_vm7, %v8509_v0  ;;  %vm8851_vm12 = vcmp.eq.f32.partialorder %v4378_v24, %v8850_v32  ;;  %vm8853_vm7 = vcmp.eq.f32.partialorder %v4378_v24, %v8852_v60  ;;  %v8860_v32 = vld [vmem:[#allocation77_spill] sm:$0xff] }
 0xabf   :  { %v2866_v49 = vpop.f32.mrf.mxu2 }
 0xac0   :  { %v2906_v27 = vmax.f32 %v2785_v7, %v2866_v49  ;;  %v2963_v38 = vpop.f32.mrf.mxu3 }
 0xac1   :  { %v2788_v35 = vpop.f32.mrf.mxu1 }
 0xac2   :  { %v7720_v5 = vmax.f32 %v2906_v27, %v2963_v38  ;;  %v7722_v29 = vpop.f32.mrf.mxu0  ;;  %v8844_v27 = vld [vmem:[#allocation75_spill] sm:$0xff] }
 0xac3   :  { %vm8845_vm9 = vcmp.eq.f32.partialorder %v4378_v24, %v8844_v27  ;;  %v8846_v38 = vld [vmem:[#allocation91_spill] sm:$0xff] }
 0xac4   :  { %4149 = vmatmul.msk.f32.gmra.mxu1 %vm8829_vm5, %v8509_v0  ;;  %4165 = vmatmul.msk.f32.gmra.mxu2 %vm8831_vm6, %v8509_v0  ;;  %vm8847_vm10 = vcmp.eq.f32.partialorder %v4378_v24, %v8846_v38  ;;  %vm8855_vm5 = vcmp.eq.f32.partialorder %v4378_v24, %v8854_v28  ;;  %vm8857_vm6 = vcmp.eq.f32.partialorder %v4378_v24, %v8856_v41 }
 0xac5   :  { %4181 = vmatmul.msk.f32.gmra.mxu3 %vm8833_vm15, %v8509_v0  ;;  %4197 = vmatmul.msk.f32.gmra.mxu0 %vm8835_vm2, %v8509_v0  ;;  %vm8861_vm15 = vcmp.eq.f32.partialorder %v4378_v24, %v8860_v32  ;;  %v8872_v32 = vld [vmem:[#allocation94_spill] sm:$0xff] }
 0xac7   :  { %v2869_v2 = vpop.f32.mrf.mxu2 }
 0xac8   :  { %v2907_v53 = vmax.f32 %v2788_v35, %v2869_v2  ;;  %v2966_v11 = vpop.f32.mrf.mxu3 }
 0xac9   :  { %v2791_v48 = vpop.f32.mrf.mxu1 }
 0xaca   :  { %v7742_v21 = vmax.f32 %v2907_v53, %v2966_v11  ;;  %v7744_v46 = vpop.f32.mrf.mxu0 }
 0xacc   :  { %4150 = vmatmul.msk.f32.gmra.mxu1 %vm8837_vm1, %v8509_v0  ;;  %4166 = vmatmul.msk.f32.gmra.mxu2 %vm8839_vm0, %v8509_v0 }
 0xacd   :  { %4182 = vmatmul.msk.f32.gmra.mxu3 %vm8841_vm3, %v8509_v0  ;;  %4198 = vmatmul.msk.f32.gmra.mxu0 %vm8843_vm11, %v8509_v0  ;;  %vm8873_vm3 = vcmp.eq.f32.partialorder %v4378_v24, %v8872_v32 }
 0xacf   :  { %v2872_v7 = vpop.f32.mrf.mxu2 }
 0xad0   :  { %v2908_v44 = vmax.f32 %v2791_v48, %v2872_v7  ;;  %v2969_v63 = vpop.f32.mrf.mxu3 }
 0xad1   :  { %v2794_v17 = vpop.f32.mrf.mxu1 }
 0xad2   :  { %v7764_v33 = vmax.f32 %v2908_v44, %v2969_v63  ;;  %v7766_v49 = vpop.f32.mrf.mxu0 }
 0xad4   :  { %4151 = vmatmul.msk.f32.gmra.mxu1 %vm8845_vm9, %v8509_v0  ;;  %4167 = vmatmul.msk.f32.gmra.mxu2 %vm8847_vm10, %v8509_v0 }
 0xad5   :  { %4183 = vmatmul.msk.f32.gmra.mxu3 %vm8849_vm13, %v8509_v0  ;;  %4199 = vmatmul.msk.f32.gmra.mxu0 %vm8851_vm12, %v8509_v0 }
 0xad7   :  { %v2875_v42 = vpop.f32.mrf.mxu2 }
 0xad8   :  { %v2909_v30 = vmax.f32 %v2794_v17, %v2875_v42  ;;  %v2972_v2 = vpop.f32.mrf.mxu3  ;;  %v8862_v42 = vld [vmem:[#allocation93_spill] sm:$0xff] }
 0xad9   :  { %v2797_v53 = vpop.f32.mrf.mxu1  ;;  %vm8863_vm2 = vcmp.eq.f32.partialorder %v4378_v24, %v8862_v42  ;;  %v8880_v42 = vld [vmem:[#allocation79_spill] sm:$0xff] }
 0xada   :  { %v7786_v11 = vmax.f32 %v2909_v30, %v2972_v2  ;;  %v7788_v48 = vpop.f32.mrf.mxu0  ;;  %v8864_v2 = vld [vmem:[#allocation109_spill] sm:$0xff]  ;;  %vm8881_vm10 = vcmp.eq.f32.partialorder %v4378_v24, %v8880_v42 }
 0xadc   :  { %4152 = vmatmul.msk.f32.gmra.mxu1 %vm8853_vm7, %v8509_v0  ;;  %4168 = vmatmul.msk.f32.gmra.mxu2 %vm8855_vm5, %v8509_v0 }
 0xadd   :  { %4184 = vmatmul.msk.f32.gmra.mxu3 %vm8857_vm6, %v8509_v0  ;;  %4200 = vmatmul.msk.f32.gmra.mxu0 %vm2359_vm4, %v8509_v0  ;;  %vm8865_vm4 = vcmp.eq.f32.partialorder %v4378_v24, %v8864_v2  ;;  %v8876_v2 = vld [vmem:[#allocation157_spill] sm:$0xff] }
 0xade   :  { %vm8877_vm9 = vcmp.eq.f32.partialorder %v4378_v24, %v8876_v2  ;;  %v8890_v2 = vld [vmem:[#allocation80_spill] sm:$0xff] }
 0xadf   :  { %v2878_v44 = vpop.f32.mrf.mxu2  ;;  %vm8891_vm5 = vcmp.eq.f32.partialorder %v4378_v24, %v8890_v2 }
 0xae0   :  { %v2910_v63 = vmax.f32 %v2797_v53, %v2878_v44  ;;  %v2975_v17 = vpop.f32.mrf.mxu3  ;;  %v8866_v53 = vld [vmem:[#allocation156_spill] sm:$0xff] }
 0xae1   :  { %v2800_v27 = vpop.f32.mrf.mxu1  ;;  %vm8867_vm1 = vcmp.eq.f32.partialorder %v4378_v24, %v8866_v53 }
 0xae2   :  { %v7808_v38 = vmax.f32 %v2910_v63, %v2975_v17  ;;  %v7810_v52 = vpop.f32.mrf.mxu0  ;;  %v8870_v17 = vld [vmem:[#allocation78_spill] sm:$0xff] }
 0xae3   :  { %8859 = vst [vmem:[#allocation112_spill] sm:$0xff] %v7810_v52  ;;  %vm8871_vm0 = vcmp.eq.f32.partialorder %v4378_v24, %v8870_v17 }
 0xae4   :  { %4153 = vmatmul.msk.f32.gmra.mxu1 %vm8861_vm15, %v8509_v0  ;;  %4169 = vmatmul.msk.f32.gmra.mxu2 %vm8863_vm2, %v8509_v0  ;;  %vm8896_vm2 = vcmp.eq.f32.partialorder %v4378_v24, %v7014_v22  ;;  %v4252_v22 = vld [vmem:[%s8221_s0 + $0x18] sm:$0xff] }
 0xae5   :  { %4185 = vmatmul.msk.f32.gmra.mxu3 %vm8865_vm4, %v8509_v0  ;;  %4201 = vmatmul.msk.f32.gmra.mxu0 %vm8867_vm1, %v8509_v0  ;;  %vm3586_vm4 = vcmask 171048  }
 0xae6   :  { %v3590_v12 = vsel %vm3586_vm4, %v4252_v22, -inf  ;;  %v3595_v22 = vsel %vm3586_vm4, %v4255_v16, -inf  ;;  %v4259_v16 = vld [vmem:[%s8221_s0 + $0x50] sm:$0xff] }
 0xae7   :  { %v2881_v60 = vpop.f32.mrf.mxu2 }
 0xae8   :  { %v2911_v28 = vmax.f32 %v2800_v27, %v2881_v60  ;;  %v2978_v41 = vpop.f32.mrf.mxu3  ;;  %v8874_v27 = vld [vmem:[#allocation111_spill] sm:$0xff] }
 0xae9   :  { %v2803_v7 = vpop.f32.mrf.mxu1  ;;  %vm8875_vm11 = vcmp.eq.f32.partialorder %v4378_v24, %v8874_v27  ;;  %v8882_v27 = vld [vmem:[#allocation95_spill] sm:$0xff] }
 0xaea   :  { %v7830_v44 = vmax.f32 %v2911_v28, %v2978_v41  ;;  %v7832_v63 = vpop.f32.mrf.mxu0  ;;  %vm8883_vm13 = vcmp.eq.f32.partialorder %v4378_v24, %v8882_v27 }
 0xaeb   :  { %8869 = vst [vmem:[#allocation114_spill] sm:$0xff] %v7832_v63 }
 0xaec   :  { %8868 = vst [vmem:[#allocation136_spill] sm:$0xff] %v7830_v44  ;;  %4154 = vmatmul.msk.f32.gmra.mxu1 %vm8871_vm0, %v8509_v0  ;;  %4170 = vmatmul.msk.f32.gmra.mxu2 %vm8873_vm3, %v8509_v0 }
 0xaed   :  { %4186 = vmatmul.msk.f32.gmra.mxu3 %vm8875_vm11, %v8509_v0  ;;  %4202 = vmatmul.msk.f32.gmra.mxu0 %vm8877_vm9, %v8509_v0 }
 0xaef   :  { %v2884_v53 = vpop.f32.mrf.mxu2 }
 0xaf0   :  { %v2912_v60 = vmax.f32 %v2803_v7, %v2884_v53  ;;  %v2981_v28 = vpop.f32.mrf.mxu3  ;;  %v8884_v7 = vld [vmem:[#allocation113_spill] sm:$0xff]  ;;  %v8886_v53 = vld [vmem:[#allocation158_spill] sm:$0xff] }
 0xaf1   :  { %v2806_v41 = vpop.f32.mrf.mxu1  ;;  %vm8885_vm12 = vcmp.eq.f32.partialorder %v4378_v24, %v8884_v7  ;;  %vm8887_vm7 = vcmp.eq.f32.partialorder %v4378_v24, %v8886_v53  ;;  %v8892_v7 = vld [vmem:[#allocation96_spill] sm:$0xff]  ;;  %v8898_v53 = vld [vmem:[#allocation81_spill] sm:$0xff] }
 0xaf2   :  { %v7852_v17 = vmax.f32 %v2912_v60, %v2981_v28  ;;  %v7854_v32 = vpop.f32.mrf.mxu0  ;;  %vm8893_vm6 = vcmp.eq.f32.partialorder %v4378_v24, %v8892_v7  ;;  %vm8899_vm1 = vcmp.eq.f32.partialorder %v4378_v24, %v8898_v53  ;;  %v4249_v53 = vld [vmem:[%s8221_s0] sm:$0xff] }
 0xaf3   :  { %8879 = vst [vmem:[#allocation137_spill] sm:$0xff] %v7854_v32  ;;  %v3636_v32 = vsel %vm3586_vm4, %v4259_v16, -inf  ;;  %v4262_v16 = vld [vmem:[%s8221_s0 + $0x68] sm:$0xff] }
 0xaf4   :  { %8878 = vst [vmem:[#allocation139_spill] sm:$0xff] %v7852_v17  ;;  %4155 = vmatmul.msk.f32.gmra.mxu1 %vm8881_vm10, %v8509_v0  ;;  %4171 = vmatmul.msk.f32.gmra.mxu2 %vm8883_vm13, %v8509_v0  ;;  %v3640_v51 = vsel %vm3586_vm4, %v4262_v16, -inf  ;;  %v8906_v16 = vld [vmem:[#allocation98_spill] sm:$0xff]  ;;  %vm8910_vm10 = vcmp.eq.f32.partialorder %v4378_v24, %v7060_v58  ;;  %v2902_v58 = vmax.f32 %v7594_v43, %v7614_v13 }
 0xaf5   :  { %4187 = vmatmul.msk.f32.gmra.mxu3 %vm8885_vm12, %v8509_v0  ;;  %4203 = vmatmul.msk.f32.gmra.mxu0 %vm8887_vm7, %v8509_v0  ;;  %vm8907_vm11 = vcmp.eq.f32.partialorder %v4378_v24, %v8906_v16 }
 0xaf7   :  { %v2887_v42 = vpop.f32.mrf.mxu2 }
 0xaf8   :  { %v2913_v60 = vmax.f32 %v2806_v41, %v2887_v42  ;;  %v2984_v28 = vpop.f32.mrf.mxu3  ;;  %v8894_v41 = vld [vmem:[#allocation115_spill] sm:$0xff] }
 0xaf9   :  { %v2809_v30 = vpop.f32.mrf.mxu1  ;;  %vm8895_vm15 = vcmp.eq.f32.partialorder %v4378_v24, %v8894_v41  ;;  %v8900_v41 = vld [vmem:[#allocation97_spill] sm:$0xff] }
 0xafa   :  { %v7874_v50 = vmax.f32 %v2913_v60, %v2984_v28  ;;  %v7876_v27 = vpop.f32.mrf.mxu0  ;;  %vm8901_vm0 = vcmp.eq.f32.partialorder %v4378_v24, %v8900_v41 }
 0xafb   :  { %8889 = vst [vmem:[#allocation141_spill] sm:$0xff] %v7876_v27 }
 0xafc   :  { %8888 = vst [vmem:[#allocation140_spill] sm:$0xff] %v7874_v50  ;;  %4156 = vmatmul.msk.f32.gmra.mxu1 %vm8891_vm5, %v8509_v0  ;;  %4172 = vmatmul.msk.f32.gmra.mxu2 %vm8893_vm6, %v8509_v0  ;;  %vm8917_vm5 = vcmp.eq.f32.partialorder %v4378_v24, %v7074_v59 }
 0xafd   :  { %4188 = vmatmul.msk.f32.gmra.mxu3 %vm8895_vm15, %v8509_v0  ;;  %4204 = vmatmul.msk.f32.gmra.mxu0 %vm8896_vm2, %v8509_v0 }
 0xaff   :  { %v2890_v2 = vpop.f32.mrf.mxu2 }
 0xb00   :  { %v2914_v42 = vmax.f32 %v2809_v30, %v2890_v2  ;;  %v2987_v60 = vpop.f32.mrf.mxu3  ;;  %v8902_v30 = vld [vmem:[#allocation116_spill] sm:$0xff]  ;;  %v3587_v2 = vsel %vm3586_vm4, %v4249_v53, -inf  ;;  %v4253_v53 = vld [vmem:[%s8221_s0 + $0x20] sm:$0xff] }
 0xb01   :  { %v2812_v28 = vpop.f32.mrf.mxu1  ;;  %vm8903_vm3 = vcmp.eq.f32.partialorder %v4378_v24, %v8902_v30  ;;  %v4251_v30 = vld [vmem:[%s8221_s0 + $0x10] sm:$0xff]  ;;  %v3591_v23 = vsel %vm3586_vm4, %v4253_v53, -inf  ;;  %v3597_v53 = vsel %vm3586_vm4, %v4256_v18, -inf  ;;  %v4260_v18 = vld [vmem:[%s8221_s0 + $0x58] sm:$0xff] }
 0xb02   :  { %v7896_v35 = vmax.f32 %v2914_v42, %v2987_v60  ;;  %v7898_v7 = vpop.f32.mrf.mxu0  ;;  %v4250_v42 = vld [vmem:[%s8221_s0 + $0x8] sm:$0xff]  ;;  %v3589_v57 = vsel %vm3586_vm4, %v4251_v30, -inf  ;;  %v3593_v30 = vsel %vm3586_vm4, %v4254_v62, -inf  ;;  %v3637_v50 = vsel %vm3586_vm4, %v4260_v18, -inf  ;;  %v4263_v18 = vld [vmem:[%s8221_s0 + $0x70] sm:$0xff] }
 0xb03   :  { %v3588_v60 = vsel %vm3586_vm4, %v4250_v42, -inf  ;;  %v4258_v62 = vld [vmem:[%s8221_s0 + $0x48] sm:$0xff]  ;;  %v3592_v17 = vmax.f32 %v3587_v2, %v3591_v23  ;;  %v3598_v40 = vmax.f32 %v3590_v12, %v3597_v53 }
 0xb04   :  { %8897 = vst [vmem:[#allocation143_spill] sm:$0xff] %v7896_v35  ;;  %4157 = vmatmul.msk.f32.gmra.mxu1 %vm8899_vm1, %v8509_v0  ;;  %4173 = vmatmul.msk.f32.gmra.mxu2 %vm8901_vm0, %v8509_v0  ;;  %v3635_v45 = vsel %vm3586_vm4, %v4258_v62, -inf  ;;  %v4261_v62 = vld [vmem:[%s8221_s0 + $0x60] sm:$0xff]  ;;  %v3594_v27 = vmax.f32 %v3588_v60, %v3593_v30  ;;  %v3596_v35 = vmax.f32 %v3589_v57, %v3595_v22 }
 0xb05   :  { %4189 = vmatmul.msk.f32.gmra.mxu3 %vm8903_vm3, %v8509_v0  ;;  %4205 = vmatmul.msk.f32.gmra.mxu0 %vm2364_vm8, %v8509_v0  ;;  %v3638_v37 = vsel %vm3586_vm4, %v4261_v62, -inf  ;;  %v8904_v62 = vld [vmem:[#allocation82_spill] sm:$0xff]  ;;  %v3641_v2 = vmax.f32 %v3635_v45, %v3640_v51  ;;  %v8913_v45 = vld [vmem:[#allocation99_spill] sm:$0xff] }
 0xb06   :  { %vm8905_vm8 = vcmp.eq.f32.partialorder %v4378_v24, %v8904_v62  ;;  %v3599_v60 = vmax.f32 %v3592_v17, %v3594_v27  ;;  %v3600_v57 = vmax.f32 %v3596_v35, %v3598_v40  ;;  %vm8914_vm12 = vcmp.eq.f32.partialorder %v4378_v24, %v8913_v45 }
 0xb07   :  { %v2893_v41 = vpop.f32.mrf.mxu2  ;;  %v2999_v35 = vmax.f32 %v2902_v58, %v7616_v15 }
 0xb08   :  { %v2915_v42 = vmax.f32 %v2812_v28, %v2893_v41  ;;  %v2990_v20 = vpop.f32.mrf.mxu3  ;;  %v4257_v28 = vld [vmem:[%s8221_s0 + $0x40] sm:$0xff]  ;;  %v3601_v51 = vmax.f32 %v3599_v60, %v3600_v57 }
 0xb09   :  { %v3634_v41 = vsel %vm3586_vm4, %v4257_v28, -inf  ;;  %v2815_v54 = vpop.f32.mrf.mxu1 }
 0xb0a   :  { %v7966_v28 = vmax.f32 %v2915_v42, %v2990_v20  ;;  %v7968_v39 = vpop.f32.mrf.mxu0  ;;  %v3642_v20 = vsel %vm3586_vm4, %v4263_v18, -inf  ;;  %v4264_v42 = vld [vmem:[%s8221_s0 + $0x78] sm:$0xff]  ;;  %v3639_v23 = vmax.f32 %v3634_v41, %v3638_v37  ;;  %v8911_v37 = vld [vmem:[#allocation83_spill] sm:$0xff]  ;;  %s4266_s0 = smov 123  }
 0xb0b   :  { %v3644_v63 = vsel %vm3586_vm4, %v4264_v42, -inf  ;;  %v8908_v42 = vld [vmem:[#allocation118_spill] sm:$0xff]  ;;  %v3643_v62 = vmax.f32 %v3636_v32, %v3642_v20  ;;  %vm8912_vm13 = vcmp.eq.f32.partialorder %v4378_v24, %v8911_v37  ;;  %vm3564_vm4 = vcmask 261120  }
 0xb0c   :  { %4158 = vmatmul.msk.f32.gmra.mxu1 %vm8905_vm8, %v8509_v0  ;;  %4174 = vmatmul.msk.f32.gmra.mxu2 %vm8907_vm11, %v8509_v0  ;;  %vm8909_vm9 = vcmp.eq.f32.partialorder %v4378_v24, %v8908_v42  ;;  %v3645_v16 = vmax.f32 %v3637_v50, %v3644_v63  ;;  %v3646_v30 = vmax.f32 %v3639_v23, %v3641_v2  ;;  %v3602_v63 = vrot.slane %v3601_v51, 4 }
 0xb0d   :  { %4190 = vmatmul.msk.f32.gmra.mxu3 %vm8909_vm9, %v8509_v0  ;;  %4206 = vmatmul.msk.f32.gmra.mxu0 %vm8910_vm10, %v8509_v0  ;;  %v2903_v50 = vmax.f32 %v7618_v31, %v7638_v4 }
 0xb0e   :  { %v3647_v22 = vmax.f32 %v3643_v62, %v3645_v16  ;;  %v3603_v59 = vmax.f32 %v3601_v51, %v3602_v63 }
 0xb0f   :  { %v2896_v52 = vpop.f32.mrf.mxu2  ;;  %v3000_v20 = vmax.f32 %v2903_v50, %v7640_v61 }
 0xb10   :  { %v2916_v44 = vmax.f32 %v2815_v54, %v2896_v52  ;;  %v2993_v18 = vpop.f32.mrf.mxu3  ;;  %v8915_v54 = vld [vmem:[#allocation120_spill] sm:$0xff]  ;;  %v3648_v43 = vmax.f32 %v3646_v30, %v3647_v22  ;;  %v3604_v16 = vrot.slane %v3603_v59, 2 }
 0xb11   :  { %v2818_v12 = vpop.f32.mrf.mxu1  ;;  %vm8916_vm7 = vcmp.eq.f32.partialorder %v4378_v24, %v8915_v54  ;;  %v3096_v24 = vmax.f32 %v2999_v35, %v7596_v26  ;;  %v3097_v2 = vmax.f32 %v3000_v20, %v7628_v14 }
 0xb12   :  { %v8004_v53 = vmax.f32 %v2916_v44, %v2993_v18  ;;  %v8006_v42 = vpop.f32.mrf.mxu0  ;;  %v3649_v32 = vrot.slane %v3648_v43, 4  ;;  %v3605_v61 = vmax.f32 %v3603_v59, %v3604_v16  ;;  %v8055_v16 = vld [vmem:[%s8222_s4 + $0x1] ss:$0 sm:$0xff] }
 0xb14   :  { %4159 = vmatmul.msk.f32.gmra.mxu1 %vm8912_vm13, %v8509_v0  ;;  %4175 = vmatmul.msk.f32.gmra.mxu2 %vm8914_vm12, %v8509_v0  ;;  %v3110_v40 = vmax.f32 %v8004_v53, %v7968_v39  ;;  %v3650_v15 = vmax.f32 %v3648_v43, %v3649_v32  ;;  %v3606_v58 = vrot.slane %v3605_v61, 1 }
 0xb15   :  { %4191 = vmatmul.msk.f32.gmra.mxu3 %vm8916_vm7, %v8509_v0  ;;  %4207 = vmatmul.msk.f32.gmra.mxu0 %vm8917_vm5, %v8509_v0 }
 0xb16   :  { %v3651_v30 = vrot.slane %v3650_v15, 2  ;;  %v3607_v51 = vmax.f32 %v3605_v61, %v3606_v58  ;;  %v2693_v61 = vadd.f32 %v8055_v16, %v7210_v56  ;;  %v2696_v56 = vadd.f32 %v8055_v16, %v7228_v36 }
 0xb17   :  { %v2899_v13 = vpop.f32.mrf.mxu2 }
 0xb18   :  { %v2917_v52 = vmax.f32 %v2818_v12, %v2899_v13  ;;  %v2996_v44 = vpop.f32.mrf.mxu3  ;;  %v3652_v26 = vmax.f32 %v3650_v15, %v3651_v30  ;;  %v8918_v13 = vld [vmem:[#allocation3_spill] sm:$0xff] }
 0xb19   :  { %v3145_v17 = vpop.f32.mrf.mxu1  ;;  %vm3608_vm6 = vcmp.eq.s32.totalorder %v8918_v13, 0  ;;  %vm3655_vm15 = vcmp.eq.s32.totalorder %v8918_v13, 1  ;;  %v48_v13 = vld [vmem:[%s8220_s3 + $0x60] sm:$0xff] }
 0xb1a   :  { %v8031_v27 = vmax.f32 %v2917_v52, %v2996_v44  ;;  %v3436_v41 = vpop.f32.mrf.mxu0  ;;  %v3193_v18 = vmax.f32 %v3096_v24, %v3145_v17  ;;  %v3653_v37 = vrot.slane %v3652_v26, 1  ;;  %v3612_v14 = vsel %vm3608_vm6, %v3607_v51, 0.0 }
 0xb1b   :  { %v8919_v44 = vmax.f32 %v7676_v3, %v7658_v8 }
 0xb1c   :  { %v3111_v0 = vmax.f32 %v8031_v27, %v8006_v42  ;;  %v3654_v50 = vmax.f32 %v3652_v26, %v3653_v37  ;;  %v54_v42 = vld [vmem:[%s8220_s3 + $0x90] sm:$0xff] }
 0xb1e   :  { %v3659_v32 = vsel %vm3655_vm15, %v3654_v50, %v3612_v14 }
 0xb1f   :  { %v3242_v23 = vpop.f32.mrf.mxu2  ;;  %3661 = vrot.lane.b32.xlu1 %v3659_v32, %s4266_s0 }
 0xb20   :  { %v3290_v31 = vmax.f32 %v3193_v18, %v3242_v23  ;;  %v3339_v4 = vpop.f32.mrf.mxu3  ;;  %v8920_v23 = vmax.f32 %v7698_v47, %v7678_v19 }
 0xb21   :  { %v3148_v62 = vpop.f32.mrf.mxu1 }
 0xb22   :  { %v3387_v60 = vmax.f32 %v3290_v31, %v3339_v4  ;;  %v3194_v57 = vmax.f32 %v3097_v2, %v3148_v62  ;;  %v3439_v12 = vpop.f32.mrf.mxu0 }
 0xb24   :  { %v3484_v22 = vmax.f32 %v3387_v60, %v3436_v41 }
 0xb26   :  { %v3500_v26 = vadd.f32 %v3484_v22, %v2693_v61 }
 0xb27   :  { %v3245_v45 = vpop.f32.mrf.mxu2 }
 0xb28   :  { %v3291_v54 = vmax.f32 %v3194_v57, %v3245_v45  ;;  %v3342_v43 = vpop.f32.mrf.mxu3  ;;  %vm3516_vm2 = vcmp.gt.f32.partialorder %v3500_v26, 0.0 }
 0xb29   :  { %v3151_v35 = vpop.f32.mrf.mxu1 }
 0xb2a   :  { %v3388_v52 = vmax.f32 %v3291_v54, %v3342_v43  ;;  %v3195_v63 = vmax.f32 %v8919_v44, %v3151_v35  ;;  %v3442_v17 = vpop.f32.mrf.mxu0  ;;  %v8922_v43 = vmax.f32 %v7742_v21, %v7722_v29 }
 0xb2c   :  { %v3485_v41 = vmax.f32 %v3388_v52, %v3439_v12  ;;  %v8921_v12 = vmax.f32 %v7720_v5, %v7700_v6  ;;  %v3532_v6 = vmul.f32 0.2, %v3500_v26  ;;  %v2705_v5 = vadd.f32 %v8055_v16, %v7318_v25 }
 0xb2d   :  { %v8923_v25 = vmax.f32 %v7764_v33, %v7744_v46 }
 0xb2e   :  { %v3548_v52 = vsel %vm3516_vm2, %v3500_v26, %v3532_v6 }
 0xb2f   :  { %v3248_v20 = vpop.f32.mrf.mxu2 }
 0xb30   :  { %v3292_v24 = vmax.f32 %v3195_v63, %v3248_v20  ;;  %v3345_v59 = vpop.f32.mrf.mxu3  ;;  %v3501_v63 = vadd.f32 %v3485_v41, %v2696_v56 }
 0xb31   :  { %v3154_v15 = vpop.f32.mrf.mxu1 }
 0xb32   :  { %v3389_v18 = vmax.f32 %v3292_v24, %v3345_v59  ;;  %v3196_v31 = vmax.f32 %v8920_v23, %v3154_v15  ;;  %v8050_v4 = vpop.f32.mrf.mxu0  ;;  %v2708_v23 = vadd.f32 %v8055_v16, %v7352_v34  ;;  %v3533_v41 = vmul.f32 0.2, %v3501_v63 }
 0xb33   :  { %vm3517_vm0 = vcmp.gt.f32.partialorder %v3501_v63, 0.0 }
 0xb34   :  { %v3486_v8 = vmax.f32 %v3389_v18, %v3442_v17  ;;  %v3565_v18 = vsel %vm3564_vm4, %v3548_v52, -inf  ;;  %v3549_v46 = vsel %vm3517_vm0, %v3501_v63, %v3533_v41 }
 0xb35   :  { %v3566_v34 = vsel %vm3564_vm4, %v3549_v46, -inf }
 0xb37   :  { %v3251_v3 = vpop.f32.mrf.mxu2 }
 0xb38   :  { %v3293_v2 = vmax.f32 %v3196_v31, %v3251_v3  ;;  %v3348_v62 = vpop.f32.mrf.mxu3  ;;  %v2699_v3 = vadd.f32 %v8055_v16, %v7250_v1  ;;  %v2711_v1 = vadd.f32 %v8055_v16, %v7386_v55 }
 0xb39   :  { %v3157_v60 = vpop.f32.mrf.mxu1 }
 0xb3a   :  { %v8057_v57 = vmax.f32 %v3293_v2, %v3348_v62  ;;  %v3197_v30 = vmax.f32 %v8921_v12, %v3157_v60  ;;  %v3448_v19 = vpop.f32.mrf.mxu0  ;;  %v3502_v62 = vadd.f32 %v3486_v8, %v2699_v3 }
 0xb3c   :  { %v3487_v47 = vmax.f32 %v8057_v57, %v8050_v4  ;;  %vm3518_vm8 = vcmp.gt.f32.partialorder %v3502_v62, 0.0 }
 0xb3f   :  { %v3254_v58 = vpop.f32.mrf.mxu2 }
 0xb40   :  { %v3294_v37 = vmax.f32 %v3197_v30, %v3254_v58  ;;  %v3351_v45 = vpop.f32.mrf.mxu3  ;;  %v3534_v58 = vmul.f32 0.2, %v3502_v62 }
 0xb41   :  { %v3160_v51 = vpop.f32.mrf.mxu1 }
 0xb42   :  { %v3391_v54 = vmax.f32 %v3294_v37, %v3351_v45  ;;  %v3198_v35 = vmax.f32 %v8922_v43, %v3160_v51  ;;  %v3451_v14 = vpop.f32.mrf.mxu0  ;;  %v2702_v51 = vadd.f32 %v8055_v16, %v7284_v10  ;;  %v3550_v6 = vsel %vm3518_vm8, %v3502_v62, %v3534_v58 }
 0xb44   :  { %v3488_v50 = vmax.f32 %v3391_v54, %v3448_v19 }
 0xb46   :  { %v3504_v22 = vadd.f32 %v3488_v50, %v2705_v5  ;;  %v3503_v50 = vadd.f32 %v3487_v47, %v2702_v51 }
 0xb47   :  { %v3257_v44 = vpop.f32.mrf.mxu2 }
 0xb48   :  { %vm3520_vm1 = vcmp.gt.f32.partialorder %v3504_v22, 0.0  ;;  %v3536_v17 = vmul.f32 0.2, %v3504_v22  ;;  %v3295_v32 = vmax.f32 %v3198_v35, %v3257_v44  ;;  %v3354_v29 = vpop.f32.mrf.mxu3  ;;  %v8924_v35 = vmax.f32 %v7786_v11, %v7766_v49 }
 0xb49   :  { %v3163_v21 = vpop.f32.mrf.mxu1  ;;  %v3535_v49 = vmul.f32 0.2, %v3503_v50  ;;  %vm3519_vm9 = vcmp.gt.f32.partialorder %v3503_v50, 0.0 }
 0xb4a   :  { %v3552_v20 = vsel %vm3520_vm1, %v3504_v22, %v3536_v17  ;;  %v3392_v24 = vmax.f32 %v3295_v32, %v3354_v29  ;;  %v3199_v59 = vmax.f32 %v8923_v25, %v3163_v21  ;;  %v3454_v15 = vpop.f32.mrf.mxu0  ;;  %v3567_v32 = vsel %vm3564_vm4, %v3550_v6, -inf  ;;  %v8930_v6 = vld [vmem:[#allocation143_spill] sm:$0xff] }
 0xb4b   :  { %v3569_v36 = vsel %vm3564_vm4, %v3552_v20, -inf  ;;  %v2714_v29 = vadd.f32 %v8055_v16, %v7416_v9 }
 0xb4c   :  { %v3570_v31 = vmax.f32 %v3565_v18, %v3569_v36  ;;  %v3489_v4 = vmax.f32 %v3392_v24, %v3451_v14  ;;  %v3551_v24 = vsel %vm3519_vm9, %v3503_v50, %v3535_v49 }
 0xb4e   :  { %v3505_v2 = vadd.f32 %v3489_v4, %v2708_v23  ;;  %v3568_v23 = vsel %vm3564_vm4, %v3551_v24, -inf }
 0xb4f   :  { %v3260_v60 = vpop.f32.mrf.mxu2 }
 0xb50   :  { %vm3521_vm3 = vcmp.gt.f32.partialorder %v3505_v2, 0.0  ;;  %v3537_v33 = vmul.f32 0.2, %v3505_v2  ;;  %v3296_v57 = vmax.f32 %v3199_v59, %v3260_v60  ;;  %v3357_v12 = vpop.f32.mrf.mxu3 }
 0xb51   :  { %v3166_v30 = vpop.f32.mrf.mxu1 }
 0xb52   :  { %v3553_v19 = vsel %vm3521_vm3, %v3505_v2, %v3537_v33  ;;  %v3393_v61 = vmax.f32 %v3296_v57, %v3357_v12  ;;  %v3457_v26 = vpop.f32.mrf.mxu0  ;;  %v3200_v14 = vmax.f32 %v8924_v35, %v3166_v30  ;;  %v8925_v12 = vmax.f32 %v7808_v38, %v7788_v48  ;;  %v45_v48 = vld [vmem:[%s8220_s3 + $0x48] sm:$0xff] }
 0xb53   :  { %v3571_v37 = vsel %vm3564_vm4, %v3553_v19, -inf  ;;  %3700 = vmatpush.msra.mxu2 %v45_v48  ;;  %v8929_v35 = vld [vmem:[#allocation128_spill] sm:$0xff] }
 0xb54   :  { %v3572_v8 = vmax.f32 %v3566_v34, %v3571_v37  ;;  %v3490_v45 = vmax.f32 %v3393_v61, %v3454_v15  ;;  %v8926_v37 = vld [vmem:[#allocation136_spill] sm:$0xff] }
 0xb56   :  { %v3577_v54 = vmax.f32 %v3570_v31, %v3572_v8  ;;  %v3506_v43 = vadd.f32 %v3490_v45, %v2711_v1  ;;  %v8927_v1 = vld [vmem:[#allocation112_spill] sm:$0xff] }
 0xb57   :  { %v3263_v5 = vpop.f32.mrf.mxu2  ;;  %v8928_v8 = vmax.f32 %v8926_v37, %v8927_v1  ;;  %v8940_v1 = vld [vmem:[#allocation140_spill] sm:$0xff] }
 0xb58   :  { %vm3522_vm11 = vcmp.gt.f32.partialorder %v3506_v43, 0.0  ;;  %v3538_v56 = vmul.f32 0.2, %v3506_v43  ;;  %v3297_v22 = vmax.f32 %v3200_v14, %v3263_v5  ;;  %v3360_v52 = vpop.f32.mrf.mxu3  ;;  %v2717_v14 = vadd.f32 %v8055_v16, %v8929_v35  ;;  %v8931_v5 = vld [vmem:[#allocation141_spill] sm:$0xff] }
 0xb59   :  { %v3169_v55 = vpop.f32.mrf.mxu1  ;;  %v8932_v50 = vmax.f32 %v8930_v6, %v8931_v5 }
 0xb5a   :  { %v3554_v44 = vsel %vm3522_vm11, %v3506_v43, %v3538_v56  ;;  %v3394_v63 = vmax.f32 %v3297_v22, %v3360_v52  ;;  %v3460_v17 = vpop.f32.mrf.mxu0  ;;  %v3201_v30 = vmax.f32 %v8925_v12, %v3169_v55 }
 0xb5b   :  { %v3573_v10 = vsel %vm3564_vm4, %v3554_v44, -inf }
 0xb5c   :  { %v3574_v11 = vmax.f32 %v3567_v32, %v3573_v10  ;;  %v3491_v21 = vmax.f32 %v3394_v63, %v3457_v26  ;;  %v8933_v32 = vld [vmem:[#allocation139_spill] sm:$0xff] }
 0xb5e   :  { %v3507_v47 = vadd.f32 %v3491_v21, %v2714_v29 }
 0xb5f   :  { %v3266_v20 = vpop.f32.mrf.mxu2 }
 0xb60   :  { %vm3523_vm10 = vcmp.gt.f32.partialorder %v3507_v47, 0.0  ;;  %v3539_v25 = vmul.f32 0.2, %v3507_v47  ;;  %v3363_v59 = vpop.f32.mrf.mxu3  ;;  %v3298_v61 = vmax.f32 %v3201_v30, %v3266_v20  ;;  %v8936_v20 = vld [vmem:[#allocation131_spill] sm:$0xff] }
 0xb61   :  { %v3172_v15 = vpop.f32.mrf.mxu1  ;;  %v2729_v24 = vadd.f32 %v8055_v16, %v8936_v20 }
 0xb62   :  { %v3555_v18 = vsel %vm3523_vm10, %v3507_v47, %v3539_v25  ;;  %v3463_v36 = vpop.f32.mrf.mxu0  ;;  %v3395_v34 = vmax.f32 %v3298_v61, %v3363_v59  ;;  %v3202_v45 = vmax.f32 %v8928_v8, %v3172_v15  ;;  %v8937_v15 = vld [vmem:[#allocation127_spill] sm:$0xff]  ;;  %v8941_v8 = vld [vmem:[#allocation137_spill] sm:$0xff] }
 0xb63   :  { %v3575_v41 = vsel %vm3564_vm4, %v3555_v18, -inf  ;;  %v2720_v18 = vadd.f32 %v8055_v16, %v8937_v15 }
 0xb64   :  { %v3576_v31 = vmax.f32 %v3568_v23, %v3575_v41  ;;  %v3492_v43 = vmax.f32 %v3395_v34, %v3460_v17  ;;  %v8934_v17 = vld [vmem:[#allocation114_spill] sm:$0xff]  ;;  %v8938_v41 = vmax.f32 %v7966_v28, %v7898_v7  ;;  %v8939_v34 = vld [vmem:[#allocation133_spill] sm:$0xff] }
 0xb65   :  { %v8935_v10 = vmax.f32 %v8933_v32, %v8934_v17  ;;  %v2732_v37 = vadd.f32 %v8055_v16, %v8939_v34  ;;  %v47_v28 = vld [vmem:[%s8220_s3 + $0x58] sm:$0xff] }
 0xb66   :  { %v3578_v4 = vmax.f32 %v3574_v11, %v3576_v31  ;;  %v3508_v55 = vadd.f32 %v3492_v43, %v2717_v14  ;;  %v43_v43 = vld [vmem:[%s8220_s3 + $0x38] sm:$0xff]  ;;  %3679 = vmatpush.msra.mxu1 %v47_v28 }
 0xb67   :  { %v3269_v9 = vpop.f32.mrf.mxu2 }
 0xb68   :  { %v8097_v3 = vmax.f32 %v3577_v54, %v3578_v4  ;;  %v3366_v2 = vpop.f32.mrf.mxu3  ;;  %v3299_v54 = vmax.f32 %v3202_v45, %v3269_v9  ;;  %v3540_v25 = vmul.f32 0.2, %v3508_v55  ;;  %vm3524_vm13 = vcmp.gt.f32.partialorder %v3508_v55, 0.0 }
 0xb69   :  { %v3175_v62 = vpop.f32.mrf.mxu1  ;;  %v8942_v45 = vmax.f32 %v8940_v1, %v8941_v8 }
 0xb6a   :  { %v8099_v60 = vpop.f32.mrf.mxu0  ;;  %v3396_v22 = vmax.f32 %v3299_v54, %v3366_v2  ;;  %v3203_v29 = vmax.f32 %v8935_v10, %v3175_v62 }
 0xb6c   :  { %v3493_v21 = vmax.f32 %v3396_v22, %v3463_v36  ;;  %v3556_v36 = vsel %vm3524_vm13, %v3508_v55, %v3540_v25 }
 0xb6d   :  { %v3613_v48 = vsel %vm3564_vm4, %v3556_v36, -inf }
 0xb6e   :  { %v3509_v4 = vadd.f32 %v3493_v21, %v2720_v18  ;;  %v8944_v21 = vld [vmem:[#allocation132_spill] sm:$0xff] }
 0xb6f   :  { %v3272_v46 = vpop.f32.mrf.mxu2 }
 0xb70   :  { %v3369_v33 = vpop.f32.mrf.mxu3  ;;  %v3300_v47 = vmax.f32 %v3203_v29, %v3272_v46  ;;  %vm3525_vm7 = vcmp.gt.f32.partialorder %v3509_v4, 0.0 }
 0xb71   :  { %v3178_v57 = vpop.f32.mrf.mxu1 }
 0xb72   :  { %v8104_v19 = vpop.f32.mrf.mxu0  ;;  %v3397_v9 = vmax.f32 %v3300_v47, %v3369_v33  ;;  %v44_v33 = vld [vmem:[%s8220_s3 + $0x40] sm:$0xff]  ;;  %v2735_v47 = vadd.f32 %v8055_v16, %v8944_v21 }
 0xb73   :  { %3701 = vmatpush.msra.mxu2 %v44_v33  ;;  %v4231_v21 = vld [vmem:[%s8222_s4 + $0x2] ss:$0 sm:$0xff] }
 0xb74   :  { %v3494_v35 = vmax.f32 %v3397_v9, %v8099_v60  ;;  %v46_v9 = vld [vmem:[%s8220_s3 + $0x50] sm:$0xff] }
 0xb75   :  { %3702 = vmatpush.msra.mxu2 %v43_v43  ;;  %3680 = vmatpush.msra.mxu1 %v46_v9 }
 0xb77   :  { %v8106_v26 = vpop.f32.mrf.mxu2 }
 0xb78   :  { %v8108_v58 = vpop.f32.mrf.mxu3 }
 0xb79   :  { %v3181_v51 = vpop.f32.mrf.mxu1 }
 0xb7a   :  { %v3472_v38 = vpop.f32.mrf.mxu0  ;;  %v3205_v56 = vmax.f32 %v8932_v50, %v3181_v51  ;;  %v3204_v51 = vmax.f32 %v8942_v45, %v3178_v57  ;;  %v42_v50 = vld [vmem:[%s8220_s3 + $0x30] sm:$0xff] }
 0xb7b   :  { %3703 = vmatpush.msra.mxu2 %v42_v50 }
 0xb7c   :  { %v3301_v14 = vmax.f32 %v3204_v51, %v8106_v26 }
 0xb7e   :  { %v3398_v26 = vmax.f32 %v3301_v14, %v8108_v58 }
 0xb7f   :  { %v3278_v52 = vpop.f32.mrf.mxu2 }
 0xb80   :  { %v3302_v44 = vmax.f32 %v3205_v56, %v3278_v52  ;;  %v3375_v63 = vpop.f32.mrf.mxu3  ;;  %v8943_v56 = vld [vmem:[#allocation129_spill] sm:$0xff] }
 0xb81   :  { %v3184_v49 = vpop.f32.mrf.mxu1  ;;  %v2723_v22 = vadd.f32 %v8055_v16, %v8943_v56 }
 0xb82   :  { %v3399_v11 = vmax.f32 %v3302_v44, %v3375_v63  ;;  %v3206_v31 = vmax.f32 %v8938_v41, %v3184_v49  ;;  %v3475_v2 = vpop.f32.mrf.mxu0 }
 0xb83   :  { %v3510_v44 = vadd.f32 %v3494_v35, %v2723_v22 }
 0xb84   :  { %v3496_v59 = vmax.f32 %v3399_v11, %v3472_v38  ;;  %v3541_v38 = vmul.f32 0.2, %v3509_v4 }
 0xb85   :  { %v3542_v39 = vmul.f32 0.2, %v3510_v44  ;;  %vm3526_vm2 = vcmp.gt.f32.partialorder %v3510_v44, 0.0 }
 0xb86   :  { %v3512_v23 = vadd.f32 %v3496_v59, %v2729_v24  ;;  %v3557_v55 = vsel %vm3525_vm7, %v3509_v4, %v3541_v38  ;;  %v3495_v24 = vmax.f32 %v3398_v26, %v8104_v19  ;;  %v8945_v59 = vld [vmem:[#allocation110_spill] sm:$0xff] }
 0xb87   :  { %v3281_v62 = vpop.f32.mrf.mxu2  ;;  %v3614_v20 = vsel %vm3564_vm4, %v3557_v55, -inf  ;;  %v2726_v15 = vadd.f32 %v8055_v16, %v8945_v59  ;;  %v55_v19 = vld [vmem:[%s8220_s3 + $0x98] sm:$0xff] }
 0xb88   :  { %vm3528_vm12 = vcmp.gt.f32.partialorder %v3512_v23, 0.0  ;;  %v3544_v46 = vmul.f32 0.2, %v3512_v23  ;;  %v3303_v12 = vmax.f32 %v3206_v31, %v3281_v62  ;;  %v3378_v30 = vpop.f32.mrf.mxu3  ;;  %v3558_v31 = vsel %vm3526_vm2, %v3510_v44, %v3542_v39  ;;  %3724 = vmatpush.msrb.mxu1 %v55_v19 }
 0xb89   :  { %v3187_v61 = vpop.f32.mrf.mxu1 }
 0xb8a   :  { %v3560_v54 = vsel %vm3528_vm12, %v3512_v23, %v3544_v46  ;;  %v3400_v7 = vmax.f32 %v3303_v12, %v3378_v30  ;;  %v3207_v60 = vmax.f32 %v3110_v40, %v3187_v61  ;;  %v3478_v29 = vpop.f32.mrf.mxu0  ;;  %v53_v12 = vld [vmem:[%s8220_s3 + $0x88] sm:$0xff]  ;;  %v3615_v30 = vsel %vm3564_vm4, %v3558_v31, -inf  ;;  %3725 = vmatpush.msrb.mxu1 %v54_v42 }
 0xb8b   :  { %v3617_v57 = vsel %vm3564_vm4, %v3560_v54, -inf  ;;  %v3580_v54 = vrot.slane %v8097_v3, 4 }
 0xb8c   :  { %v3618_v6 = vmax.f32 %v3613_v48, %v3617_v57  ;;  %v3497_v5 = vmax.f32 %v3400_v7, %v3475_v2  ;;  %v3511_v2 = vadd.f32 %v3495_v24, %v2726_v15  ;;  %3726 = vmatpush.msrb.mxu1 %v53_v12  ;;  %v52_v7 = vld [vmem:[%s8220_s3 + $0x80] sm:$0xff] }
 0xb8e   :  { %v3513_v52 = vadd.f32 %v3497_v5, %v2732_v37  ;;  %v8946_v37 = vld [vmem:[#allocation135_spill] sm:$0xff]  ;;  %v3543_v8 = vmul.f32 0.2, %v3511_v2  ;;  %vm3527_vm0 = vcmp.gt.f32.partialorder %v3511_v2, 0.0  ;;  %3727 = vmatpush.msrb.mxu1 %v52_v7 }
 0xb8f   :  { %v3284_v63 = vpop.f32.mrf.mxu2  ;;  %v2738_v1 = vadd.f32 %v8055_v16, %v8946_v37  ;;  %v3581_v16 = vmax.f32 %v8097_v3, %v3580_v54 }
 0xb90   :  { %vm3529_vm5 = vcmp.gt.f32.partialorder %v3513_v52, 0.0  ;;  %v3545_v32 = vmul.f32 0.2, %v3513_v52  ;;  %v3304_v17 = vmax.f32 %v3207_v60, %v3284_v63  ;;  %v3381_v10 = vpop.f32.mrf.mxu3  ;;  %v3559_v43 = vsel %vm3527_vm0, %v3511_v2, %v3543_v8 }
 0xb91   :  { %v3190_v40 = vpop.f32.mrf.mxu1  ;;  %v3662_v33 = vpop.permute.xlu1 %3661  ;;  %v3616_v35 = vsel %vm3564_vm4, %v3559_v43, -inf }
 0xb92   :  { %v3561_v49 = vsel %vm3529_vm5, %v3513_v52, %v3545_v32  ;;  %v3401_v11 = vmax.f32 %v3304_v17, %v3381_v10  ;;  %v3208_v41 = vmax.f32 %v3111_v0, %v3190_v40  ;;  %v3481_v34 = vpop.f32.mrf.mxu0  ;;  %4077 = vmatmul.msk.f32.vlgmr.msra.gmra.mxu1 %vm2560_vm14, %v3662_v33  ;;  %v51_v10 = vld [vmem:[%s8220_s3 + $0x78] sm:$0xff]  ;;  %vm3712_vm14 = vcmask 523264   ;;  %v4232_v40 = vld [vmem:[%s8222_s4 + $0x3] ss:$0 sm:$0xff] }
 0xb93   :  { %v3619_v53 = vsel %vm3564_vm4, %v3561_v49, -inf  ;;  %3728 = vmatpush.msrb.mxu1 %v51_v10  ;;  %v49_v49 = vld [vmem:[%s8220_s3 + $0x68] sm:$0xff] }
 0xb94   :  { %v3620_v58 = vmax.f32 %v3614_v20, %v3619_v53  ;;  %v3498_v25 = vmax.f32 %v3401_v11, %v3478_v29  ;;  %v50_v29 = vld [vmem:[%s8220_s3 + $0x70] sm:$0xff] }
 0xb95   :  { %3729 = vmatpush.msrb.mxu1 %v50_v29 }
 0xb96   :  { %v3625_v18 = vmax.f32 %v3618_v6, %v3620_v58  ;;  %v3514_v23 = vadd.f32 %v3498_v25, %v2735_v47  ;;  %v3582_v6 = vrot.slane %v3581_v16, 2 }
 0xb97   :  { %v3287_v4 = vpop.f32.mrf.mxu2  ;;  %3730 = vmatpush.msrb.mxu1 %v49_v49 }
 0xb98   :  { %vm3530_vm1 = vcmp.gt.f32.partialorder %v3514_v23, 0.0  ;;  %v3546_v62 = vmul.f32 0.2, %v3514_v23  ;;  %v3305_v36 = vmax.f32 %v3208_v41, %v3287_v4  ;;  %v3384_v27 = vpop.f32.mrf.mxu3  ;;  %v3583_v56 = vmax.f32 %v3581_v16, %v3582_v6 }
 0xb99   :  { %3731 = vmatpush.msrb.mxu1 %v48_v13 }
 0xb9a   :  { %v3562_v0 = vsel %vm3530_vm1, %v3514_v23, %v3546_v62  ;;  %v3402_v46 = vmax.f32 %v3305_v36, %v3384_v27  ;;  %v3584_v60 = vrot.slane %v3583_v56, 1 }
 0xb9b   :  { %v3621_v61 = vsel %vm3564_vm4, %v3562_v0, -inf }
 0xb9c   :  { %v3622_v45 = vmax.f32 %v3615_v30, %v3621_v61  ;;  %v3499_v51 = vmax.f32 %v3402_v46, %v3481_v34  ;;  %v3585_v63 = vmax.f32 %v3583_v56, %v3584_v60 }
 0xb9e   :  { %v3515_v28 = vadd.f32 %v3499_v51, %v2738_v1  ;;  %v3611_v3 = vsel %vm3608_vm6, %v3585_v63, 0.0 }
 0xba0   :  { %vm3531_vm3 = vcmp.gt.f32.partialorder %v3515_v28, 0.0  ;;  %v3547_v48 = vmul.f32 0.2, %v3515_v28 }
 0xba2   :  { %v3563_v38 = vsel %vm3531_vm3, %v3515_v28, %v3547_v48 }
 0xba3   :  { %v3623_v57 = vsel %vm3564_vm4, %v3563_v38, -inf }
 0xba4   :  { %v3624_v14 = vmax.f32 %v3616_v35, %v3623_v57 }
 0xba6   :  { %v3626_v5 = vmax.f32 %v3622_v45, %v3624_v14 }
 0xba8   :  { %v3627_v50 = vmax.f32 %v3625_v18, %v3626_v5 }
 0xbaa   :  { %v3628_v22 = vrot.slane %v3627_v50, 4 }
 0xbac   :  { %v3629_v52 = vmax.f32 %v3627_v50, %v3628_v22 }
 0xbae   :  { %v3630_v55 = vrot.slane %v3629_v52, 2 }
 0xbb0   :  { %v3631_v44 = vmax.f32 %v3629_v52, %v3630_v55 }
 0xbb2   :  { %v3632_v26 = vrot.slane %v3631_v44, 1 }
 0xbb4   :  { %v3633_v32 = vmax.f32 %v3631_v44, %v3632_v26 }
 0xbb6   :  { %v3658_v17 = vsel %vm3655_vm15, %v3633_v32, %v3611_v3 }
 0xbb7   :  { %4078 = vmatmul.msk.f32.vlgmr.msra.gmra.mxu2 %vm3564_vm4, %v3658_v17 }
 0xc0f   :  { %v3682_v11 = vpop.f32.mrf.mxu1 }
 0xc3a   :  { %v3705_v47 = vpop.f32.mrf.mxu2 }
 0xc3b   :  { %v3706_v20 = vadd.f32 %v3705_v47, %v3682_v11 }
 0xc3d   :  { %v3709_v39 = vadd.f32 %v4231_v21, %v3706_v20 }
 0xc3f   :  { %v3710_v53 = vmax.f32 %v3709_v39, 0.0 }
 0xc41   :  { %4079 = vmatmul.msk.f32.vlgmr.msrb.gmra.mxu1 %vm3712_vm14, %v3710_v53 }
 0xcbe   :  { %v3733_v24 = vpop.f32.mrf.mxu1 }
 0xcbf   :  { %v3734_v58 = vadd.f32 %v4232_v40, %v3733_v24 }
 0xcc1   :  { %3736 = vst [vmem:[%s8223_s5] sm:$0x3] %v3734_v58 }

</bundles_post_ra>
